<compile_context>
chip_gen: v7x
topology: tpu7x:2x2x1
jax: 0.10.0
libtpu: 0.0.40
codegen_flags: <defaults>
</compile_context>

<pallas_src>
import jax
import jax.numpy as jnp
from jax.experimental import pallas as pl
from jax.experimental.pallas import tpu as pltpu

K_IN = 784            # 28*28
K_PAD = 896           # 7 * 128  (lane-aligned K for the first matmul)
H = 512
N_CLS = 10
N_PAD = 128           # lane-aligned classifier width
MAX_TILE_B = 1024     # batch (M) tile cap; VMEM stays well under limits on all gens


def mlp_kernel(x_ref, w1_ref, b1_ref, w2_ref, b2_ref, w3_ref, b3_ref, out_ref):
    """One batch tile of the forward pass.

    x_ref  : (TILE_B, K_PAD) bf16
    w1_ref : (K_PAD, H) bf16, b1_ref : (1, H)     f32
    w2_ref : (H, H)     bf16, b2_ref : (1, H)     f32
    w3_ref : (H, N_PAD) bf16, b3_ref : (1, N_PAD) f32 (padded classes = -1e30)
    out_ref: (1, TILE_B) i32  -- lane-dense row of predicted class indices
    """
    x = x_ref[...]

    # Linear(784->512) + ReLU  (bf16 MXU inputs, f32 accumulation; f32 VPU ops
    # kept for v5e compatibility -- no bf16 VALU there).
    h1 = jnp.dot(x, w1_ref[...], preferred_element_type=jnp.float32) + b1_ref[...]
    h1 = jnp.maximum(h1, 0.0).astype(jnp.bfloat16)

    # Linear(512->512) + ReLU
    h2 = jnp.dot(h1, w2_ref[...], preferred_element_type=jnp.float32) + b2_ref[...]
    h2 = jnp.maximum(h2, 0.0).astype(jnp.bfloat16)

    # Linear(512->10), padded to 128 lanes; padded classes carry bias -1e30.
    logits = jnp.dot(h2, w3_ref[...], preferred_element_type=jnp.float32) + b3_ref[...]

    # argmax(softmax(logits)) == argmax(logits) -> softmax omitted.
    # Transpose once so the per-row argmax lands lane-major: one unmasked
    # (1, TILE_B) store instead of TILE_B masked partial stores.
    lt = logits.T                                            # (N_PAD, TILE_B), XLU
    cls = jax.lax.broadcasted_iota(jnp.int32, lt.shape, 0)   # class id per sublane
    maxv = jnp.max(lt, axis=0, keepdims=True)                # (1, TILE_B)
    cand = jnp.where(lt == maxv, cls, jnp.int32(N_PAD))
    out_ref[...] = jnp.min(cand, axis=0, keepdims=True)      # first-max tie-break


def prepare_params(params):
    """One-time parameter prep: pad for lane alignment, cast weights to bf16."""
    w1, b1, w2, b2, w3, b3 = params
    w1p = jnp.zeros((K_PAD, H), jnp.bfloat16).at[:K_IN, :].set(w1.astype(jnp.bfloat16))
    w2p = w2.astype(jnp.bfloat16)
    w3p = jnp.zeros((H, N_PAD), jnp.bfloat16).at[:, :N_CLS].set(w3.astype(jnp.bfloat16))
    b1p = b1.reshape(1, H).astype(jnp.float32)
    b2p = b2.reshape(1, H).astype(jnp.float32)
    # Padded classes get a huge negative bias so they can never win the argmax.
    b3p = jnp.full((1, N_PAD), -1e30, jnp.float32).at[:, :N_CLS].set(
        b3.reshape(1, N_CLS).astype(jnp.float32))
    return (w1p, b1p, w2p, b2p, w3p, b3p)


def _choose_tile_b(batch):
    """Static batch tile: as large as possible (multiple of 128, <= MAX_TILE_B),
    but for big batches keep >= 2 grid steps so the 'parallel' axis can shard
    onto both TensorCores on v7x."""
    b128 = 128 * pl.cdiv(batch, 128)
    if b128 <= MAX_TILE_B:
        return b128                       # whole (padded) batch in one grid step
    return min(MAX_TILE_B, 128 * pl.cdiv(pl.cdiv(batch, 2), 128))


def neural_network_forward(x_nchw, prepared_params, tile_b=None):
    """x_nchw: (B, 1, 28, 28) f32 -> (B,) int32 predicted class indices."""
    w1, b1, w2, b2, w3, b3 = prepared_params
    B = x_nchw.shape[0]
    if tile_b is None:
        tile_b = _choose_tile_b(B)

    num_tiles = pl.cdiv(B, tile_b)
    B_pad = num_tiles * tile_b

    # nn.Flatten() + bf16 cast + pad (K 784->896, batch B->B_pad). A single
    # jnp.pad lets XLA fuse convert+pad into one HBM pass (no zeros+scatter
    # round-trip of the input like before).
    x_flat = x_nchw.reshape(B, -1).astype(jnp.bfloat16)
    x_padded = jnp.pad(x_flat, ((0, B_pad - B), (0, K_PAD - K_IN)))

    const2 = lambda i: (0, 0)  # weights/biases stay VMEM-resident across batch tiles

    flops = 2 * B_pad * (K_PAD * H + H * H + H * N_PAD)
    weight_bytes = 2 * (K_PAD * H + H * H + H * N_PAD) + 4 * (H + H + N_PAD)
    bytes_accessed = 2 * B_pad * K_PAD + weight_bytes + 4 * B_pad

    out = pl.pallas_call(
        mlp_kernel,
        out_shape=jax.ShapeDtypeStruct((1, B_pad), jnp.int32),
        grid=(num_tiles,),
        in_specs=[
            pl.BlockSpec((tile_b, K_PAD), lambda i: (i, 0)),   # x: tiled on batch
            pl.BlockSpec((K_PAD, H), const2),
            pl.BlockSpec((1, H), const2),
            pl.BlockSpec((H, H), const2),
            pl.BlockSpec((1, H), const2),
            pl.BlockSpec((H, N_PAD), const2),
            pl.BlockSpec((1, N_PAD), const2),
        ],
        out_specs=pl.BlockSpec((1, tile_b), lambda i: (0, i)),  # lane-dense row
        compiler_params=pltpu.CompilerParams(
            dimension_semantics=("parallel",)),                 # 2 TCs on v7x
        cost_estimate=pl.CostEstimate(
            flops=flops, transcendentals=0, bytes_accessed=bytes_accessed),
    )(x_padded, w1, b1, w2, b2, w3, b3)

    # NOTE: PyTorch argmax returns int64; we return int32 class indices.
    return out[0, :B]


def init_params(key):
    """Deterministic init mimicking nn.Linear shapes (stored as (in, out)), f32."""
    k1, k2, k3, k4, k5, k6 = jax.random.split(key, 6)

    def uniform(k, shape, fan_in):
        bound = 1.0 / jnp.sqrt(fan_in)
        return jax.random.uniform(k, shape, jnp.float32, -bound, bound)

    w1 = uniform(k1, (K_IN, H), float(K_IN))
    b1 = uniform(k2, (H,), float(K_IN))
    w2 = uniform(k3, (H, H), float(H))
    b2 = uniform(k4, (H,), float(H))
    w3 = uniform(k5, (H, N_CLS), float(H))
    b3 = uniform(k6, (N_CLS,), float(H))
    return (w1, b1, w2, b2, w3, b3)


if __name__ == "__main__":
    key = jax.random.PRNGKey(0)
    pkey, xkey = jax.random.split(key)

    params = init_params(pkey)
    prepared = prepare_params(params)

    # Small MNIST-like batch: (batch=2, channels=1, 28, 28), NCHW.
    # B=2 is a functional-test size, not a perf configuration (kernel runs one
    # 128-row tile; realistic batches use 512-1024-row tiles).
    x = jax.random.normal(xkey, (2, 1, 28, 28), dtype=jnp.float32)

    y_pred = neural_network_forward(x, prepared)
    y_pred = jax.block_until_ready(y_pred)

    # Sanity check against a pure-JAX f32 reference (softmax omitted: same argmax).
    w1, b1, w2, b2, w3, b3 = params
    xf = x.reshape(x.shape[0], -1)
    h1 = jnp.maximum(xf @ w1 + b1, 0.0)
    h2 = jnp.maximum(h1 @ w2 + b2, 0.0)
    logits = h2 @ w3 + b3
    ref = jnp.argmax(logits, axis=1).astype(jnp.int32)

    assert y_pred.shape == (2,)
    assert y_pred.dtype == jnp.int32
    assert bool(jnp.all(y_pred == ref)), (y_pred, ref)

    print("KERNEL_OK")
</pallas_src>

<mosaic_0001>
module attributes {stable_mosaic.version = 11 : i64} {
  func.func @mlp_kernel(%arg0: i32, %arg1: memref<128x896xbf16, #tpu.memory_space<vmem>>, %arg2: memref<896x512xbf16, #tpu.memory_space<vmem>>, %arg3: memref<1x512xf32, #tpu.memory_space<vmem>>, %arg4: memref<512x512xbf16, #tpu.memory_space<vmem>>, %arg5: memref<1x512xf32, #tpu.memory_space<vmem>>, %arg6: memref<512x128xbf16, #tpu.memory_space<vmem>>, %arg7: memref<1x128xf32, #tpu.memory_space<vmem>>, %arg8: memref<1x128xi32, #tpu.memory_space<vmem>>) attributes {dimension_semantics = [#tpu.dimension_semantics<parallel>], iteration_bounds = array<i64: 1>, scalar_prefetch = 0 : i64, scratch_operands = 0 : i64, tpu.core_type = #tpu.core_type<tc>, window_params = [{transform_indices = @transform_0, window_bounds = array<i64: 128, 896>}, {pipeline_mode = #tpu.pipeline_mode<synchronous>, transform_indices = @transform_1, window_bounds = array<i64: 896, 512>}, {pipeline_mode = #tpu.pipeline_mode<synchronous>, transform_indices = @transform_2, window_bounds = array<i64: 1, 512>}, {pipeline_mode = #tpu.pipeline_mode<synchronous>, transform_indices = @transform_3, window_bounds = array<i64: 512, 512>}, {pipeline_mode = #tpu.pipeline_mode<synchronous>, transform_indices = @transform_4, window_bounds = array<i64: 1, 512>}, {pipeline_mode = #tpu.pipeline_mode<synchronous>, transform_indices = @transform_5, window_bounds = array<i64: 512, 128>}, {pipeline_mode = #tpu.pipeline_mode<synchronous>, transform_indices = @transform_6, window_bounds = array<i64: 1, 128>}, {transform_indices = @transform_7, window_bounds = array<i64: 1, 128>}]} {
    %c0 = arith.constant 0 : index
    %c0_0 = arith.constant 0 : index
    %0 = vector.load %arg1[%c0, %c0_0] : memref<128x896xbf16, #tpu.memory_space<vmem>>, vector<128x896xbf16>
    %c0_1 = arith.constant 0 : index
    %c0_2 = arith.constant 0 : index
    %1 = vector.load %arg2[%c0_1, %c0_2] : memref<896x512xbf16, #tpu.memory_space<vmem>>, vector<896x512xbf16>
    %cst = arith.constant dense<0.000000e+00> : vector<128x512xf32>
    %2 = tpu.matmul %0, %1, %cst {dimension_numbers = #tpu.dot_dimension_numbers<[1], [0], [0], [1], [0, 0, 1, 1], [], []>} : vector<128x896xbf16>, vector<896x512xbf16>, vector<128x512xf32> -> vector<128x512xf32>
    %c0_3 = arith.constant 0 : index
    %c0_4 = arith.constant 0 : index
    %3 = vector.load %arg3[%c0_3, %c0_4] : memref<1x512xf32, #tpu.memory_space<vmem>>, vector<1x512xf32>
    %4 = vector.broadcast %3 : vector<1x512xf32> to vector<128x512xf32>
    %5 = arith.addf %2, %4 : vector<128x512xf32>
    %cst_5 = arith.constant 0.000000e+00 : f32
    %6 = vector.broadcast %cst_5 : f32 to vector<128x512xf32>
    %7 = arith.maximumf %5, %6 : vector<128x512xf32>
    %8 = arith.truncf %7 : vector<128x512xf32> to vector<128x512xbf16>
    %c0_6 = arith.constant 0 : index
    %c0_7 = arith.constant 0 : index
    %9 = vector.load %arg4[%c0_6, %c0_7] : memref<512x512xbf16, #tpu.memory_space<vmem>>, vector<512x512xbf16>
    %cst_8 = arith.constant dense<0.000000e+00> : vector<128x512xf32>
    %10 = tpu.matmul %8, %9, %cst_8 {dimension_numbers = #tpu.dot_dimension_numbers<[1], [0], [0], [1], [0, 0, 1, 1], [], []>} : vector<128x512xbf16>, vector<512x512xbf16>, vector<128x512xf32> -> vector<128x512xf32>
    %c0_9 = arith.constant 0 : index
    %c0_10 = arith.constant 0 : index
    %11 = vector.load %arg5[%c0_9, %c0_10] : memref<1x512xf32, #tpu.memory_space<vmem>>, vector<1x512xf32>
    %12 = vector.broadcast %11 : vector<1x512xf32> to vector<128x512xf32>
    %13 = arith.addf %10, %12 : vector<128x512xf32>
    %cst_11 = arith.constant 0.000000e+00 : f32
    %14 = vector.broadcast %cst_11 : f32 to vector<128x512xf32>
    %15 = arith.maximumf %13, %14 : vector<128x512xf32>
    %16 = arith.truncf %15 : vector<128x512xf32> to vector<128x512xbf16>
    %c0_12 = arith.constant 0 : index
    %c0_13 = arith.constant 0 : index
    %17 = vector.load %arg6[%c0_12, %c0_13] : memref<512x128xbf16, #tpu.memory_space<vmem>>, vector<512x128xbf16>
    %cst_14 = arith.constant dense<0.000000e+00> : vector<128x128xf32>
    %18 = tpu.matmul %16, %17, %cst_14 {dimension_numbers = #tpu.dot_dimension_numbers<[1], [0], [0], [1], [0, 0, 1, 1], [], []>} : vector<128x512xbf16>, vector<512x128xbf16>, vector<128x128xf32> -> vector<128x128xf32>
    %c0_15 = arith.constant 0 : index
    %c0_16 = arith.constant 0 : index
    %19 = vector.load %arg7[%c0_15, %c0_16] : memref<1x128xf32, #tpu.memory_space<vmem>>, vector<1x128xf32>
    %20 = vector.broadcast %19 : vector<1x128xf32> to vector<128x128xf32>
    %21 = arith.addf %18, %20 : vector<128x128xf32>
    %22 = tpu.transpose %21, [1, 0] : vector<128x128xf32> -> vector<128x128xf32>
    %23 = tpu.iota {dimensions = array<i32: 0>} : vector<128x128xi32>
    %cst_17 = arith.constant dense<0xFF800000> : vector<128xf32>
    %24 = vector.multi_reduction <maximumf>, %22, %cst_17 [0] : vector<128x128xf32> to vector<128xf32>
    %25 = vector.shape_cast %24 : vector<128xf32> to vector<1x128xf32>
    %26 = vector.broadcast %25 : vector<1x128xf32> to vector<128x128xf32>
    %27 = arith.cmpf oeq, %22, %26 : vector<128x128xf32>
    %c128_i32 = arith.constant 128 : i32
    %28 = vector.broadcast %c128_i32 : i32 to vector<128x128xi32>
    %29 = arith.select %27, %23, %28 : vector<128x128xi1>, vector<128x128xi32>
    %cst_18 = arith.constant dense<2147483647> : vector<128xi32>
    %30 = vector.multi_reduction <minsi>, %29, %cst_18 [0] : vector<128x128xi32> to vector<128xi32>
    %31 = vector.shape_cast %30 : vector<128xi32> to vector<1x128xi32>
    %c0_19 = arith.constant 0 : index
    %c0_20 = arith.constant 0 : index
    %32 = vector.load %arg8[%c0_19, %c0_20] : memref<1x128xi32, #tpu.memory_space<vmem>>, vector<1x128xi32>
    tpu.vector_store %arg8[%c0_19, %c0_20], %31 {strides = array<i32>} : memref<1x128xi32, #tpu.memory_space<vmem>>, vector<1x128xi32>,
    return
  }
  func.func @transform_0(%arg0: i32) -> (i32, i32) {
    %c0_i32 = arith.constant 0 : i32
    %c0_i32_0 = arith.constant 0 : i32
    return %arg0, %c0_i32 : i32, i32
  }
  func.func @transform_1(%arg0: i32) -> (i32, i32) {
    %c0_i32 = arith.constant 0 : i32
    %c0_i32_0 = arith.constant 0 : i32
    %c0_i32_1 = arith.constant 0 : i32
    return %c0_i32, %c0_i32_0 : i32, i32
  }
  func.func @transform_2(%arg0: i32) -> (i32, i32) {
    %c0_i32 = arith.constant 0 : i32
    %c0_i32_0 = arith.constant 0 : i32
    %c0_i32_1 = arith.constant 0 : i32
    return %c0_i32, %c0_i32_0 : i32, i32
  }
  func.func @transform_3(%arg0: i32) -> (i32, i32) {
    %c0_i32 = arith.constant 0 : i32
    %c0_i32_0 = arith.constant 0 : i32
    %c0_i32_1 = arith.constant 0 : i32
    return %c0_i32, %c0_i32_0 : i32, i32
  }
  func.func @transform_4(%arg0: i32) -> (i32, i32) {
    %c0_i32 = arith.constant 0 : i32
    %c0_i32_0 = arith.constant 0 : i32
    %c0_i32_1 = arith.constant 0 : i32
    return %c0_i32, %c0_i32_0 : i32, i32
  }
  func.func @transform_5(%arg0: i32) -> (i32, i32) {
    %c0_i32 = arith.constant 0 : i32
    %c0_i32_0 = arith.constant 0 : i32
    %c0_i32_1 = arith.constant 0 : i32
    return %c0_i32, %c0_i32_0 : i32, i32
  }
  func.func @transform_6(%arg0: i32) -> (i32, i32) {
    %c0_i32 = arith.constant 0 : i32
    %c0_i32_0 = arith.constant 0 : i32
    %c0_i32_1 = arith.constant 0 : i32
    return %c0_i32, %c0_i32_0 : i32, i32
  }
  func.func @transform_7(%arg0: i32) -> (i32, i32) {
    %c0_i32 = arith.constant 0 : i32
    %c0_i32_0 = arith.constant 0 : i32
    return %c0_i32, %arg0 : i32, i32
  }
}

</mosaic_0001>

<bundles_post_ra>
// kernel: tpu_custom_call.1
= control target key start
LH: loop header
LB: loop body
LE: loop exit
PB: predicated region body
PF: predicated region fallthrough
CT: control target
= control target key end

     0   :  { %12 = vsyncpa [#allocation3], 0  ;;  %s6983_s0 = inlined_call_operand.hbm [shape: bf16[128,896], index: 0, kind: input, shape index: {}]   ;;  %s6984_s1 = inlined_call_operand.hbm [shape: bf16[896,512], index: 1, kind: input, shape index: {}]   ;;  %s6985_s2 = inlined_call_operand.vmem [shape: f32[1,512], index: 2, kind: input, shape index: {}]   ;;  %s6986_s3 = inlined_call_operand.hbm [shape: bf16[512,512], index: 3, kind: input, shape index: {}]   ;;  %s6987_s4 = inlined_call_operand.vmem [shape: f32[1,512], index: 4, kind: input, shape index: {}]   ;;  %s6988_s5 = inlined_call_operand.hbm [shape: bf16[512,128], index: 5, kind: input, shape index: {}]   ;;  %s6989_s6 = inlined_call_operand.vmem [shape: f32[1,128], index: 6, kind: input, shape index: {}]   ;;  %s6990_s7 = inlined_call_operand.hbm [shape: s32[1,128], index: 7, kind: output, shape index: {}]  }
   0x1   :  { %13 = vsyncpa [#allocation6], 0 }
   0x2   :  { %14 = vsyncpa [#allocation9], 0 }
   0x3   :  { %15 = vsyncpa [#allocation4], 0  ;;  %s6478_s24 = smov [#allocation5]   ;;  %s6360_s28 = scalar_lea.hbm %s6984_s1, 28672 }
   0x4   :  { %s33_s25 = sshll.u32 %s6478_s24, 4  ;;  %p6361_p0 = scmp.ne.s32.totalorder %s6984_s1, %s6360_s28  ;;  %s34_s25 = int_to_ptr.vmem [resolvable:$true] %s33_s25 }
   0x5   :  { %p6364_p1 = scmp.lt.u32.totalorder %s6360_s28, %s6984_s1 }
   0x7   :  { %p6366_p2 = pnand %p6364_p1, %p6361_p0 }
   0x9   :  { %6369 = shalt.err (!%p6366_p2)
}
   0xa   :  { %s6370_s10 = scalar_lea.vmem %s34_s25, 28672  ;;  %p6375_p4 = scmp.lt.s32.totalorder %s34_s25, %s34_s25 }
   0xb   :  { %p6371_p3 = scmp.ne.s32.totalorder %s34_s25, %s6370_s10  ;;  %p6376_p5 = scmp.lt.s32.totalorder %s6370_s10, %s6370_s10 }
   0xd   :  { %p6377_p6 = por %p6376_p5, %p6375_p4 }
   0xf   :  { %p6378_p7 = pnand %p6377_p6, %p6371_p3 }
  0x11   :  { %6381 = shalt.err (!%p6378_p7)
}
  0x12   :  { %s6479_s11 = smov 256   ;;  %s6480_s12 = smov 16  }
  0x13   :  { %39 = dma.hbm_to_vmem [thread:$0]  %s6984_s1, 28672, %s34_s25, [#allocation6], %s6479_s11, %s6479_s11, %s6480_s12  }
  0x14   :  { %s6481_s15 = smov [#allocation2]   ;;  %s6382_s19 = scalar_lea.hbm %s6983_s0, 7168 }
  0x15   :  { %s21_s16 = sshll.u32 %s6481_s15, 4  ;;  %p6383_p8 = scmp.ne.s32.totalorder %s6983_s0, %s6382_s19  ;;  %s22_s16 = int_to_ptr.vmem [resolvable:$true] %s21_s16 }
  0x16   :  { %p6386_p9 = scmp.lt.u32.totalorder %s6382_s19, %s6983_s0 }
  0x18   :  { %p6388_p10 = pnand %p6386_p9, %p6383_p8 }
  0x1a   :  { %6391 = shalt.err (!%p6388_p10)
}
  0x1b   :  { %s6392_s24 = scalar_lea.vmem %s22_s16, 7168  ;;  %p6397_p12 = scmp.lt.s32.totalorder %s22_s16, %s22_s16 }
  0x1c   :  { %p6393_p11 = scmp.ne.s32.totalorder %s22_s16, %s6392_s24  ;;  %p6398_p13 = scmp.lt.s32.totalorder %s6392_s24, %s6392_s24 }
  0x1e   :  { %p6399_p0 = por %p6398_p13, %p6397_p12 }
  0x20   :  { %p6400_p1 = pnand %p6399_p0, %p6393_p11 }
  0x22   :  { %6403 = shalt.err (!%p6400_p1)
}
  0x23   :  { %s6482_s1 = smov 448   ;;  %s6483_s25 = smov 28  }
  0x24   :  { %27 = dma.hbm_to_vmem [thread:$0]  %s6983_s0, 7168, %s22_s16, [#allocation3], %s6482_s1, %s6482_s1, %s6483_s25  }
  0x25   :  { %s6484_s28 = smov [#allocation7]   ;;  %s6485_s30 = smov [#allocation8]  }
  0x26   :  { %s47_s29 = sshll.u32 %s6484_s28, 4  ;;  %s61_s8 = sshll.u32 %s6485_s30, 4  ;;  %s48_s29 = int_to_ptr.vmem [resolvable:$true] %s47_s29  ;;  %s6557_s8 = int_to_ptr.vmem [resolvable:$true] %s61_s8 }
  0x27   :  { %s6404_s13 = scalar_lea.hbm %s6986_s3, 16384 }
  0x28   :  { %p6405_p2 = scmp.ne.s32.totalorder %s6986_s3, %s6404_s13  ;;  %p6408_p3 = scmp.lt.u32.totalorder %s6404_s13, %s6986_s3 }
  0x2a   :  { %p6410_p4 = pnand %p6408_p3, %p6405_p2 }
  0x2c   :  { %6413 = shalt.err (!%p6410_p4)
}
  0x2d   :  { %s6414_s0 = scalar_lea.vmem %s48_s29, 16384  ;;  %p6419_p6 = scmp.lt.s32.totalorder %s48_s29, %s48_s29 }
  0x2e   :  { %p6415_p5 = scmp.ne.s32.totalorder %s48_s29, %s6414_s0  ;;  %p6420_p7 = scmp.lt.s32.totalorder %s6414_s0, %s6414_s0 }
  0x30   :  { %p6421_p8 = por %p6420_p7, %p6419_p6 }
  0x32   :  { %p6422_p9 = pnand %p6421_p8, %p6415_p5 }
  0x34   :  { %6425 = shalt.err (!%p6422_p9)
}
  0x35   :  { %53 = dma.hbm_to_vmem [thread:$0]  %s6986_s3, 16384, %s48_s29, [#allocation6], %s6479_s11, %s6479_s11, %s6480_s12  }
  0x36   :  { %s6426_s22 = scalar_lea.hbm %s6988_s5, 4096 }
  0x37   :  { %p6427_p10 = scmp.ne.s32.totalorder %s6988_s5, %s6426_s22  ;;  %p6430_p11 = scmp.lt.u32.totalorder %s6426_s22, %s6988_s5 }
  0x39   :  { %p6432_p12 = pnand %p6430_p11, %p6427_p10 }
  0x3b   :  { %6435 = shalt.err (!%p6432_p12)
}
  0x3c   :  { %s6436_s26 = scalar_lea.vmem %s6557_s8, 4096  ;;  %p6441_p0 = scmp.lt.s32.totalorder %s6557_s8, %s6557_s8 }
  0x3d   :  { %p6437_p13 = scmp.ne.s32.totalorder %s6557_s8, %s6436_s26  ;;  %p6442_p1 = scmp.lt.s32.totalorder %s6436_s26, %s6436_s26 }
  0x3f   :  { %p6443_p2 = por %p6442_p1, %p6441_p0 }
  0x41   :  { %p6444_p3 = pnand %p6443_p2, %p6437_p13 }
  0x43   :  { %6447 = shalt.err (!%p6444_p3)
}
  0x44   :  { %s6486_s3 = smov 64   ;;  %s6487_s11 = smov 4  }
  0x45   :  { %67 = dma.hbm_to_vmem [thread:$0]  %s6988_s5, 4096, %s6557_s8, [#allocation9], %s6486_s3, %s6486_s3, %s6487_s11  }
  0x46   :  { %6470 = dma.done.wait [#allocation3], 7168  }
  0x47   :  { %6471 = vsyncadd [#allocation3], 4294960128 }
  0x48   :  { %6472 = dma.done.wait [#allocation6], 45056  }
  0x49   :  { %6473 = vsyncadd [#allocation6], 4294922240 }
  0x4a   :  { %6474 = dma.done.wait [#allocation9], 4096  }
  0x4b   :  { %6475 = vsyncadd [#allocation9], 4294963200  ;;  %v5720_v0 = vld [vmem:[#allocation5 + $0x4] ss:$16 sps:$4 sm:$0xff]   ;;  %v5722_v1 = vld [vmem:[#allocation5 + $0xc] ss:$16 sps:$4 sm:$0xff]  }
  0x4c   :  { %1801 = vmatprep.subr.bf16.mxu0 %v5720_v0  ;;  %v5724_v2 = vld [vmem:[#allocation5] ss:$16 sps:$4 sm:$0xff]   ;;  %v5725_v3 = vld [vmem:[#allocation5 + $0x8] ss:$16 sps:$4 sm:$0xff]   ;;  %2253 = vmatprep.subr.bf16.mxu1 %v5722_v1  ;;  %v5726_v4 = vld [vmem:[#allocation5 + $0x24] ss:$16 sps:$4 sm:$0xff]  }
  0x4d   :  { %1802 = vmatpush1.bf16.msra.mxu0 %v5724_v2  ;;  %2254 = vmatpush1.bf16.msra.mxu1 %v5725_v3  ;;  %v5728_v5 = vld [vmem:[#allocation5 + $0x2c] ss:$16 sps:$4 sm:$0xff]   ;;  %v5730_v6 = vld [vmem:[#allocation5 + $0x20] ss:$16 sps:$4 sm:$0xff]   ;;  %v5731_v7 = vld [vmem:[#allocation5 + $0x28] ss:$16 sps:$4 sm:$0xff]  }
  0x4e   :  { %1803 = vmatprep.subr.bf16.mxu0 %v5726_v4  ;;  %2255 = vmatprep.subr.bf16.mxu1 %v5728_v5  ;;  %v5732_v8 = vld [vmem:[#allocation5 + $0x44] ss:$16 sps:$4 sm:$0xff]   ;;  %v5734_v9 = vld [vmem:[#allocation5 + $0x4c] ss:$16 sps:$4 sm:$0xff]   ;;  %v5736_v10 = vld [vmem:[#allocation5 + $0x40] ss:$16 sps:$4 sm:$0xff]  }
  0x4f   :  { %v5737_v11 = vld [vmem:[#allocation5 + $0x48] ss:$16 sps:$4 sm:$0xff]   ;;  %v5738_v12 = vld [vmem:[#allocation5 + $0x64] ss:$16 sps:$4 sm:$0xff]   ;;  %v5740_v13 = vld [vmem:[#allocation5 + $0x6c] ss:$16 sps:$4 sm:$0xff]  }
  0x50   :  { %v5742_v14 = vld [vmem:[#allocation5 + $0x60] ss:$16 sps:$4 sm:$0xff]   ;;  %v5743_v15 = vld [vmem:[#allocation5 + $0x68] ss:$16 sps:$4 sm:$0xff]   ;;  %v5744_v16 = vld [vmem:[#allocation5 + $0x84] ss:$16 sps:$4 sm:$0xff]  }
  0x51   :  { %1804 = vmatpush1.bf16.msra.mxu0 %v5730_v6  ;;  %2256 = vmatpush1.bf16.msra.mxu1 %v5731_v7  ;;  %v5746_v17 = vld [vmem:[#allocation5 + $0x8c] ss:$16 sps:$4 sm:$0xff]   ;;  %v5748_v18 = vld [vmem:[#allocation5 + $0x80] ss:$16 sps:$4 sm:$0xff]   ;;  %v5749_v19 = vld [vmem:[#allocation5 + $0x88] ss:$16 sps:$4 sm:$0xff]  }
  0x52   :  { %1805 = vmatprep.subr.bf16.mxu0 %v5732_v8  ;;  %2257 = vmatprep.subr.bf16.mxu1 %v5734_v9  ;;  %v5750_v20 = vld [vmem:[#allocation5 + $0xa4] ss:$16 sps:$4 sm:$0xff]   ;;  %v5752_v21 = vld [vmem:[#allocation5 + $0xac] ss:$16 sps:$4 sm:$0xff]   ;;  %v5754_v22 = vld [vmem:[#allocation5 + $0xa0] ss:$16 sps:$4 sm:$0xff]  }
  0x53   :  { %v5755_v23 = vld [vmem:[#allocation5 + $0xa8] ss:$16 sps:$4 sm:$0xff]   ;;  %v5756_v24 = vld [vmem:[#allocation5 + $0xc4] ss:$16 sps:$4 sm:$0xff]   ;;  %v5758_v25 = vld [vmem:[#allocation5 + $0xcc] ss:$16 sps:$4 sm:$0xff]  }
  0x54   :  { %v5760_v26 = vld [vmem:[#allocation5 + $0xc0] ss:$16 sps:$4 sm:$0xff]   ;;  %v5761_v27 = vld [vmem:[#allocation5 + $0xc8] ss:$16 sps:$4 sm:$0xff]   ;;  %v5762_v28 = vld [vmem:[#allocation5 + $0xe4] ss:$16 sps:$4 sm:$0xff]  }
  0x55   :  { %1806 = vmatpush1.bf16.msra.mxu0 %v5736_v10  ;;  %2258 = vmatpush1.bf16.msra.mxu1 %v5737_v11  ;;  %v5764_v29 = vld [vmem:[#allocation5 + $0xec] ss:$16 sps:$4 sm:$0xff]   ;;  %v5766_v30 = vld [vmem:[#allocation5 + $0xe0] ss:$16 sps:$4 sm:$0xff]   ;;  %v5767_v31 = vld [vmem:[#allocation5 + $0xe8] ss:$16 sps:$4 sm:$0xff]  }
  0x56   :  { %1807 = vmatprep.subr.bf16.mxu0 %v5738_v12  ;;  %2259 = vmatprep.subr.bf16.mxu1 %v5740_v13  ;;  %v5768_v32 = vld [vmem:[#allocation5 + $0x104] ss:$16 sps:$4 sm:$0xff]   ;;  %v5770_v33 = vld [vmem:[#allocation5 + $0x10c] ss:$16 sps:$4 sm:$0xff]   ;;  %v5772_v34 = vld [vmem:[#allocation5 + $0x100] ss:$16 sps:$4 sm:$0xff]  }
  0x57   :  { %v5773_v35 = vld [vmem:[#allocation5 + $0x108] ss:$16 sps:$4 sm:$0xff]   ;;  %v5774_v36 = vld [vmem:[#allocation5 + $0x124] ss:$16 sps:$4 sm:$0xff]   ;;  %v5776_v37 = vld [vmem:[#allocation5 + $0x12c] ss:$16 sps:$4 sm:$0xff]  }
  0x58   :  { %v5778_v38 = vld [vmem:[#allocation5 + $0x120] ss:$16 sps:$4 sm:$0xff]   ;;  %v5779_v39 = vld [vmem:[#allocation5 + $0x128] ss:$16 sps:$4 sm:$0xff]   ;;  %v5780_v40 = vld [vmem:[#allocation5 + $0x144] ss:$16 sps:$4 sm:$0xff]  }
  0x59   :  { %1808 = vmatpush1.bf16.msra.mxu0 %v5742_v14  ;;  %2260 = vmatpush1.bf16.msra.mxu1 %v5743_v15  ;;  %v5782_v41 = vld [vmem:[#allocation5 + $0x14c] ss:$16 sps:$4 sm:$0xff]   ;;  %v5784_v42 = vld [vmem:[#allocation5 + $0x140] ss:$16 sps:$4 sm:$0xff]   ;;  %v5785_v43 = vld [vmem:[#allocation5 + $0x148] ss:$16 sps:$4 sm:$0xff]  }
  0x5a   :  { %1809 = vmatprep.subr.bf16.mxu0 %v5744_v16  ;;  %2261 = vmatprep.subr.bf16.mxu1 %v5746_v17  ;;  %v5786_v44 = vld [vmem:[#allocation5 + $0x164] ss:$16 sps:$4 sm:$0xff]   ;;  %v5788_v45 = vld [vmem:[#allocation5 + $0x16c] ss:$16 sps:$4 sm:$0xff]   ;;  %v5790_v46 = vld [vmem:[#allocation5 + $0x160] ss:$16 sps:$4 sm:$0xff]  }
  0x5b   :  { %v5791_v47 = vld [vmem:[#allocation5 + $0x168] ss:$16 sps:$4 sm:$0xff]   ;;  %v5818_v48 = vld [vmem:[#allocation2 + $0x4] ss:$28 sps:$4 sm:$0xff]   ;;  %v5794_v50 = vld [vmem:[#allocation5 + $0x18c] ss:$16 sps:$4 sm:$0xff]  }
  0x5c   :  { %v5792_v49 = vld [vmem:[#allocation5 + $0x184] ss:$16 sps:$4 sm:$0xff]   ;;  %1833 = vmatprep.mubr.bf16.mxu0 %v5818_v48  ;;  %2285 = vmatprep.mubr.bf16.mxu1 %v5818_v48  ;;  %v5796_v51 = vld [vmem:[#allocation5 + $0x180] ss:$16 sps:$4 sm:$0xff]   ;;  %v5797_v52 = vld [vmem:[#allocation5 + $0x188] ss:$16 sps:$4 sm:$0xff]  }
  0x5d   :  { %1810 = vmatpush1.bf16.msra.mxu0 %v5748_v18  ;;  %2262 = vmatpush1.bf16.msra.mxu1 %v5749_v19  ;;  %v5798_v53 = vld [vmem:[#allocation5 + $0x1a4] ss:$16 sps:$4 sm:$0xff]   ;;  %v5800_v54 = vld [vmem:[#allocation5 + $0x1ac] ss:$16 sps:$4 sm:$0xff]   ;;  %v5802_v55 = vld [vmem:[#allocation5 + $0x1a0] ss:$16 sps:$4 sm:$0xff]  }
  0x5e   :  { %1811 = vmatprep.subr.bf16.mxu0 %v5750_v20  ;;  %2263 = vmatprep.subr.bf16.mxu1 %v5752_v21  ;;  %v5803_v56 = vld [vmem:[#allocation5 + $0x1a8] ss:$16 sps:$4 sm:$0xff]   ;;  %v5804_v57 = vld [vmem:[#allocation5 + $0x1c4] ss:$16 sps:$4 sm:$0xff]   ;;  %v5806_v58 = vld [vmem:[#allocation5 + $0x1cc] ss:$16 sps:$4 sm:$0xff]  }
  0x5f   :  { %v5808_v59 = vld [vmem:[#allocation5 + $0x1c0] ss:$16 sps:$4 sm:$0xff]   ;;  %v5809_v60 = vld [vmem:[#allocation5 + $0x1c8] ss:$16 sps:$4 sm:$0xff]   ;;  %v5810_v61 = vld [vmem:[#allocation5 + $0x1e4] ss:$16 sps:$4 sm:$0xff]  }
  0x60   :  { %v5812_v62 = vld [vmem:[#allocation5 + $0x1ec] ss:$16 sps:$4 sm:$0xff]   ;;  %v5814_v63 = vld [vmem:[#allocation5 + $0x1e0] ss:$16 sps:$4 sm:$0xff]   ;;  %v5815_v0 = vld [vmem:[#allocation5 + $0x1e8] ss:$16 sps:$4 sm:$0xff]  }
  0x61   :  { %1812 = vmatpush1.bf16.msra.mxu0 %v5754_v22  ;;  %2264 = vmatpush1.bf16.msra.mxu1 %v5755_v23  ;;  %v5821_v1 = vld [vmem:[#allocation5 + $0x204] ss:$16 sps:$4 sm:$0xff]   ;;  %v5824_v2 = vld [vmem:[#allocation5 + $0x20c] ss:$16 sps:$4 sm:$0xff]   ;;  %v5819_v4 = vld [vmem:[#allocation5 + $0x200] ss:$16 sps:$4 sm:$0xff]  }
  0x62   :  { %1813 = vmatprep.subr.bf16.mxu0 %v5756_v24  ;;  %2265 = vmatprep.subr.bf16.mxu1 %v5758_v25  ;;  %v5816_v3 = vld [vmem:[#allocation2] ss:$28 sps:$4 sm:$0xff]   ;;  %v5822_v5 = vld [vmem:[#allocation5 + $0x208] ss:$16 sps:$4 sm:$0xff]   ;;  %v5827_v6 = vld [vmem:[#allocation5 + $0x224] ss:$16 sps:$4 sm:$0xff]  }
  0x63   :  { %v5830_v7 = vld [vmem:[#allocation5 + $0x22c] ss:$16 sps:$4 sm:$0xff]   ;;  %v5825_v9 = vld [vmem:[#allocation5 + $0x220] ss:$16 sps:$4 sm:$0xff]   ;;  %v5828_v10 = vld [vmem:[#allocation5 + $0x228] ss:$16 sps:$4 sm:$0xff]  }
  0x64   :  { %v5831_v8 = vld [vmem:[#allocation2 + $0x3c] ss:$28 sps:$4 sm:$0xff]   ;;  %v5836_v11 = vld [vmem:[#allocation5 + $0x244] ss:$16 sps:$4 sm:$0xff]   ;;  %v5834_v14 = vld [vmem:[#allocation5 + $0x240] ss:$16 sps:$4 sm:$0xff]  }
  0x65   :  { %1814 = vmatpush1.bf16.msra.mxu0 %v5760_v26  ;;  %2266 = vmatpush1.bf16.msra.mxu1 %v5761_v27  ;;  %v5839_v12 = vld [vmem:[#allocation5 + $0x24c] ss:$16 sps:$4 sm:$0xff]   ;;  %v5833_v13 = vld [vmem:[#allocation2 + $0x38] ss:$28 sps:$4 sm:$0xff]   ;;  %v5840_v19 = vld [vmem:[#allocation5 + $0x260] ss:$16 sps:$4 sm:$0xff]  }
  0x66   :  { %1815 = vmatprep.subr.bf16.mxu0 %v5762_v28  ;;  %2267 = vmatprep.subr.bf16.mxu1 %v5764_v29  ;;  %v5837_v15 = vld [vmem:[#allocation5 + $0x248] ss:$16 sps:$4 sm:$0xff]   ;;  %v5842_v16 = vld [vmem:[#allocation5 + $0x264] ss:$16 sps:$4 sm:$0xff]   ;;  %v5845_v17 = vld [vmem:[#allocation5 + $0x26c] ss:$16 sps:$4 sm:$0xff]  }
  0x67   :  { %v5846_v18 = vld [vmem:[#allocation2 + $0x74] ss:$28 sps:$4 sm:$0xff]   ;;  %v5843_v20 = vld [vmem:[#allocation5 + $0x268] ss:$16 sps:$4 sm:$0xff]   ;;  %v5854_v22 = vld [vmem:[#allocation5 + $0x28c] ss:$16 sps:$4 sm:$0xff]  }
  0x68   :  { %v5851_v21 = vld [vmem:[#allocation5 + $0x284] ss:$16 sps:$4 sm:$0xff]   ;;  %v5848_v23 = vld [vmem:[#allocation2 + $0x70] ss:$28 sps:$4 sm:$0xff]   ;;  %v5852_v25 = vld [vmem:[#allocation5 + $0x288] ss:$16 sps:$4 sm:$0xff]  }
  0x69   :  { %1816 = vmatpush1.bf16.msra.mxu0 %v5766_v30  ;;  %2268 = vmatpush1.bf16.msra.mxu1 %v5767_v31  ;;  %v5849_v24 = vld [vmem:[#allocation5 + $0x280] ss:$16 sps:$4 sm:$0xff]   ;;  %v5857_v26 = vld [vmem:[#allocation5 + $0x2a4] ss:$16 sps:$4 sm:$0xff]   ;;  %v5860_v27 = vld [vmem:[#allocation5 + $0x2ac] ss:$16 sps:$4 sm:$0xff]  }
  0x6a   :  { %1817 = vmatprep.subr.bf16.mxu0 %v5768_v32  ;;  %2269 = vmatprep.subr.bf16.mxu1 %v5770_v33  ;;  %v5861_v28 = vld [vmem:[#allocation2 + $0xac] ss:$28 sps:$4 sm:$0xff]   ;;  %v5855_v29 = vld [vmem:[#allocation5 + $0x2a0] ss:$16 sps:$4 sm:$0xff]   ;;  %v5866_v31 = vld [vmem:[#allocation5 + $0x2c4] ss:$16 sps:$4 sm:$0xff]  }
  0x6b   :  { %v5858_v30 = vld [vmem:[#allocation5 + $0x2a8] ss:$16 sps:$4 sm:$0xff]   ;;  %v5869_v32 = vld [vmem:[#allocation5 + $0x2cc] ss:$16 sps:$4 sm:$0xff]  }
  0x6c   :  { %v5863_v33 = vld [vmem:[#allocation2 + $0xa8] ss:$28 sps:$4 sm:$0xff]   ;;  %v5891_v48 = vld [vmem:[#allocation2 + $0x11c] ss:$28 sps:$4 sm:$0xff]  }
  0x6d   :  { %1818 = vmatpush1.bf16.msra.mxu0 %v5772_v34  ;;  %2270 = vmatpush1.bf16.msra.mxu1 %v5773_v35  ;;  %v5864_v34 = vld [vmem:[#allocation5 + $0x2c0] ss:$16 sps:$4 sm:$0xff]   ;;  %v5867_v35 = vld [vmem:[#allocation5 + $0x2c8] ss:$16 sps:$4 sm:$0xff]  }
  0x6e   :  { %1819 = vmatprep.subr.bf16.mxu0 %v5774_v36  ;;  %2271 = vmatprep.subr.bf16.mxu1 %v5776_v37  ;;  %v5872_v36 = vld [vmem:[#allocation5 + $0x2e4] ss:$16 sps:$4 sm:$0xff]   ;;  %v5875_v37 = vld [vmem:[#allocation5 + $0x2ec] ss:$16 sps:$4 sm:$0xff]  }
  0x71   :  { %1820 = vmatpush1.bf16.msra.mxu0 %v5778_v38  ;;  %2272 = vmatpush1.bf16.msra.mxu1 %v5779_v39  ;;  %v5876_v38 = vld [vmem:[#allocation2 + $0xe4] ss:$28 sps:$4 sm:$0xff]  }
  0x72   :  { %1821 = vmatprep.subr.bf16.mxu0 %v5780_v40  ;;  %2273 = vmatprep.subr.bf16.mxu1 %v5782_v41  ;;  %v5870_v39 = vld [vmem:[#allocation5 + $0x2e0] ss:$16 sps:$4 sm:$0xff]   ;;  %v5873_v40 = vld [vmem:[#allocation5 + $0x2e8] ss:$16 sps:$4 sm:$0xff]   ;;  %v5881_v41 = vld [vmem:[#allocation5 + $0x304] ss:$16 sps:$4 sm:$0xff]  }
  0x75   :  { %1822 = vmatpush1.bf16.msra.mxu0 %v5784_v42  ;;  %2274 = vmatpush1.bf16.msra.mxu1 %v5785_v43  ;;  %v5884_v42 = vld [vmem:[#allocation5 + $0x30c] ss:$16 sps:$4 sm:$0xff]  }
  0x76   :  { %1823 = vmatprep.subr.bf16.mxu0 %v5786_v44  ;;  %2275 = vmatprep.subr.bf16.mxu1 %v5788_v45  ;;  %v5878_v43 = vld [vmem:[#allocation2 + $0xe0] ss:$28 sps:$4 sm:$0xff]   ;;  %v5882_v45 = vld [vmem:[#allocation5 + $0x308] ss:$16 sps:$4 sm:$0xff]  }
  0x77   :  { %v5879_v44 = vld [vmem:[#allocation5 + $0x300] ss:$16 sps:$4 sm:$0xff]  }
  0x79   :  { %1824 = vmatpush1.bf16.msra.mxu0 %v5790_v46  ;;  %2276 = vmatpush1.bf16.msra.mxu1 %v5791_v47  ;;  %v5887_v46 = vld [vmem:[#allocation5 + $0x324] ss:$16 sps:$4 sm:$0xff]   ;;  %v5890_v47 = vld [vmem:[#allocation5 + $0x32c] ss:$16 sps:$4 sm:$0xff]  }
  0x7a   :  { %1825 = vmatprep.subr.bf16.mxu0 %v5792_v49  ;;  %2277 = vmatprep.subr.bf16.mxu1 %v5794_v50  ;;  %v5885_v49 = vld [vmem:[#allocation5 + $0x320] ss:$16 sps:$4 sm:$0xff]   ;;  %v5888_v50 = vld [vmem:[#allocation5 + $0x328] ss:$16 sps:$4 sm:$0xff]  }
  0x7d   :  { %1826 = vmatpush1.bf16.msra.mxu0 %v5796_v51  ;;  %2278 = vmatpush1.bf16.msra.mxu1 %v5797_v52  ;;  %v5896_v51 = vld [vmem:[#allocation5 + $0x344] ss:$16 sps:$4 sm:$0xff]   ;;  %v5899_v52 = vld [vmem:[#allocation5 + $0x34c] ss:$16 sps:$4 sm:$0xff]  }
  0x7e   :  { %1827 = vmatprep.subr.bf16.mxu0 %v5798_v53  ;;  %2279 = vmatprep.subr.bf16.mxu1 %v5800_v54  ;;  %v5893_v53 = vld [vmem:[#allocation2 + $0x118] ss:$28 sps:$4 sm:$0xff]   ;;  %v5894_v54 = vld [vmem:[#allocation5 + $0x340] ss:$16 sps:$4 sm:$0xff]  }
  0x81   :  { %1828 = vmatpush1.bf16.msra.mxu0 %v5802_v55  ;;  %2280 = vmatpush1.bf16.msra.mxu1 %v5803_v56  ;;  %v5897_v55 = vld [vmem:[#allocation5 + $0x348] ss:$16 sps:$4 sm:$0xff]   ;;  %v5902_v56 = vld [vmem:[#allocation5 + $0x364] ss:$16 sps:$4 sm:$0xff]  }
  0x82   :  { %1829 = vmatprep.subr.bf16.mxu0 %v5804_v57  ;;  %2281 = vmatprep.subr.bf16.mxu1 %v5806_v58  ;;  %v5905_v57 = vld [vmem:[#allocation5 + $0x36c] ss:$16 sps:$4 sm:$0xff]   ;;  %v5906_v58 = vld [vmem:[#allocation2 + $0x154] ss:$28 sps:$4 sm:$0xff]  }
  0x85   :  { %1830 = vmatpush1.bf16.msra.mxu0 %v5808_v59  ;;  %2282 = vmatpush1.bf16.msra.mxu1 %v5809_v60  ;;  %v5900_v59 = vld [vmem:[#allocation5 + $0x360] ss:$16 sps:$4 sm:$0xff]   ;;  %v5903_v60 = vld [vmem:[#allocation5 + $0x368] ss:$16 sps:$4 sm:$0xff]  }
  0x86   :  { %1831 = vmatprep.subr.bf16.mxu0 %v5810_v61  ;;  %2283 = vmatprep.subr.bf16.mxu1 %v5812_v62  ;;  %v5911_v61 = vld [vmem:[#allocation5 + $0x384] ss:$16 sps:$4 sm:$0xff]   ;;  %v5914_v62 = vld [vmem:[#allocation5 + $0x38c] ss:$16 sps:$4 sm:$0xff]  }
  0x89   :  { %1832 = vmatpush1.bf16.msra.mxu0 %v5814_v63  ;;  %2284 = vmatpush1.bf16.msra.mxu1 %v5815_v0  ;;  %v5908_v63 = vld [vmem:[#allocation2 + $0x150] ss:$28 sps:$4 sm:$0xff]  }
  0x8a   :  { %1914 = vmatprep.subr.bf16.mxu0 %v5821_v1  ;;  %2366 = vmatprep.subr.bf16.mxu1 %v5824_v2  ;;  %v5909_v0 = vld [vmem:[#allocation5 + $0x380] ss:$16 sps:$4 sm:$0xff]   ;;  %v5912_v1 = vld [vmem:[#allocation5 + $0x388] ss:$16 sps:$4 sm:$0xff]   ;;  %v5917_v2 = vld [vmem:[#allocation5 + $0x3a4] ss:$16 sps:$4 sm:$0xff]  }
  0x8c   :  { %1834 = vmatmul.mubr.bf16.vlgmr.msra.gmra.mrb[0].mxu0 %v5816_v3  ;;  %2286 = vmatmul.mubr.bf16.vlgmr.msra.gmra.mrb[0].mxu1 %v5816_v3  ;;  %v5920_v3 = vld [vmem:[#allocation5 + $0x3ac] ss:$16 sps:$4 sm:$0xff]  }
  0x8d   :  { %1915 = vmatpush1.bf16.msra.mxu0 %v5819_v4  ;;  %2367 = vmatpush1.bf16.msra.mxu1 %v5822_v5  ;;  %v5921_v4 = vld [vmem:[#allocation2 + $0x18c] ss:$28 sps:$4 sm:$0xff]   ;;  %v5915_v5 = vld [vmem:[#allocation5 + $0x3a0] ss:$16 sps:$4 sm:$0xff]  }
  0x8e   :  { %1916 = vmatprep.subr.bf16.mxu0 %v5827_v6  ;;  %2368 = vmatprep.subr.bf16.mxu1 %v5830_v7  ;;  %v5918_v6 = vld [vmem:[#allocation5 + $0x3a8] ss:$16 sps:$4 sm:$0xff]   ;;  %v5926_v7 = vld [vmem:[#allocation5 + $0x3c4] ss:$16 sps:$4 sm:$0xff]  }
  0x8f   :  { %1843 = vmatprep.mubr.bf16.mxu0 %v5831_v8  ;;  %2295 = vmatprep.mubr.bf16.mxu1 %v5831_v8  ;;  %v5929_v8 = vld [vmem:[#allocation5 + $0x3cc] ss:$16 sps:$4 sm:$0xff]  }
  0x91   :  { %1917 = vmatpush1.bf16.msra.mxu0 %v5825_v9  ;;  %2369 = vmatpush1.bf16.msra.mxu1 %v5828_v10  ;;  %v5923_v9 = vld [vmem:[#allocation2 + $0x188] ss:$28 sps:$4 sm:$0xff]   ;;  %v5924_v10 = vld [vmem:[#allocation5 + $0x3c0] ss:$16 sps:$4 sm:$0xff]  }
  0x92   :  { %1918 = vmatprep.subr.bf16.mxu0 %v5836_v11  ;;  %2370 = vmatprep.subr.bf16.mxu1 %v5839_v12  ;;  %v5927_v11 = vld [vmem:[#allocation5 + $0x3c8] ss:$16 sps:$4 sm:$0xff]   ;;  %v5932_v12 = vld [vmem:[#allocation5 + $0x3e4] ss:$16 sps:$4 sm:$0xff]  }
  0x94   :  { %1844 = vmatmul.mubr.bf16.gmra.mrb[4].mxu0 %v5833_v13  ;;  %2296 = vmatmul.mubr.bf16.gmra.mrb[4].mxu1 %v5833_v13  ;;  %v5935_v13 = vld [vmem:[#allocation5 + $0x3ec] ss:$16 sps:$4 sm:$0xff]  }
  0x95   :  { %1919 = vmatpush1.bf16.msra.mxu0 %v5834_v14  ;;  %2371 = vmatpush1.bf16.msra.mxu1 %v5837_v15  ;;  %v5938_v14 = vld [vmem:[#allocation2 + $0xc] ss:$28 sps:$4 sm:$0xff]   ;;  %v5930_v15 = vld [vmem:[#allocation5 + $0x3e0] ss:$16 sps:$4 sm:$0xff]  }
  0x96   :  { %1920 = vmatprep.subr.bf16.mxu0 %v5842_v16  ;;  %2372 = vmatprep.subr.bf16.mxu1 %v5845_v17  ;;  %v5933_v16 = vld [vmem:[#allocation5 + $0x3e8] ss:$16 sps:$4 sm:$0xff]   ;;  %v5941_v17 = vld [vmem:[#allocation5 + $0x404] ss:$16 sps:$4 sm:$0xff]  }
  0x97   :  { %1853 = vmatprep.mubr.bf16.mxu0 %v5846_v18  ;;  %2305 = vmatprep.mubr.bf16.mxu1 %v5846_v18  ;;  %v5944_v18 = vld [vmem:[#allocation5 + $0x40c] ss:$16 sps:$4 sm:$0xff]  }
  0x99   :  { %1921 = vmatpush1.bf16.msra.mxu0 %v5840_v19  ;;  %2373 = vmatpush1.bf16.msra.mxu1 %v5843_v20  ;;  %v5936_v19 = vld [vmem:[#allocation2 + $0x8] ss:$28 sps:$4 sm:$0xff]   ;;  %v5939_v20 = vld [vmem:[#allocation5 + $0x400] ss:$16 sps:$4 sm:$0xff]  }
  0x9a   :  { %1922 = vmatprep.subr.bf16.mxu0 %v5851_v21  ;;  %2374 = vmatprep.subr.bf16.mxu1 %v5854_v22  ;;  %v5942_v21 = vld [vmem:[#allocation5 + $0x408] ss:$16 sps:$4 sm:$0xff]   ;;  %v5947_v22 = vld [vmem:[#allocation5 + $0x424] ss:$16 sps:$4 sm:$0xff]  }
  0x9c   :  { %1854 = vmatmul.mubr.bf16.gmra.mrb[8].mxu0 %v5848_v23  ;;  %2306 = vmatmul.mubr.bf16.gmra.mrb[8].mxu1 %v5848_v23  ;;  %v5950_v23 = vld [vmem:[#allocation5 + $0x42c] ss:$16 sps:$4 sm:$0xff]  }
  0x9d   :  { %1923 = vmatpush1.bf16.msra.mxu0 %v5849_v24  ;;  %2375 = vmatpush1.bf16.msra.mxu1 %v5852_v25  ;;  %v5951_v24 = vld [vmem:[#allocation2 + $0x44] ss:$28 sps:$4 sm:$0xff]  }
  0x9e   :  { %1924 = vmatprep.subr.bf16.mxu0 %v5857_v26  ;;  %2376 = vmatprep.subr.bf16.mxu1 %v5860_v27  ;;  %v5945_v25 = vld [vmem:[#allocation5 + $0x420] ss:$16 sps:$4 sm:$0xff]   ;;  %v5948_v26 = vld [vmem:[#allocation5 + $0x428] ss:$16 sps:$4 sm:$0xff]   ;;  %v5956_v27 = vld [vmem:[#allocation5 + $0x444] ss:$16 sps:$4 sm:$0xff]  }
  0x9f   :  { %1863 = vmatprep.mubr.bf16.mxu0 %v5861_v28  ;;  %2315 = vmatprep.mubr.bf16.mxu1 %v5861_v28  ;;  %v5959_v28 = vld [vmem:[#allocation5 + $0x44c] ss:$16 sps:$4 sm:$0xff]  }
  0xa1   :  { %1925 = vmatpush1.bf16.msra.mxu0 %v5855_v29  ;;  %2377 = vmatpush1.bf16.msra.mxu1 %v5858_v30  ;;  %v5953_v29 = vld [vmem:[#allocation2 + $0x40] ss:$28 sps:$4 sm:$0xff]  }
  0xa2   :  { %1926 = vmatprep.subr.bf16.mxu0 %v5866_v31  ;;  %2378 = vmatprep.subr.bf16.mxu1 %v5869_v32  ;;  %v5954_v30 = vld [vmem:[#allocation5 + $0x440] ss:$16 sps:$4 sm:$0xff]   ;;  %v5957_v31 = vld [vmem:[#allocation5 + $0x448] ss:$16 sps:$4 sm:$0xff]   ;;  %v5962_v32 = vld [vmem:[#allocation5 + $0x464] ss:$16 sps:$4 sm:$0xff]  }
  0xa4   :  { %1864 = vmatmul.mubr.bf16.gmra.mrb[12].mxu0 %v5863_v33  ;;  %2316 = vmatmul.mubr.bf16.gmra.mrb[12].mxu1 %v5863_v33  ;;  %v5965_v33 = vld [vmem:[#allocation5 + $0x46c] ss:$16 sps:$4 sm:$0xff]  }
  0xa5   :  { %1927 = vmatpush1.bf16.msra.mxu0 %v5864_v34  ;;  %2379 = vmatpush1.bf16.msra.mxu1 %v5867_v35  ;;  %v5966_v34 = vld [vmem:[#allocation2 + $0x7c] ss:$28 sps:$4 sm:$0xff]   ;;  %v5960_v35 = vld [vmem:[#allocation5 + $0x460] ss:$16 sps:$4 sm:$0xff]  }
  0xa6   :  { %1928 = vmatprep.subr.bf16.mxu0 %v5872_v36  ;;  %2380 = vmatprep.subr.bf16.mxu1 %v5875_v37  ;;  %v5963_v36 = vld [vmem:[#allocation5 + $0x468] ss:$16 sps:$4 sm:$0xff]   ;;  %v5971_v37 = vld [vmem:[#allocation5 + $0x484] ss:$16 sps:$4 sm:$0xff]  }
  0xa7   :  { %1873 = vmatprep.mubr.bf16.mxu0 %v5876_v38  ;;  %2325 = vmatprep.mubr.bf16.mxu1 %v5876_v38  ;;  %v5974_v38 = vld [vmem:[#allocation5 + $0x48c] ss:$16 sps:$4 sm:$0xff]  }
  0xa9   :  { %1929 = vmatpush1.bf16.msra.mxu0 %v5870_v39  ;;  %2381 = vmatpush1.bf16.msra.mxu1 %v5873_v40  ;;  %v5968_v39 = vld [vmem:[#allocation2 + $0x78] ss:$28 sps:$4 sm:$0xff]   ;;  %v5969_v40 = vld [vmem:[#allocation5 + $0x480] ss:$16 sps:$4 sm:$0xff]  }
  0xaa   :  { %1930 = vmatprep.subr.bf16.mxu0 %v5881_v41  ;;  %2382 = vmatprep.subr.bf16.mxu1 %v5884_v42  ;;  %v5972_v41 = vld [vmem:[#allocation5 + $0x488] ss:$16 sps:$4 sm:$0xff]   ;;  %v5977_v42 = vld [vmem:[#allocation5 + $0x4a4] ss:$16 sps:$4 sm:$0xff]  }
  0xac   :  { %1874 = vmatmul.mubr.bf16.gmra.mrb[16].mxu0 %v5878_v43  ;;  %2326 = vmatmul.mubr.bf16.gmra.mrb[16].mxu1 %v5878_v43  ;;  %v5980_v43 = vld [vmem:[#allocation5 + $0x4ac] ss:$16 sps:$4 sm:$0xff]  }
  0xad   :  { %1931 = vmatpush1.bf16.msra.mxu0 %v5879_v44  ;;  %2383 = vmatpush1.bf16.msra.mxu1 %v5882_v45  ;;  %v5981_v44 = vld [vmem:[#allocation2 + $0xb4] ss:$28 sps:$4 sm:$0xff]  }
  0xae   :  { %1932 = vmatprep.subr.bf16.mxu0 %v5887_v46  ;;  %2384 = vmatprep.subr.bf16.mxu1 %v5890_v47  ;;  %v5975_v45 = vld [vmem:[#allocation5 + $0x4a0] ss:$16 sps:$4 sm:$0xff]   ;;  %v5978_v46 = vld [vmem:[#allocation5 + $0x4a8] ss:$16 sps:$4 sm:$0xff]   ;;  %v5986_v47 = vld [vmem:[#allocation5 + $0x4c4] ss:$16 sps:$4 sm:$0xff]  }
  0xaf   :  { %1883 = vmatprep.mubr.bf16.mxu0 %v5891_v48  ;;  %2335 = vmatprep.mubr.bf16.mxu1 %v5891_v48  ;;  %v5989_v48 = vld [vmem:[#allocation5 + $0x4cc] ss:$16 sps:$4 sm:$0xff]  }
  0xb1   :  { %1933 = vmatpush1.bf16.msra.mxu0 %v5885_v49  ;;  %2385 = vmatpush1.bf16.msra.mxu1 %v5888_v50  ;;  %v5983_v49 = vld [vmem:[#allocation2 + $0xb0] ss:$28 sps:$4 sm:$0xff]  }
  0xb2   :  { %1934 = vmatprep.subr.bf16.mxu0 %v5896_v51  ;;  %2386 = vmatprep.subr.bf16.mxu1 %v5899_v52  ;;  %v5984_v50 = vld [vmem:[#allocation5 + $0x4c0] ss:$16 sps:$4 sm:$0xff]   ;;  %v5987_v51 = vld [vmem:[#allocation5 + $0x4c8] ss:$16 sps:$4 sm:$0xff]   ;;  %v5992_v52 = vld [vmem:[#allocation5 + $0x4e4] ss:$16 sps:$4 sm:$0xff]  }
  0xb4   :  { %1884 = vmatmul.mubr.bf16.gmra.mrb[20].mxu0 %v5893_v53  ;;  %2336 = vmatmul.mubr.bf16.gmra.mrb[20].mxu1 %v5893_v53  ;;  %v5995_v53 = vld [vmem:[#allocation5 + $0x4ec] ss:$16 sps:$4 sm:$0xff]  }
  0xb5   :  { %1935 = vmatpush1.bf16.msra.mxu0 %v5894_v54  ;;  %2387 = vmatpush1.bf16.msra.mxu1 %v5897_v55  ;;  %v5996_v54 = vld [vmem:[#allocation2 + $0xec] ss:$28 sps:$4 sm:$0xff]   ;;  %v5990_v55 = vld [vmem:[#allocation5 + $0x4e0] ss:$16 sps:$4 sm:$0xff]  }
  0xb6   :  { %1936 = vmatprep.subr.bf16.mxu0 %v5902_v56  ;;  %2388 = vmatprep.subr.bf16.mxu1 %v5905_v57  ;;  %v5993_v56 = vld [vmem:[#allocation5 + $0x4e8] ss:$16 sps:$4 sm:$0xff]   ;;  %v6001_v57 = vld [vmem:[#allocation5 + $0x504] ss:$16 sps:$4 sm:$0xff]  }
  0xb7   :  { %1893 = vmatprep.mubr.bf16.mxu0 %v5906_v58  ;;  %2345 = vmatprep.mubr.bf16.mxu1 %v5906_v58  ;;  %v6004_v58 = vld [vmem:[#allocation5 + $0x50c] ss:$16 sps:$4 sm:$0xff]  }
  0xb9   :  { %1937 = vmatpush1.bf16.msra.mxu0 %v5900_v59  ;;  %2389 = vmatpush1.bf16.msra.mxu1 %v5903_v60  ;;  %v5998_v59 = vld [vmem:[#allocation2 + $0xe8] ss:$28 sps:$4 sm:$0xff]   ;;  %v5999_v60 = vld [vmem:[#allocation5 + $0x500] ss:$16 sps:$4 sm:$0xff]  }
  0xba   :  { %1938 = vmatprep.subr.bf16.mxu0 %v5911_v61  ;;  %2390 = vmatprep.subr.bf16.mxu1 %v5914_v62  ;;  %v6002_v61 = vld [vmem:[#allocation5 + $0x508] ss:$16 sps:$4 sm:$0xff]   ;;  %v6007_v62 = vld [vmem:[#allocation5 + $0x524] ss:$16 sps:$4 sm:$0xff]  }
  0xbc   :  { %1894 = vmatmul.mubr.bf16.gmra.mrb[24].mxu0 %v5908_v63  ;;  %2346 = vmatmul.mubr.bf16.gmra.mrb[24].mxu1 %v5908_v63  ;;  %v6010_v63 = vld [vmem:[#allocation5 + $0x52c] ss:$16 sps:$4 sm:$0xff]  }
  0xbd   :  { %1939 = vmatpush1.bf16.msra.mxu0 %v5909_v0  ;;  %2391 = vmatpush1.bf16.msra.mxu1 %v5912_v1  ;;  %v6011_v0 = vld [vmem:[#allocation2 + $0x124] ss:$28 sps:$4 sm:$0xff]  }
  0xbe   :  { %1940 = vmatprep.subr.bf16.mxu0 %v5917_v2  ;;  %2392 = vmatprep.subr.bf16.mxu1 %v5920_v3  ;;  %v6005_v1 = vld [vmem:[#allocation5 + $0x520] ss:$16 sps:$4 sm:$0xff]   ;;  %v6008_v2 = vld [vmem:[#allocation5 + $0x528] ss:$16 sps:$4 sm:$0xff]   ;;  %v6016_v3 = vld [vmem:[#allocation5 + $0x544] ss:$16 sps:$4 sm:$0xff]  }
  0xbf   :  { %1903 = vmatprep.mubr.bf16.mxu0 %v5921_v4  ;;  %2355 = vmatprep.mubr.bf16.mxu1 %v5921_v4  ;;  %v6019_v4 = vld [vmem:[#allocation5 + $0x54c] ss:$16 sps:$4 sm:$0xff]  }
  0xc1   :  { %1941 = vmatpush1.bf16.msra.mxu0 %v5915_v5  ;;  %2393 = vmatpush1.bf16.msra.mxu1 %v5918_v6  ;;  %v6013_v5 = vld [vmem:[#allocation2 + $0x120] ss:$28 sps:$4 sm:$0xff]  }
  0xc2   :  { %1942 = vmatprep.subr.bf16.mxu0 %v5926_v7  ;;  %2394 = vmatprep.subr.bf16.mxu1 %v5929_v8  ;;  %v6014_v6 = vld [vmem:[#allocation5 + $0x540] ss:$16 sps:$4 sm:$0xff]   ;;  %v6017_v7 = vld [vmem:[#allocation5 + $0x548] ss:$16 sps:$4 sm:$0xff]   ;;  %v6022_v8 = vld [vmem:[#allocation5 + $0x564] ss:$16 sps:$4 sm:$0xff]  }
  0xc4   :  { %1904 = vmatmul.mubr.bf16.gmra.mrb[28].mxu0 %v5923_v9  ;;  %2356 = vmatmul.mubr.bf16.gmra.mrb[28].mxu1 %v5923_v9  ;;  %v6025_v9 = vld [vmem:[#allocation5 + $0x56c] ss:$16 sps:$4 sm:$0xff]  }
  0xc5   :  { %1943 = vmatpush1.bf16.msra.mxu0 %v5924_v10  ;;  %2395 = vmatpush1.bf16.msra.mxu1 %v5927_v11  ;;  %v6026_v10 = vld [vmem:[#allocation2 + $0x15c] ss:$28 sps:$4 sm:$0xff]   ;;  %v6020_v11 = vld [vmem:[#allocation5 + $0x560] ss:$16 sps:$4 sm:$0xff]  }
  0xc6   :  { %1944 = vmatprep.subr.bf16.mxu0 %v5932_v12  ;;  %2396 = vmatprep.subr.bf16.mxu1 %v5935_v13  ;;  %v6023_v12 = vld [vmem:[#allocation5 + $0x568] ss:$16 sps:$4 sm:$0xff]   ;;  %v6031_v13 = vld [vmem:[#allocation5 + $0x584] ss:$16 sps:$4 sm:$0xff]  }
  0xc7   :  { %1946 = vmatprep.mubr.bf16.mxu0 %v5938_v14  ;;  %2398 = vmatprep.mubr.bf16.mxu1 %v5938_v14  ;;  %v6034_v14 = vld [vmem:[#allocation5 + $0x58c] ss:$16 sps:$4 sm:$0xff]  }
  0xc9   :  { %1945 = vmatpush1.bf16.msra.mxu0 %v5930_v15  ;;  %2397 = vmatpush1.bf16.msra.mxu1 %v5933_v16  ;;  %v6028_v15 = vld [vmem:[#allocation2 + $0x158] ss:$28 sps:$4 sm:$0xff]   ;;  %v6029_v16 = vld [vmem:[#allocation5 + $0x580] ss:$16 sps:$4 sm:$0xff]  }
  0xca   :  { %2027 = vmatprep.subr.bf16.mxu0 %v5941_v17  ;;  %2479 = vmatprep.subr.bf16.mxu1 %v5944_v18  ;;  %v6032_v17 = vld [vmem:[#allocation5 + $0x588] ss:$16 sps:$4 sm:$0xff]   ;;  %v6037_v18 = vld [vmem:[#allocation5 + $0x5a4] ss:$16 sps:$4 sm:$0xff]  }
  0xcc   :  { %1947 = vmatmul.mubr.bf16.vlgmr.msra.gmra.mrb[0].mxu0 %v5936_v19  ;;  %2399 = vmatmul.mubr.bf16.vlgmr.msra.gmra.mrb[0].mxu1 %v5936_v19  ;;  %v6040_v19 = vld [vmem:[#allocation5 + $0x5ac] ss:$16 sps:$4 sm:$0xff]  }
  0xcd   :  { %2028 = vmatpush1.bf16.msra.mxu0 %v5939_v20  ;;  %2480 = vmatpush1.bf16.msra.mxu1 %v5942_v21  ;;  %v6041_v20 = vld [vmem:[#allocation2 + $0x194] ss:$28 sps:$4 sm:$0xff]  }
  0xce   :  { %2029 = vmatprep.subr.bf16.mxu0 %v5947_v22  ;;  %2481 = vmatprep.subr.bf16.mxu1 %v5950_v23  ;;  %v6035_v21 = vld [vmem:[#allocation5 + $0x5a0] ss:$16 sps:$4 sm:$0xff]   ;;  %v6038_v22 = vld [vmem:[#allocation5 + $0x5a8] ss:$16 sps:$4 sm:$0xff]   ;;  %v6046_v23 = vld [vmem:[#allocation5 + $0x5c4] ss:$16 sps:$4 sm:$0xff]  }
  0xcf   :  { %1956 = vmatprep.mubr.bf16.mxu0 %v5951_v24  ;;  %2408 = vmatprep.mubr.bf16.mxu1 %v5951_v24  ;;  %v6043_v24 = vld [vmem:[#allocation2 + $0x190] ss:$28 sps:$4 sm:$0xff]  }
  0xd1   :  { %2030 = vmatpush1.bf16.msra.mxu0 %v5945_v25  ;;  %2482 = vmatpush1.bf16.msra.mxu1 %v5948_v26  ;;  %v6049_v25 = vld [vmem:[#allocation5 + $0x5cc] ss:$16 sps:$4 sm:$0xff]   ;;  %v6044_v26 = vld [vmem:[#allocation5 + $0x5c0] ss:$16 sps:$4 sm:$0xff]  }
  0xd2   :  { %2031 = vmatprep.subr.bf16.mxu0 %v5956_v27  ;;  %2483 = vmatprep.subr.bf16.mxu1 %v5959_v28  ;;  %v6047_v27 = vld [vmem:[#allocation5 + $0x5c8] ss:$16 sps:$4 sm:$0xff]   ;;  %v6052_v28 = vld [vmem:[#allocation5 + $0x5e4] ss:$16 sps:$4 sm:$0xff]  }
  0xd4   :  { %1957 = vmatmul.mubr.bf16.gmra.mrb[4].mxu0 %v5953_v29  ;;  %2409 = vmatmul.mubr.bf16.gmra.mrb[4].mxu1 %v5953_v29  ;;  %v6055_v29 = vld [vmem:[#allocation5 + $0x5ec] ss:$16 sps:$4 sm:$0xff]  }
  0xd5   :  { %2032 = vmatpush1.bf16.msra.mxu0 %v5954_v30  ;;  %2484 = vmatpush1.bf16.msra.mxu1 %v5957_v31  ;;  %v6050_v30 = vld [vmem:[#allocation5 + $0x5e0] ss:$16 sps:$4 sm:$0xff]  }
  0xd6   :  { %2033 = vmatprep.subr.bf16.mxu0 %v5962_v32  ;;  %2485 = vmatprep.subr.bf16.mxu1 %v5965_v33  ;;  %v6058_v31 = vld [vmem:[#allocation2 + $0x14] ss:$28 sps:$4 sm:$0xff]   ;;  %v6053_v32 = vld [vmem:[#allocation5 + $0x5e8] ss:$16 sps:$4 sm:$0xff]  }
  0xd7   :  { %1966 = vmatprep.mubr.bf16.mxu0 %v5966_v34  ;;  %2418 = vmatprep.mubr.bf16.mxu1 %v5966_v34  ;;  %v6061_v33 = vld [vmem:[#allocation5 + $0x604] ss:$16 sps:$4 sm:$0xff]   ;;  %v6088_v34 = vld [vmem:[#allocation5 + $0x60c] ss:$16 sps:$4 sm:$0xff]  }
  0xd9   :  { %2034 = vmatpush1.bf16.msra.mxu0 %v5960_v35  ;;  %2486 = vmatpush1.bf16.msra.mxu1 %v5963_v36  ;;  %v6056_v35 = vld [vmem:[#allocation2 + $0x10] ss:$28 sps:$4 sm:$0xff]  }
  0xda   :  { %2035 = vmatprep.subr.bf16.mxu0 %v5971_v37  ;;  %2487 = vmatprep.subr.bf16.mxu1 %v5974_v38  ;;  %v6059_v36 = vld [vmem:[#allocation5 + $0x600] ss:$16 sps:$4 sm:$0xff]   ;;  %v6062_v37 = vld [vmem:[#allocation2 + $0x4c] ss:$28 sps:$4 sm:$0xff]   ;;  %v6067_v38 = vld [vmem:[#allocation5 + $0x624] ss:$16 sps:$4 sm:$0xff]  }
  0xdc   :  { %1967 = vmatmul.mubr.bf16.gmra.mrb[8].mxu0 %v5968_v39  ;;  %2419 = vmatmul.mubr.bf16.gmra.mrb[8].mxu1 %v5968_v39  ;;  %v6086_v39 = vld [vmem:[#allocation5 + $0x608] ss:$16 sps:$4 sm:$0xff]  }
  0xdd   :  { %2036 = vmatpush1.bf16.msra.mxu0 %v5969_v40  ;;  %2488 = vmatpush1.bf16.msra.mxu1 %v5972_v41  ;;  %v6091_v40 = vld [vmem:[#allocation5 + $0x62c] ss:$16 sps:$4 sm:$0xff]   ;;  %v6065_v41 = vld [vmem:[#allocation5 + $0x620] ss:$16 sps:$4 sm:$0xff]  }
  0xde   :  { %2037 = vmatprep.subr.bf16.mxu0 %v5977_v42  ;;  %2489 = vmatprep.subr.bf16.mxu1 %v5980_v43  ;;  %v6073_v42 = vld [vmem:[#allocation5 + $0x644] ss:$16 sps:$4 sm:$0xff]   ;;  %v6089_v43 = vld [vmem:[#allocation5 + $0x628] ss:$16 sps:$4 sm:$0xff]  }
  0xdf   :  { %1976 = vmatprep.mubr.bf16.mxu0 %v5981_v44  ;;  %2428 = vmatprep.mubr.bf16.mxu1 %v5981_v44  ;;  %v6064_v44 = vld [vmem:[#allocation2 + $0x48] ss:$28 sps:$4 sm:$0xff]  }
  0xe1   :  { %2038 = vmatpush1.bf16.msra.mxu0 %v5975_v45  ;;  %2490 = vmatpush1.bf16.msra.mxu1 %v5978_v46  ;;  %v6068_v45 = vld [vmem:[#allocation2 + $0x84] ss:$28 sps:$4 sm:$0xff]  }
  0xe2   :  { %2039 = vmatprep.subr.bf16.mxu0 %v5986_v47  ;;  %2491 = vmatprep.subr.bf16.mxu1 %v5989_v48  ;;  %v6071_v46 = vld [vmem:[#allocation5 + $0x640] ss:$16 sps:$4 sm:$0xff]   ;;  %v6100_v47 = vld [vmem:[#allocation5 + $0x64c] ss:$16 sps:$4 sm:$0xff]   ;;  %v6079_v48 = vld [vmem:[#allocation5 + $0x664] ss:$16 sps:$4 sm:$0xff]  }
  0xe4   :  { %1977 = vmatmul.mubr.bf16.gmra.mrb[12].mxu0 %v5983_v49  ;;  %2429 = vmatmul.mubr.bf16.gmra.mrb[12].mxu1 %v5983_v49  ;;  %v6098_v49 = vld [vmem:[#allocation5 + $0x648] ss:$16 sps:$4 sm:$0xff]  }
  0xe5   :  { %2040 = vmatpush1.bf16.msra.mxu0 %v5984_v50  ;;  %2492 = vmatpush1.bf16.msra.mxu1 %v5987_v51  ;;  %v6103_v50 = vld [vmem:[#allocation5 + $0x66c] ss:$16 sps:$4 sm:$0xff]   ;;  %v6077_v51 = vld [vmem:[#allocation5 + $0x660] ss:$16 sps:$4 sm:$0xff]  }
  0xe6   :  { %2041 = vmatprep.subr.bf16.mxu0 %v5992_v52  ;;  %2493 = vmatprep.subr.bf16.mxu1 %v5995_v53  ;;  %v6085_v52 = vld [vmem:[#allocation5 + $0x684] ss:$16 sps:$4 sm:$0xff]   ;;  %v6101_v53 = vld [vmem:[#allocation5 + $0x668] ss:$16 sps:$4 sm:$0xff]  }
  0xe7   :  { %1986 = vmatprep.mubr.bf16.mxu0 %v5996_v54  ;;  %2438 = vmatprep.mubr.bf16.mxu1 %v5996_v54  ;;  %v6070_v54 = vld [vmem:[#allocation2 + $0x80] ss:$28 sps:$4 sm:$0xff]  }
  0xe9   :  { %2042 = vmatpush1.bf16.msra.mxu0 %v5990_v55  ;;  %2494 = vmatpush1.bf16.msra.mxu1 %v5993_v56  ;;  %v6074_v55 = vld [vmem:[#allocation2 + $0xbc] ss:$28 sps:$4 sm:$0xff]   ;;  %v6083_v56 = vld [vmem:[#allocation5 + $0x680] ss:$16 sps:$4 sm:$0xff]  }
  0xea   :  { %2043 = vmatprep.subr.bf16.mxu0 %v6001_v57  ;;  %2495 = vmatprep.subr.bf16.mxu1 %v6004_v58  ;;  %v6112_v57 = vld [vmem:[#allocation5 + $0x68c] ss:$16 sps:$4 sm:$0xff]   ;;  %v6097_v58 = vld [vmem:[#allocation5 + $0x6a4] ss:$16 sps:$4 sm:$0xff]  }
  0xec   :  { %1987 = vmatmul.mubr.bf16.gmra.mrb[16].mxu0 %v5998_v59  ;;  %2439 = vmatmul.mubr.bf16.gmra.mrb[16].mxu1 %v5998_v59  ;;  %v6110_v59 = vld [vmem:[#allocation5 + $0x688] ss:$16 sps:$4 sm:$0xff]  }
  0xed   :  { %2044 = vmatpush1.bf16.msra.mxu0 %v5999_v60  ;;  %2496 = vmatpush1.bf16.msra.mxu1 %v6002_v61  ;;  %v6115_v60 = vld [vmem:[#allocation5 + $0x6ac] ss:$16 sps:$4 sm:$0xff]   ;;  %v6095_v61 = vld [vmem:[#allocation5 + $0x6a0] ss:$16 sps:$4 sm:$0xff]  }
  0xee   :  { %2045 = vmatprep.subr.bf16.mxu0 %v6007_v62  ;;  %2497 = vmatprep.subr.bf16.mxu1 %v6010_v63  ;;  %v6109_v62 = vld [vmem:[#allocation5 + $0x6c4] ss:$16 sps:$4 sm:$0xff]   ;;  %v6113_v63 = vld [vmem:[#allocation5 + $0x6a8] ss:$16 sps:$4 sm:$0xff]  }
  0xef   :  { %1996 = vmatprep.mubr.bf16.mxu0 %v6011_v0  ;;  %2448 = vmatprep.mubr.bf16.mxu1 %v6011_v0  ;;  %v6076_v0 = vld [vmem:[#allocation2 + $0xb8] ss:$28 sps:$4 sm:$0xff]  }
  0xf1   :  { %2046 = vmatpush1.bf16.msra.mxu0 %v6005_v1  ;;  %2498 = vmatpush1.bf16.msra.mxu1 %v6008_v2  ;;  %v6080_v1 = vld [vmem:[#allocation2 + $0xf4] ss:$28 sps:$4 sm:$0xff]  }
  0xf2   :  { %2047 = vmatprep.subr.bf16.mxu0 %v6016_v3  ;;  %2499 = vmatprep.subr.bf16.mxu1 %v6019_v4  ;;  %v6107_v2 = vld [vmem:[#allocation5 + $0x6c0] ss:$16 sps:$4 sm:$0xff]   ;;  %v6124_v3 = vld [vmem:[#allocation5 + $0x6cc] ss:$16 sps:$4 sm:$0xff]   ;;  %v6121_v4 = vld [vmem:[#allocation5 + $0x6e4] ss:$16 sps:$4 sm:$0xff]  }
  0xf4   :  { %1997 = vmatmul.mubr.bf16.gmra.mrb[20].mxu0 %v6013_v5  ;;  %2449 = vmatmul.mubr.bf16.gmra.mrb[20].mxu1 %v6013_v5  ;;  %v6122_v5 = vld [vmem:[#allocation5 + $0x6c8] ss:$16 sps:$4 sm:$0xff]  }
  0xf5   :  { %2048 = vmatpush1.bf16.msra.mxu0 %v6014_v6  ;;  %2500 = vmatpush1.bf16.msra.mxu1 %v6017_v7  ;;  %v6127_v6 = vld [vmem:[#allocation5 + $0x6ec] ss:$16 sps:$4 sm:$0xff]   ;;  %v6119_v7 = vld [vmem:[#allocation5 + $0x6e0] ss:$16 sps:$4 sm:$0xff]  }
  0xf6   :  { %2049 = vmatprep.subr.bf16.mxu0 %v6022_v8  ;;  %2501 = vmatprep.subr.bf16.mxu1 %v6025_v9  ;;  %v6125_v8 = vld [vmem:[#allocation5 + $0x6e8] ss:$16 sps:$4 sm:$0xff]   ;;  %v6138_v9 = vld [vmem:[#allocation7 + $0x4] ss:$16 sps:$4 sm:$0xff]  }
  0xf7   :  { %2006 = vmatprep.mubr.bf16.mxu0 %v6026_v10  ;;  %2458 = vmatprep.mubr.bf16.mxu1 %v6026_v10  ;;  %v6082_v10 = vld [vmem:[#allocation2 + $0xf0] ss:$28 sps:$4 sm:$0xff]  }
  0xf9   :  { %2050 = vmatpush1.bf16.msra.mxu0 %v6020_v11  ;;  %2502 = vmatpush1.bf16.msra.mxu1 %v6023_v12  ;;  %v6092_v11 = vld [vmem:[#allocation2 + $0x12c] ss:$28 sps:$4 sm:$0xff]  }
  0xfa   :  { %2051 = vmatprep.subr.bf16.mxu0 %v6031_v13  ;;  %2503 = vmatprep.subr.bf16.mxu1 %v6034_v14  ;;  %v6141_v12 = vld [vmem:[#allocation7 + $0xc] ss:$16 sps:$4 sm:$0xff]   ;;  %v6094_v13 = vld [vmem:[#allocation2 + $0x128] ss:$28 sps:$4 sm:$0xff]  }
  0xfb   :  { %v6104_v14 = vld [vmem:[#allocation2 + $0x164] ss:$28 sps:$4 sm:$0xff]  }
  0xfc   :  { %2007 = vmatmul.mubr.bf16.gmra.mrb[24].mxu0 %v6028_v15  ;;  %2459 = vmatmul.mubr.bf16.gmra.mrb[24].mxu1 %v6028_v15  ;;  %v6106_v15 = vld [vmem:[#allocation2 + $0x160] ss:$28 sps:$4 sm:$0xff]  }
  0xfd   :  { %2052 = vmatpush1.bf16.msra.mxu0 %v6029_v16  ;;  %2504 = vmatpush1.bf16.msra.mxu1 %v6032_v17  ;;  %v6116_v16 = vld [vmem:[#allocation2 + $0x19c] ss:$28 sps:$4 sm:$0xff]  }
  0xfe   :  { %2053 = vmatprep.subr.bf16.mxu0 %v6037_v18  ;;  %2505 = vmatprep.subr.bf16.mxu1 %v6040_v19  ;;  %v6118_v17 = vld [vmem:[#allocation2 + $0x198] ss:$28 sps:$4 sm:$0xff]   ;;  %v6488_v18 = vmov 0  }
  0xff   :  { %2016 = vmatprep.mubr.bf16.mxu0 %v6041_v20  ;;  %2468 = vmatprep.mubr.bf16.mxu1 %v6041_v20  ;;  %v6128_v19 = vld [vmem:[#allocation2 + $0x18] ss:$28 sps:$4 sm:$0xff]   ;;  %v6136_v20 = vld [vmem:[#allocation7] ss:$16 sps:$4 sm:$0xff]  }
 0x101   :  { %2054 = vmatpush1.bf16.msra.mxu0 %v6035_v21  ;;  %2506 = vmatpush1.bf16.msra.mxu1 %v6038_v22  ;;  %v6139_v21 = vld [vmem:[#allocation7 + $0x8] ss:$16 sps:$4 sm:$0xff]   ;;  %v6144_v22 = vld [vmem:[#allocation7 + $0x24] ss:$16 sps:$4 sm:$0xff]  }
 0x102   :  { %2055 = vmatprep.subr.bf16.mxu0 %v6046_v23  ;;  %2507 = vmatprep.subr.bf16.mxu1 %v6049_v25  ;;  %v6147_v23 = vld [vmem:[#allocation7 + $0x2c] ss:$16 sps:$4 sm:$0xff]   ;;  %v6145_v25 = vld [vmem:[#allocation7 + $0x28] ss:$16 sps:$4 sm:$0xff]  }
 0x104   :  { %2017 = vmatmul.mubr.bf16.gmra.mrb[28].mxu0 %v6043_v24  ;;  %2469 = vmatmul.mubr.bf16.gmra.mrb[28].mxu1 %v6043_v24  ;;  %v6142_v24 = vld [vmem:[#allocation7 + $0x20] ss:$16 sps:$4 sm:$0xff]  }
 0x105   :  { %2056 = vmatpush1.bf16.msra.mxu0 %v6044_v26  ;;  %2508 = vmatpush1.bf16.msra.mxu1 %v6047_v27  ;;  %v6150_v26 = vld [vmem:[#allocation7 + $0x44] ss:$16 sps:$4 sm:$0xff]   ;;  %v6153_v27 = vld [vmem:[#allocation7 + $0x4c] ss:$16 sps:$4 sm:$0xff]  }
 0x106   :  { %2057 = vmatprep.subr.bf16.mxu0 %v6052_v28  ;;  %2509 = vmatprep.subr.bf16.mxu1 %v6055_v29  ;;  %v6129_v28 = vld [vmem:[#allocation2 + $0x50] ss:$28 sps:$4 sm:$0xff]  }
 0x107   :  { %2059 = vmatprep.mubr.bf16.mxu0 %v6058_v31  ;;  %2511 = vmatprep.mubr.bf16.mxu1 %v6058_v31  ;;  %v6148_v29 = vld [vmem:[#allocation7 + $0x40] ss:$16 sps:$4 sm:$0xff]   ;;  %v6156_v31 = vld [vmem:[#allocation7 + $0x64] ss:$16 sps:$4 sm:$0xff]  }
 0x109   :  { %2058 = vmatpush1.bf16.msra.mxu0 %v6050_v30  ;;  %2510 = vmatpush1.bf16.msra.mxu1 %v6053_v32  ;;  %v6151_v30 = vld [vmem:[#allocation7 + $0x48] ss:$16 sps:$4 sm:$0xff]   ;;  %v6159_v32 = vld [vmem:[#allocation7 + $0x6c] ss:$16 sps:$4 sm:$0xff]  }
 0x10a   :  { %2140 = vmatprep.subr.bf16.mxu0 %v6061_v33  ;;  %2592 = vmatprep.subr.bf16.mxu1 %v6088_v34  ;;  %v6154_v33 = vld [vmem:[#allocation7 + $0x60] ss:$16 sps:$4 sm:$0xff]   ;;  %v6157_v34 = vld [vmem:[#allocation7 + $0x68] ss:$16 sps:$4 sm:$0xff]  }
 0x10c   :  { %2060 = vmatmul.mubr.bf16.vlgmr.msra.gmra.mrb[0].mxu0 %v6056_v35  ;;  %2512 = vmatmul.mubr.bf16.vlgmr.msra.gmra.mrb[0].mxu1 %v6056_v35  ;;  %v6162_v35 = vld [vmem:[#allocation7 + $0x84] ss:$16 sps:$4 sm:$0xff]  }
 0x10d   :  { %2141 = vmatpush1.bf16.msra.mxu0 %v6059_v36  ;;  %2069 = vmatprep.mubr.bf16.mxu0 %v6062_v37  ;;  %v6165_v36 = vld [vmem:[#allocation7 + $0x8c] ss:$16 sps:$4 sm:$0xff]  }
 0x10e   :  { %2521 = vmatprep.mubr.bf16.mxu1 %v6062_v37  ;;  %2142 = vmatprep.subr.bf16.mxu0 %v6067_v38  ;;  %v6130_v37 = vld [vmem:[#allocation2 + $0x88] ss:$28 sps:$4 sm:$0xff]   ;;  %v6160_v38 = vld [vmem:[#allocation7 + $0x80] ss:$16 sps:$4 sm:$0xff]  }
 0x10f   :  { %2593 = vmatpush1.bf16.msra.mxu1 %v6086_v39  ;;  %v6163_v39 = vld [vmem:[#allocation7 + $0x88] ss:$16 sps:$4 sm:$0xff]  }
 0x110   :  { %2594 = vmatprep.subr.bf16.mxu1 %v6091_v40  ;;  %v6168_v40 = vld [vmem:[#allocation7 + $0xa4] ss:$16 sps:$4 sm:$0xff]  }
 0x111   :  { %2143 = vmatpush1.bf16.msra.mxu0 %v6065_v41  ;;  %v6171_v41 = vld [vmem:[#allocation7 + $0xac] ss:$16 sps:$4 sm:$0xff]  }
 0x112   :  { %2144 = vmatprep.subr.bf16.mxu0 %v6073_v42  ;;  %v6166_v42 = vld [vmem:[#allocation7 + $0xa0] ss:$16 sps:$4 sm:$0xff]  }
 0x113   :  { %2595 = vmatpush1.bf16.msra.mxu1 %v6089_v43  ;;  %v6169_v43 = vld [vmem:[#allocation7 + $0xa8] ss:$16 sps:$4 sm:$0xff]  }
 0x114   :  { %2070 = vmatmul.mubr.bf16.gmra.mrb[4].mxu0 %v6064_v44  ;;  %2522 = vmatmul.mubr.bf16.gmra.mrb[4].mxu1 %v6064_v44  ;;  %v6174_v44 = vld [vmem:[#allocation7 + $0xc4] ss:$16 sps:$4 sm:$0xff]  }
 0x115   :  { %2079 = vmatprep.mubr.bf16.mxu0 %v6068_v45  ;;  %2531 = vmatprep.mubr.bf16.mxu1 %v6068_v45  ;;  %v6177_v45 = vld [vmem:[#allocation7 + $0xcc] ss:$16 sps:$4 sm:$0xff]  }
 0x116   :  { %2145 = vmatpush1.bf16.msra.mxu0 %v6071_v46  ;;  %2596 = vmatprep.subr.bf16.mxu1 %v6100_v47  ;;  %v6131_v46 = vld [vmem:[#allocation2 + $0xc0] ss:$28 sps:$4 sm:$0xff]  }
 0x117   :  { %2146 = vmatprep.subr.bf16.mxu0 %v6079_v48  ;;  %2597 = vmatpush1.bf16.msra.mxu1 %v6098_v49  ;;  %v6172_v47 = vld [vmem:[#allocation7 + $0xc0] ss:$16 sps:$4 sm:$0xff]   ;;  %v6175_v48 = vld [vmem:[#allocation7 + $0xc8] ss:$16 sps:$4 sm:$0xff]   ;;  %v6180_v49 = vld [vmem:[#allocation7 + $0xe4] ss:$16 sps:$4 sm:$0xff]  }
 0x118   :  { %2598 = vmatprep.subr.bf16.mxu1 %v6103_v50  ;;  %v6183_v50 = vld [vmem:[#allocation7 + $0xec] ss:$16 sps:$4 sm:$0xff]  }
 0x11a   :  { %2147 = vmatpush1.bf16.msra.mxu0 %v6077_v51  ;;  %v6178_v51 = vld [vmem:[#allocation7 + $0xe0] ss:$16 sps:$4 sm:$0xff]  }
 0x11b   :  { %2148 = vmatprep.subr.bf16.mxu0 %v6085_v52  ;;  %2599 = vmatpush1.bf16.msra.mxu1 %v6101_v53  ;;  %v6181_v52 = vld [vmem:[#allocation7 + $0xe8] ss:$16 sps:$4 sm:$0xff]   ;;  %v6186_v53 = vld [vmem:[#allocation7 + $0x104] ss:$16 sps:$4 sm:$0xff]  }
 0x11c   :  { %2080 = vmatmul.mubr.bf16.gmra.mrb[8].mxu0 %v6070_v54  ;;  %2532 = vmatmul.mubr.bf16.gmra.mrb[8].mxu1 %v6070_v54  ;;  %v6189_v54 = vld [vmem:[#allocation7 + $0x10c] ss:$16 sps:$4 sm:$0xff]  }
 0x11d   :  { %2089 = vmatprep.mubr.bf16.mxu0 %v6074_v55  ;;  %2541 = vmatprep.mubr.bf16.mxu1 %v6074_v55  ;;  %v6132_v55 = vld [vmem:[#allocation2 + $0xf8] ss:$28 sps:$4 sm:$0xff]  }
 0x11e   :  { %2149 = vmatpush1.bf16.msra.mxu0 %v6083_v56  ;;  %2600 = vmatprep.subr.bf16.mxu1 %v6112_v57  ;;  %v6184_v56 = vld [vmem:[#allocation7 + $0x100] ss:$16 sps:$4 sm:$0xff]   ;;  %v6187_v57 = vld [vmem:[#allocation7 + $0x108] ss:$16 sps:$4 sm:$0xff]  }
 0x11f   :  { %2150 = vmatprep.subr.bf16.mxu0 %v6097_v58  ;;  %2601 = vmatpush1.bf16.msra.mxu1 %v6110_v59  ;;  %v6192_v58 = vld [vmem:[#allocation7 + $0x124] ss:$16 sps:$4 sm:$0xff]   ;;  %v6195_v59 = vld [vmem:[#allocation7 + $0x12c] ss:$16 sps:$4 sm:$0xff]  }
 0x120   :  { %2602 = vmatprep.subr.bf16.mxu1 %v6115_v60  ;;  %v6190_v60 = vld [vmem:[#allocation7 + $0x120] ss:$16 sps:$4 sm:$0xff]  }
 0x122   :  { %2151 = vmatpush1.bf16.msra.mxu0 %v6095_v61  ;;  %v6193_v61 = vld [vmem:[#allocation7 + $0x128] ss:$16 sps:$4 sm:$0xff]  }
 0x123   :  { %2152 = vmatprep.subr.bf16.mxu0 %v6109_v62  ;;  %2603 = vmatpush1.bf16.msra.mxu1 %v6113_v63  ;;  %v6198_v62 = vld [vmem:[#allocation7 + $0x144] ss:$16 sps:$4 sm:$0xff]   ;;  %v6201_v63 = vld [vmem:[#allocation7 + $0x14c] ss:$16 sps:$4 sm:$0xff]  }
 0x124   :  { %2090 = vmatmul.mubr.bf16.gmra.mrb[12].mxu0 %v6076_v0  ;;  %2542 = vmatmul.mubr.bf16.gmra.mrb[12].mxu1 %v6076_v0  ;;  %v6133_v0 = vld [vmem:[#allocation2 + $0x130] ss:$28 sps:$4 sm:$0xff]  }
 0x125   :  { %2099 = vmatprep.mubr.bf16.mxu0 %v6080_v1  ;;  %2551 = vmatprep.mubr.bf16.mxu1 %v6080_v1  ;;  %v6196_v1 = vld [vmem:[#allocation7 + $0x140] ss:$16 sps:$4 sm:$0xff]  }
 0x126   :  { %2153 = vmatpush1.bf16.msra.mxu0 %v6107_v2  ;;  %2604 = vmatprep.subr.bf16.mxu1 %v6124_v3  ;;  %v6199_v2 = vld [vmem:[#allocation7 + $0x148] ss:$16 sps:$4 sm:$0xff]   ;;  %v6204_v3 = vld [vmem:[#allocation7 + $0x164] ss:$16 sps:$4 sm:$0xff]  }
 0x127   :  { %2154 = vmatprep.subr.bf16.mxu0 %v6121_v4  ;;  %2605 = vmatpush1.bf16.msra.mxu1 %v6122_v5  ;;  %v6207_v4 = vld [vmem:[#allocation7 + $0x16c] ss:$16 sps:$4 sm:$0xff]   ;;  %v6202_v5 = vld [vmem:[#allocation7 + $0x160] ss:$16 sps:$4 sm:$0xff]  }
 0x128   :  { %2606 = vmatprep.subr.bf16.mxu1 %v6127_v6  ;;  %v6205_v6 = vld [vmem:[#allocation7 + $0x168] ss:$16 sps:$4 sm:$0xff]  }
 0x12a   :  { %2155 = vmatpush1.bf16.msra.mxu0 %v6119_v7  ;;  %v6210_v7 = vld [vmem:[#allocation7 + $0x184] ss:$16 sps:$4 sm:$0xff]  }
 0x12b   :  { %2607 = vmatpush1.bf16.msra.mxu1 %v6125_v8  ;;  %3591 = vmatprep.subr.bf16.mxu0 %v6138_v9  ;;  %v6213_v8 = vld [vmem:[#allocation7 + $0x18c] ss:$16 sps:$4 sm:$0xff]   ;;  %v6134_v9 = vld [vmem:[#allocation2 + $0x168] ss:$28 sps:$4 sm:$0xff]  }
 0x12c   :  { %2100 = vmatmul.mubr.bf16.gmra.mrb[16].mxu0 %v6082_v10  ;;  %2552 = vmatmul.mubr.bf16.gmra.mrb[16].mxu1 %v6082_v10  ;;  %v6208_v10 = vld [vmem:[#allocation7 + $0x180] ss:$16 sps:$4 sm:$0xff]  }
 0x12d   :  { %2109 = vmatprep.mubr.bf16.mxu0 %v6092_v11  ;;  %2561 = vmatprep.mubr.bf16.mxu1 %v6092_v11  ;;  %v6211_v11 = vld [vmem:[#allocation7 + $0x188] ss:$16 sps:$4 sm:$0xff]  }
 0x12e   :  { %3817 = vmatprep.subr.bf16.mxu1 %v6141_v12  ;;  %v6216_v12 = vld [vmem:[#allocation7 + $0x1a4] ss:$16 sps:$4 sm:$0xff]  }
 0x134   :  { %2110 = vmatmul.mubr.bf16.gmra.mrb[20].mxu0 %v6094_v13  ;;  %2562 = vmatmul.mubr.bf16.gmra.mrb[20].mxu1 %v6094_v13  ;;  %v6219_v13 = vld [vmem:[#allocation7 + $0x1ac] ss:$16 sps:$4 sm:$0xff]  }
 0x135   :  { %2119 = vmatprep.mubr.bf16.mxu0 %v6104_v14  ;;  %2571 = vmatprep.mubr.bf16.mxu1 %v6104_v14  ;;  %v6214_v14 = vld [vmem:[#allocation7 + $0x1a0] ss:$16 sps:$4 sm:$0xff]  }
 0x13c   :  { %2120 = vmatmul.mubr.bf16.gmra.mrb[24].mxu0 %v6106_v15  ;;  %2572 = vmatmul.mubr.bf16.gmra.mrb[24].mxu1 %v6106_v15  ;;  %v6217_v15 = vld [vmem:[#allocation7 + $0x1a8] ss:$16 sps:$4 sm:$0xff]  }
 0x13d   :  { %2129 = vmatprep.mubr.bf16.mxu0 %v6116_v16  ;;  %2581 = vmatprep.mubr.bf16.mxu1 %v6116_v16  ;;  %v6135_v16 = vld [vmem:[#allocation2 + $0x1a0] ss:$28 sps:$4 sm:$0xff]  }
 0x144   :  { %2130 = vmatmul.mubr.bf16.gmra.mrb[28].mxu0 %v6118_v17  ;;  %2582 = vmatmul.mubr.bf16.gmra.mrb[28].mxu1 %v6118_v17  ;;  %v6222_v17 = vld [vmem:[#allocation7 + $0x1c4] ss:$16 sps:$4 sm:$0xff]  }
 0x145   :  { %2172 = vmatprep.mubr.bf16.mxu0 %v6488_v18  ;;  %2624 = vmatprep.mubr.bf16.mxu1 %v6488_v18 }
 0x14c   :  { %2173 = vmatmul.mubr.bf16.vlgmr.msra.gmra.mrb[0].mxu0 %v6128_v19  ;;  %2625 = vmatmul.mubr.bf16.vlgmr.msra.gmra.mrb[0].mxu1 %v6128_v19  ;;  %v6225_v19 = vld [vmem:[#allocation7 + $0x1cc] ss:$16 sps:$4 sm:$0xff]  }
 0x14d   :  { %2182 = vmatprep.mubr.bf16.mxu0 %v6488_v18  ;;  %2634 = vmatprep.mubr.bf16.mxu1 %v6488_v18 }
 0x14e   :  { %3592 = vmatpush1.bf16.msra.mxu0 %v6136_v20  ;;  %3818 = vmatpush1.bf16.msra.mxu1 %v6139_v21  ;;  %v6220_v20 = vld [vmem:[#allocation7 + $0x1c0] ss:$16 sps:$4 sm:$0xff]   ;;  %v6223_v21 = vld [vmem:[#allocation7 + $0x1c8] ss:$16 sps:$4 sm:$0xff]  }
 0x14f   :  { %3593 = vmatprep.subr.bf16.mxu0 %v6144_v22  ;;  %3819 = vmatprep.subr.bf16.mxu1 %v6147_v23  ;;  %v6231_v22 = vld [vmem:[#allocation7 + $0x1ec] ss:$16 sps:$4 sm:$0xff]   ;;  %v6226_v23 = vld [vmem:[#allocation7 + $0x1e0] ss:$16 sps:$4 sm:$0xff]  }
 0x152   :  { %3594 = vmatpush1.bf16.msra.mxu0 %v6142_v24  ;;  %3820 = vmatpush1.bf16.msra.mxu1 %v6145_v25  ;;  %v6229_v24 = vld [vmem:[#allocation7 + $0x1e8] ss:$16 sps:$4 sm:$0xff]   ;;  %v6234_v25 = vld [vmem:[#allocation7 + $0x204] ss:$16 sps:$4 sm:$0xff]  }
 0x153   :  { %3595 = vmatprep.subr.bf16.mxu0 %v6150_v26  ;;  %3821 = vmatprep.subr.bf16.mxu1 %v6153_v27  ;;  %v6237_v26 = vld [vmem:[#allocation7 + $0x20c] ss:$16 sps:$4 sm:$0xff]   ;;  %v373_v27 = vlaneseq }
 0x154   :  { %2183 = vmatmul.mubr.bf16.gmra.mrb[4].mxu0 %v6129_v28  ;;  %2635 = vmatmul.mubr.bf16.gmra.mrb[4].mxu1 %v6129_v28 }
 0x155   :  { %2192 = vmatprep.mubr.bf16.mxu0 %v6488_v18  ;;  %2644 = vmatprep.mubr.bf16.mxu1 %v6488_v18  ;;  %v6607_v28 = vshrl.u32 %v373_v27, 7 }
 0x156   :  { %3596 = vmatpush1.bf16.msra.mxu0 %v6148_v29  ;;  %3822 = vmatpush1.bf16.msra.mxu1 %v6151_v30 }
 0x157   :  { %3597 = vmatprep.subr.bf16.mxu0 %v6156_v31  ;;  %3823 = vmatprep.subr.bf16.mxu1 %v6159_v32  ;;  %v375_v29 = vsub.s32 0, %v6607_v28  ;;  %v383_v30 = vsub.s32 2, %v6607_v28  ;;  %v371_v31 = vld [vmem:[%s6985_s2] sm:$0xf]  ;;  %v379_v32 = vsub.s32 1, %v6607_v28 }
 0x15a   :  { %3598 = vmatpush1.bf16.msra.mxu0 %v6154_v33  ;;  %3824 = vmatpush1.bf16.msra.mxu1 %v6157_v34  ;;  %v387_v33 = vsub.s32 3, %v6607_v28  ;;  %v6618_v34 = vrot.slane %v371_v31, %v375_v29 }
 0x15b   :  { %3599 = vmatprep.subr.bf16.mxu0 %v6162_v35  ;;  %3825 = vmatprep.subr.bf16.mxu1 %v6165_v36  ;;  %v6622_v35 = vrot.slane %v371_v31, %v383_v30  ;;  %v6626_v36 = vrot.slane %v371_v31, %v379_v32 }
 0x15c   :  { %2193 = vmatmul.mubr.bf16.gmra.mrb[8].mxu0 %v6130_v37  ;;  %2645 = vmatmul.mubr.bf16.gmra.mrb[8].mxu1 %v6130_v37  ;;  %v6630_v37 = vrot.slane %v371_v31, %v387_v33 }
 0x15d   :  { %2202 = vmatprep.mubr.bf16.mxu0 %v6488_v18  ;;  %2654 = vmatprep.mubr.bf16.mxu1 %v6488_v18 }
 0x15e   :  { %3600 = vmatpush1.bf16.msra.mxu0 %v6160_v38  ;;  %3826 = vmatpush1.bf16.msra.mxu1 %v6163_v39 }
 0x15f   :  { %3601 = vmatprep.subr.bf16.mxu0 %v6168_v40  ;;  %3827 = vmatprep.subr.bf16.mxu1 %v6171_v41 }
 0x162   :  { %3602 = vmatpush1.bf16.msra.mxu0 %v6166_v42  ;;  %3828 = vmatpush1.bf16.msra.mxu1 %v6169_v43 }
 0x163   :  { %3603 = vmatprep.subr.bf16.mxu0 %v6174_v44  ;;  %3829 = vmatprep.subr.bf16.mxu1 %v6177_v45 }
 0x164   :  { %2203 = vmatmul.mubr.bf16.gmra.mrb[12].mxu0 %v6131_v46  ;;  %2655 = vmatmul.mubr.bf16.gmra.mrb[12].mxu1 %v6131_v46 }
 0x165   :  { %2212 = vmatprep.mubr.bf16.mxu0 %v6488_v18  ;;  %2664 = vmatprep.mubr.bf16.mxu1 %v6488_v18 }
 0x166   :  { %3604 = vmatpush1.bf16.msra.mxu0 %v6172_v47  ;;  %3830 = vmatpush1.bf16.msra.mxu1 %v6175_v48 }
 0x167   :  { %3605 = vmatprep.subr.bf16.mxu0 %v6180_v49  ;;  %3831 = vmatprep.subr.bf16.mxu1 %v6183_v50 }
 0x16a   :  { %3606 = vmatpush1.bf16.msra.mxu0 %v6178_v51  ;;  %3832 = vmatpush1.bf16.msra.mxu1 %v6181_v52 }
 0x16b   :  { %3607 = vmatprep.subr.bf16.mxu0 %v6186_v53  ;;  %3833 = vmatprep.subr.bf16.mxu1 %v6189_v54 }
 0x16c   :  { %2213 = vmatmul.mubr.bf16.gmra.mrb[16].mxu0 %v6132_v55  ;;  %2665 = vmatmul.mubr.bf16.gmra.mrb[16].mxu1 %v6132_v55 }
 0x16d   :  { %2222 = vmatprep.mubr.bf16.mxu0 %v6488_v18  ;;  %2674 = vmatprep.mubr.bf16.mxu1 %v6488_v18 }
 0x16e   :  { %3608 = vmatpush1.bf16.msra.mxu0 %v6184_v56  ;;  %3834 = vmatpush1.bf16.msra.mxu1 %v6187_v57 }
 0x16f   :  { %3609 = vmatprep.subr.bf16.mxu0 %v6192_v58  ;;  %3835 = vmatprep.subr.bf16.mxu1 %v6195_v59 }
 0x172   :  { %3610 = vmatpush1.bf16.msra.mxu0 %v6190_v60  ;;  %3836 = vmatpush1.bf16.msra.mxu1 %v6193_v61 }
 0x173   :  { %3611 = vmatprep.subr.bf16.mxu0 %v6198_v62  ;;  %3837 = vmatprep.subr.bf16.mxu1 %v6201_v63 }
 0x174   :  { %2223 = vmatmul.mubr.bf16.gmra.mrb[20].mxu0 %v6133_v0  ;;  %2675 = vmatmul.mubr.bf16.gmra.mrb[20].mxu1 %v6133_v0 }
 0x175   :  { %2232 = vmatprep.mubr.bf16.mxu0 %v6488_v18  ;;  %2684 = vmatprep.mubr.bf16.mxu1 %v6488_v18 }
 0x176   :  { %3612 = vmatpush1.bf16.msra.mxu0 %v6196_v1  ;;  %3838 = vmatpush1.bf16.msra.mxu1 %v6199_v2 }
 0x177   :  { %3613 = vmatprep.subr.bf16.mxu0 %v6204_v3  ;;  %3839 = vmatprep.subr.bf16.mxu1 %v6207_v4  ;;  %v6232_v4 = vld [vmem:[#allocation7 + $0x200] ss:$16 sps:$4 sm:$0xff]  }
 0x17a   :  { %3614 = vmatpush1.bf16.msra.mxu0 %v6202_v5  ;;  %3840 = vmatpush1.bf16.msra.mxu1 %v6205_v6  ;;  %v6235_v5 = vld [vmem:[#allocation7 + $0x208] ss:$16 sps:$4 sm:$0xff]  }
 0x17b   :  { %3615 = vmatprep.subr.bf16.mxu0 %v6210_v7  ;;  %3841 = vmatprep.subr.bf16.mxu1 %v6213_v8 }
 0x17c   :  { %2233 = vmatmul.mubr.bf16.gmra.mrb[24].mxu0 %v6134_v9  ;;  %2685 = vmatmul.mubr.bf16.gmra.mrb[24].mxu1 %v6134_v9 }
 0x17d   :  { %2242 = vmatprep.mubr.bf16.mxu0 %v6488_v18  ;;  %2694 = vmatprep.mubr.bf16.mxu1 %v6488_v18  ;;  %v6228_v18 = vld [vmem:[#allocation7 + $0x1e4] ss:$16 sps:$4 sm:$0xff]  }
 0x17e   :  { %3616 = vmatpush1.bf16.msra.mxu0 %v6208_v10  ;;  %3842 = vmatpush1.bf16.msra.mxu1 %v6211_v11  ;;  %v6240_v10 = vld [vmem:[#allocation7 + $0x224] ss:$16 sps:$4 sm:$0xff]   ;;  %v6243_v11 = vld [vmem:[#allocation7 + $0x22c] ss:$16 sps:$4 sm:$0xff]  }
 0x17f   :  { %3617 = vmatprep.subr.bf16.mxu0 %v6216_v12  ;;  %3843 = vmatprep.subr.bf16.mxu1 %v6219_v13 }
 0x182   :  { %3618 = vmatpush1.bf16.msra.mxu0 %v6214_v14  ;;  %3844 = vmatpush1.bf16.msra.mxu1 %v6217_v15 }
 0x183   :  { %3619 = vmatprep.subr.bf16.mxu0 %v6222_v17  ;;  %3845 = vmatprep.subr.bf16.mxu1 %v6225_v19 }
 0x184   :  { %2243 = vmatmul.mubr.bf16.gmra.mrb[28].mxu0 %v6135_v16  ;;  %2695 = vmatmul.mubr.bf16.gmra.mrb[28].mxu1 %v6135_v16 }
 0x186   :  { %3620 = vmatpush1.bf16.msra.mxu0 %v6220_v20  ;;  %3846 = vmatpush1.bf16.msra.mxu1 %v6223_v21 }
 0x187   :  { %3621 = vmatprep.subr.bf16.mxu0 %v6228_v18  ;;  %3847 = vmatprep.subr.bf16.mxu1 %v6231_v22  ;;  %v6238_v22 = vld [vmem:[#allocation7 + $0x220] ss:$16 sps:$4 sm:$0xff]  }
 0x18a   :  { %3622 = vmatpush1.bf16.msra.mxu0 %v6226_v23  ;;  %3848 = vmatpush1.bf16.msra.mxu1 %v6229_v24  ;;  %v6241_v23 = vld [vmem:[#allocation7 + $0x228] ss:$16 sps:$4 sm:$0xff]   ;;  %v6246_v24 = vld [vmem:[#allocation7 + $0x244] ss:$16 sps:$4 sm:$0xff]  }
 0x18b   :  { %3704 = vmatprep.subr.bf16.mxu0 %v6234_v25  ;;  %3930 = vmatprep.subr.bf16.mxu1 %v6237_v26 }
 0x21f   :  { %v2174_v38 = vpop.f32.mrb[0].mxu0  ;;  %v2626_v39 = vpop.f32.mrb[0].mxu1 }
 0x220   :  { %v5324_v40 = vadd.f32 %v2174_v38, %v6618_v34  ;;  %v5356_v41 = vadd.f32 %v2626_v39, %v6622_v35  ;;  %v2176_v42 = vpop.f32.mrb[1].mxu0  ;;  %v2628_v43 = vpop.f32.mrb[1].mxu1  ;;  %v6249_v38 = vld [vmem:[#allocation7 + $0x24c] ss:$16 sps:$4 sm:$0xff]  }
 0x221   :  { %v5325_v44 = vadd.f32 %v2176_v42, %v6626_v36  ;;  %v5357_v45 = vadd.f32 %v2628_v43, %v6630_v37  ;;  %v2178_v46 = vpop.f32.mrb[2].mxu0  ;;  %v2630_v47 = vpop.f32.mrb[2].mxu1 }
 0x222   :  { %v5326_v48 = vadd.f32 %v2178_v46, %v6618_v34  ;;  %v5358_v49 = vadd.f32 %v2630_v47, %v6622_v35  ;;  %v2180_v50 = vpop.f32.mrb[3].mxu0  ;;  %v2632_v51 = vpop.f32.mrb[3].mxu1  ;;  %v2705_v54 = vmax.f32 %v5324_v40, 0.0  ;;  %v2707_v55 = vmax.f32 %v5356_v41, 0.0 }
 0x223   :  { %v5327_v52 = vadd.f32 %v2180_v50, %v6626_v36  ;;  %v5359_v53 = vadd.f32 %v2632_v51, %v6630_v37  ;;  %v2706_v58 = vmax.f32 %v5325_v44, 0.0  ;;  %v2708_v59 = vmax.f32 %v5357_v45, 0.0  ;;  %v6247_v50 = vld [vmem:[#allocation7 + $0x248] ss:$16 sps:$4 sm:$0xff]  }
 0x224   :  { %v2709_v56 = vmax.f32 %v5326_v48, 0.0  ;;  %v2711_v57 = vmax.f32 %v5358_v49, 0.0  ;;  %v6244_v49 = vld [vmem:[#allocation7 + $0x240] ss:$16 sps:$4 sm:$0xff]  }
 0x225   :  { %v2710_v60 = vmax.f32 %v5327_v52, 0.0  ;;  %v2712_v61 = vmax.f32 %v5359_v53, 0.0 }
 0x226   :  { %v2769_v62 = vpack.c.bf16 %v2709_v56, %v2705_v54  ;;  %v6640_v63 = vpack.c.bf16 %v2711_v57, %v2707_v55  ;;  %v6252_v55 = vld [vmem:[#allocation7 + $0x264] ss:$16 sps:$4 sm:$0xff]   ;;  %v6255_v56 = vld [vmem:[#allocation7 + $0x26c] ss:$16 sps:$4 sm:$0xff]  }
 0x227   :  { %v2770_v0 = vpack.c.bf16 %v2710_v60, %v2706_v58  ;;  %v6642_v1 = vpack.c.bf16 %v2712_v61, %v2708_v59  ;;  %v2184_v2 = vpop.f32.mrb[4].mxu0  ;;  %v2636_v3 = vpop.f32.mrb[4].mxu1 }
 0x228   :  { %v5328_v6 = vadd.f32 %v2184_v2, %v6618_v34  ;;  %v5360_v7 = vadd.f32 %v2636_v3, %v6622_v35  ;;  %v2186_v8 = vpop.f32.mrb[5].mxu0  ;;  %v2638_v9 = vpop.f32.mrb[5].mxu1 }
 0x229   :  { %v5329_v12 = vadd.f32 %v2186_v8, %v6626_v36  ;;  %v5361_v13 = vadd.f32 %v2638_v9, %v6630_v37  ;;  %v2188_v14 = vpop.f32.mrb[6].mxu0  ;;  %v2640_v15 = vpop.f32.mrb[6].mxu1  ;;  %3623 = vmatprep.mubr.bf16.mxu0 %v2770_v0  ;;  %3849 = vmatprep.mubr.bf16.mxu1 %v2770_v0 }
 0x22a   :  { %v5330_v16 = vadd.f32 %v2188_v14, %v6618_v34  ;;  %v5362_v17 = vadd.f32 %v2640_v15, %v6622_v35  ;;  %v2190_v19 = vpop.f32.mrb[7].mxu0  ;;  %v2642_v20 = vpop.f32.mrb[7].mxu1  ;;  %3624 = vmatmul.mubr.bf16.vlgmr.msra.gmra.mrb[32].mxu0 %v2769_v62  ;;  %3850 = vmatmul.mubr.bf16.vlgmr.msra.gmra.mrb[32].mxu1 %v2769_v62  ;;  %v2713_v25 = vmax.f32 %v5328_v6, 0.0  ;;  %v2715_v26 = vmax.f32 %v5360_v7, 0.0  ;;  %v6253_v6 = vld [vmem:[#allocation7 + $0x268] ss:$16 sps:$4 sm:$0xff]  }
 0x22b   :  { %v5331_v21 = vadd.f32 %v2190_v19, %v6626_v36  ;;  %v5363_v18 = vadd.f32 %v2642_v20, %v6630_v37  ;;  %3705 = vmatpush1.bf16.msra.mxu0 %v6232_v4  ;;  %3931 = vmatpush1.bf16.msra.mxu1 %v6235_v5  ;;  %v2714_v39 = vmax.f32 %v5329_v12, 0.0  ;;  %v2716_v40 = vmax.f32 %v5361_v13, 0.0  ;;  %v6250_v5 = vld [vmem:[#allocation7 + $0x260] ss:$16 sps:$4 sm:$0xff]   ;;  %v6258_v7 = vld [vmem:[#allocation7 + $0x284] ss:$16 sps:$4 sm:$0xff]  }
 0x22c   :  { %v2717_v27 = vmax.f32 %v5330_v16, 0.0  ;;  %v2719_v31 = vmax.f32 %v5362_v17, 0.0  ;;  %3706 = vmatprep.subr.bf16.mxu0 %v6240_v10  ;;  %3932 = vmatprep.subr.bf16.mxu1 %v6243_v11  ;;  %v6261_v12 = vld [vmem:[#allocation7 + $0x28c] ss:$16 sps:$4 sm:$0xff]  }
 0x22d   :  { %v2718_v41 = vmax.f32 %v5331_v21, 0.0  ;;  %v2720_v42 = vmax.f32 %v5363_v18, 0.0 }
 0x22e   :  { %v2773_v43 = vpack.c.bf16 %v2717_v27, %v2713_v25  ;;  %v6652_v44 = vpack.c.bf16 %v2719_v31, %v2715_v26 }
 0x22f   :  { %v2774_v45 = vpack.c.bf16 %v2718_v41, %v2714_v39  ;;  %v6654_v46 = vpack.c.bf16 %v2720_v42, %v2716_v40  ;;  %v2194_v47 = vpop.f32.mrb[8].mxu0  ;;  %v2646_v48 = vpop.f32.mrb[8].mxu1  ;;  %3707 = vmatpush1.bf16.msra.mxu0 %v6238_v22  ;;  %3933 = vmatpush1.bf16.msra.mxu1 %v6241_v23  ;;  %v6256_v23 = vld [vmem:[#allocation7 + $0x280] ss:$16 sps:$4 sm:$0xff]   ;;  %v6267_v39 = vld [vmem:[#allocation7 + $0x2ac] ss:$16 sps:$4 sm:$0xff]  }
 0x230   :  { %v5332_v51 = vadd.f32 %v2194_v47, %v6618_v34  ;;  %v5364_v52 = vadd.f32 %v2646_v48, %v6622_v35  ;;  %v2196_v53 = vpop.f32.mrb[9].mxu0  ;;  %v2648_v54 = vpop.f32.mrb[9].mxu1  ;;  %3708 = vmatprep.subr.bf16.mxu0 %v6246_v24  ;;  %3934 = vmatprep.subr.bf16.mxu1 %v6249_v38  ;;  %v6259_v24 = vld [vmem:[#allocation7 + $0x288] ss:$16 sps:$4 sm:$0xff]   ;;  %v6264_v38 = vld [vmem:[#allocation7 + $0x2a4] ss:$16 sps:$4 sm:$0xff]  }
 0x231   :  { %v5333_v57 = vadd.f32 %v2196_v53, %v6626_v36  ;;  %v5365_v58 = vadd.f32 %v2648_v54, %v6630_v37  ;;  %v2198_v59 = vpop.f32.mrb[10].mxu0  ;;  %v2650_v60 = vpop.f32.mrb[10].mxu1  ;;  %3633 = vmatprep.mubr.bf16.mxu0 %v2774_v45  ;;  %3859 = vmatprep.mubr.bf16.mxu1 %v2774_v45  ;;  %v6265_v53 = vld [vmem:[#allocation7 + $0x2a8] ss:$16 sps:$4 sm:$0xff]   ;;  %v6270_v54 = vld [vmem:[#allocation7 + $0x2c4] ss:$16 sps:$4 sm:$0xff]  }
 0x232   :  { %v5334_v61 = vadd.f32 %v2198_v59, %v6618_v34  ;;  %v5366_v62 = vadd.f32 %v2650_v60, %v6622_v35  ;;  %v2200_v0 = vpop.f32.mrb[11].mxu0  ;;  %v2652_v2 = vpop.f32.mrb[11].mxu1  ;;  %3634 = vmatmul.mubr.bf16.gmra.mrb[36].mxu0 %v2773_v43  ;;  %3860 = vmatmul.mubr.bf16.gmra.mrb[36].mxu1 %v2773_v43  ;;  %v2721_v8 = vmax.f32 %v5332_v51, 0.0  ;;  %v2723_v9 = vmax.f32 %v5364_v52, 0.0  ;;  %v6262_v52 = vld [vmem:[#allocation7 + $0x2a0] ss:$16 sps:$4 sm:$0xff]  }
 0x233   :  { %v5335_v3 = vadd.f32 %v2200_v0, %v6626_v36  ;;  %v5367_v4 = vadd.f32 %v2652_v2, %v6630_v37  ;;  %3709 = vmatpush1.bf16.msra.mxu0 %v6244_v49  ;;  %3935 = vmatpush1.bf16.msra.mxu1 %v6247_v50  ;;  %v2722_v13 = vmax.f32 %v5333_v57, 0.0  ;;  %v2724_v14 = vmax.f32 %v5365_v58, 0.0  ;;  %v6273_v59 = vld [vmem:[#allocation7 + $0x2cc] ss:$16 sps:$4 sm:$0xff]  }
 0x234   :  { %v2725_v10 = vmax.f32 %v5334_v61, 0.0  ;;  %v2727_v11 = vmax.f32 %v5366_v62, 0.0  ;;  %3710 = vmatprep.subr.bf16.mxu0 %v6252_v55  ;;  %3936 = vmatprep.subr.bf16.mxu1 %v6255_v56 }
 0x235   :  { %v2726_v15 = vmax.f32 %v5335_v3, 0.0  ;;  %v2728_v16 = vmax.f32 %v5367_v4, 0.0 }
 0x236   :  { %v2777_v17 = vpack.c.bf16 %v2725_v10, %v2721_v8  ;;  %v6664_v19 = vpack.c.bf16 %v2727_v11, %v2723_v9  ;;  %v6268_v8 = vld [vmem:[#allocation7 + $0x2c0] ss:$16 sps:$4 sm:$0xff]   ;;  %v6271_v9 = vld [vmem:[#allocation7 + $0x2c8] ss:$16 sps:$4 sm:$0xff]  }
 0x237   :  { %v2778_v20 = vpack.c.bf16 %v2726_v15, %v2722_v13  ;;  %v6666_v21 = vpack.c.bf16 %v2728_v16, %v2724_v14  ;;  %v2204_v18 = vpop.f32.mrb[12].mxu0  ;;  %v2656_v22 = vpop.f32.mrb[12].mxu1  ;;  %3711 = vmatpush1.bf16.msra.mxu0 %v6250_v5  ;;  %3937 = vmatpush1.bf16.msra.mxu1 %v6253_v6  ;;  %v6276_v14 = vld [vmem:[#allocation7 + $0x2e4] ss:$16 sps:$4 sm:$0xff]   ;;  %v6279_v15 = vld [vmem:[#allocation7 + $0x2ec] ss:$16 sps:$4 sm:$0xff]  }
 0x238   :  { %v5336_v25 = vadd.f32 %v2204_v18, %v6618_v34  ;;  %v5368_v26 = vadd.f32 %v2656_v22, %v6622_v35  ;;  %v2206_v27 = vpop.f32.mrb[13].mxu0  ;;  %v2658_v31 = vpop.f32.mrb[13].mxu1  ;;  %3712 = vmatprep.subr.bf16.mxu0 %v6258_v7  ;;  %3938 = vmatprep.subr.bf16.mxu1 %v6261_v12 }
 0x239   :  { %v5337_v40 = vadd.f32 %v2206_v27, %v6626_v36  ;;  %v5369_v41 = vadd.f32 %v2658_v31, %v6630_v37  ;;  %v2208_v42 = vpop.f32.mrb[14].mxu0  ;;  %v2660_v43 = vpop.f32.mrb[14].mxu1  ;;  %3643 = vmatprep.mubr.bf16.mxu0 %v2778_v20  ;;  %3869 = vmatprep.mubr.bf16.mxu1 %v2778_v20  ;;  %v6274_v31 = vld [vmem:[#allocation7 + $0x2e0] ss:$16 sps:$4 sm:$0xff]  }
 0x23a   :  { %v5338_v45 = vadd.f32 %v2208_v42, %v6618_v34  ;;  %v5370_v47 = vadd.f32 %v2660_v43, %v6622_v35  ;;  %v2210_v48 = vpop.f32.mrb[15].mxu0  ;;  %v2662_v49 = vpop.f32.mrb[15].mxu1  ;;  %3644 = vmatmul.mubr.bf16.gmra.mrb[40].mxu0 %v2777_v17  ;;  %3870 = vmatmul.mubr.bf16.gmra.mrb[40].mxu1 %v2777_v17  ;;  %v2729_v55 = vmax.f32 %v5336_v25, 0.0  ;;  %v2731_v56 = vmax.f32 %v5368_v26, 0.0 }
 0x23b   :  { %v5339_v50 = vadd.f32 %v2210_v48, %v6626_v36  ;;  %v5371_v51 = vadd.f32 %v2662_v49, %v6630_v37  ;;  %3713 = vmatpush1.bf16.msra.mxu0 %v6256_v23  ;;  %3939 = vmatpush1.bf16.msra.mxu1 %v6259_v24  ;;  %v2730_v60 = vmax.f32 %v5337_v40, 0.0  ;;  %v2732_v61 = vmax.f32 %v5369_v41, 0.0 }
 0x23c   :  { %v2733_v57 = vmax.f32 %v5338_v45, 0.0  ;;  %v2735_v58 = vmax.f32 %v5370_v47, 0.0  ;;  %3714 = vmatprep.subr.bf16.mxu0 %v6264_v38  ;;  %3940 = vmatprep.subr.bf16.mxu1 %v6267_v39  ;;  %v6277_v38 = vld [vmem:[#allocation7 + $0x2e8] ss:$16 sps:$4 sm:$0xff]   ;;  %v6282_v39 = vld [vmem:[#allocation7 + $0x304] ss:$16 sps:$4 sm:$0xff]  }
 0x23d   :  { %v2734_v62 = vmax.f32 %v5339_v50, 0.0  ;;  %v2736_v0 = vmax.f32 %v5371_v51, 0.0  ;;  %v6285_v45 = vld [vmem:[#allocation7 + $0x30c] ss:$16 sps:$4 sm:$0xff]  }
 0x23e   :  { %v2781_v2 = vpack.c.bf16 %v2733_v57, %v2729_v55  ;;  %v6676_v3 = vpack.c.bf16 %v2735_v58, %v2731_v56  ;;  %v6280_v57 = vld [vmem:[#allocation7 + $0x300] ss:$16 sps:$4 sm:$0xff]   ;;  %v6283_v58 = vld [vmem:[#allocation7 + $0x308] ss:$16 sps:$4 sm:$0xff]  }
 0x23f   :  { %v2782_v4 = vpack.c.bf16 %v2734_v62, %v2730_v60  ;;  %v6678_v5 = vpack.c.bf16 %v2736_v0, %v2732_v61  ;;  %v2214_v6 = vpop.f32.mrb[16].mxu0  ;;  %v2666_v7 = vpop.f32.mrb[16].mxu1  ;;  %3715 = vmatpush1.bf16.msra.mxu0 %v6262_v52  ;;  %3941 = vmatpush1.bf16.msra.mxu1 %v6265_v53  ;;  %v6288_v0 = vld [vmem:[#allocation7 + $0x324] ss:$16 sps:$4 sm:$0xff]  }
 0x240   :  { %v5340_v10 = vadd.f32 %v2214_v6, %v6618_v34  ;;  %v5372_v11 = vadd.f32 %v2666_v7, %v6622_v35  ;;  %v2216_v12 = vpop.f32.mrb[17].mxu0  ;;  %v2668_v13 = vpop.f32.mrb[17].mxu1  ;;  %3716 = vmatprep.subr.bf16.mxu0 %v6270_v54  ;;  %3942 = vmatprep.subr.bf16.mxu1 %v6273_v59 }
 0x241   :  { %v5341_v16 = vadd.f32 %v2216_v12, %v6626_v36  ;;  %v5373_v17 = vadd.f32 %v2668_v13, %v6630_v37  ;;  %v2218_v20 = vpop.f32.mrb[18].mxu0  ;;  %v2670_v18 = vpop.f32.mrb[18].mxu1  ;;  %3653 = vmatprep.mubr.bf16.mxu0 %v2782_v4  ;;  %3879 = vmatprep.mubr.bf16.mxu1 %v2782_v4 }
 0x242   :  { %v5342_v22 = vadd.f32 %v2218_v20, %v6618_v34  ;;  %v5374_v23 = vadd.f32 %v2670_v18, %v6622_v35  ;;  %v2220_v24 = vpop.f32.mrb[19].mxu0  ;;  %v2672_v25 = vpop.f32.mrb[19].mxu1  ;;  %3654 = vmatmul.mubr.bf16.gmra.mrb[44].mxu0 %v2781_v2  ;;  %3880 = vmatmul.mubr.bf16.gmra.mrb[44].mxu1 %v2781_v2  ;;  %v2737_v40 = vmax.f32 %v5340_v10, 0.0  ;;  %v2739_v41 = vmax.f32 %v5372_v11, 0.0  ;;  %v6291_v2 = vld [vmem:[#allocation7 + $0x32c] ss:$16 sps:$4 sm:$0xff]  }
 0x243   :  { %v5343_v26 = vadd.f32 %v2220_v24, %v6626_v36  ;;  %v5375_v27 = vadd.f32 %v2672_v25, %v6630_v37  ;;  %3717 = vmatpush1.bf16.msra.mxu0 %v6268_v8  ;;  %3943 = vmatpush1.bf16.msra.mxu1 %v6271_v9  ;;  %v2738_v47 = vmax.f32 %v5341_v16, 0.0  ;;  %v2740_v48 = vmax.f32 %v5373_v17, 0.0  ;;  %v6289_v16 = vld [vmem:[#allocation7 + $0x328] ss:$16 sps:$4 sm:$0xff]   ;;  %v6294_v17 = vld [vmem:[#allocation7 + $0x344] ss:$16 sps:$4 sm:$0xff]  }
 0x244   :  { %v2741_v42 = vmax.f32 %v5342_v22, 0.0  ;;  %v2743_v43 = vmax.f32 %v5374_v23, 0.0  ;;  %3718 = vmatprep.subr.bf16.mxu0 %v6276_v14  ;;  %3944 = vmatprep.subr.bf16.mxu1 %v6279_v15  ;;  %v6286_v15 = vld [vmem:[#allocation7 + $0x320] ss:$16 sps:$4 sm:$0xff]   ;;  %v6297_v24 = vld [vmem:[#allocation7 + $0x34c] ss:$16 sps:$4 sm:$0xff]  }
 0x245   :  { %v2742_v49 = vmax.f32 %v5343_v26, 0.0  ;;  %v2744_v50 = vmax.f32 %v5375_v27, 0.0 }
 0x246   :  { %v2785_v51 = vpack.c.bf16 %v2741_v42, %v2737_v40  ;;  %v6688_v52 = vpack.c.bf16 %v2743_v43, %v2739_v41 }
 0x247   :  { %v2786_v53 = vpack.c.bf16 %v2742_v49, %v2738_v47  ;;  %v6690_v54 = vpack.c.bf16 %v2744_v50, %v2740_v48  ;;  %v2224_v55 = vpop.f32.mrb[20].mxu0  ;;  %v2676_v56 = vpop.f32.mrb[20].mxu1  ;;  %3719 = vmatpush1.bf16.msra.mxu0 %v6274_v31  ;;  %3945 = vmatpush1.bf16.msra.mxu1 %v6277_v38  ;;  %v6295_v47 = vld [vmem:[#allocation7 + $0x348] ss:$16 sps:$4 sm:$0xff]  }
 0x248   :  { %v5344_v59 = vadd.f32 %v2224_v55, %v6618_v34  ;;  %v5376_v60 = vadd.f32 %v2676_v56, %v6622_v35  ;;  %v2226_v61 = vpop.f32.mrb[21].mxu0  ;;  %v2678_v62 = vpop.f32.mrb[21].mxu1  ;;  %3720 = vmatprep.subr.bf16.mxu0 %v6282_v39  ;;  %3946 = vmatprep.subr.bf16.mxu1 %v6285_v45  ;;  %v6292_v45 = vld [vmem:[#allocation7 + $0x340] ss:$16 sps:$4 sm:$0xff]   ;;  %v6303_v55 = vld [vmem:[#allocation7 + $0x36c] ss:$16 sps:$4 sm:$0xff]  }
 0x249   :  { %v5345_v4 = vadd.f32 %v2226_v61, %v6626_v36  ;;  %v5377_v6 = vadd.f32 %v2678_v62, %v6630_v37  ;;  %v2228_v7 = vpop.f32.mrb[22].mxu0  ;;  %v2680_v8 = vpop.f32.mrb[22].mxu1  ;;  %3663 = vmatprep.mubr.bf16.mxu0 %v2786_v53  ;;  %3889 = vmatprep.mubr.bf16.mxu1 %v2786_v53  ;;  %v6300_v53 = vld [vmem:[#allocation7 + $0x364] ss:$16 sps:$4 sm:$0xff]  }
 0x24a   :  { %v5346_v9 = vadd.f32 %v2228_v7, %v6618_v34  ;;  %v5378_v10 = vadd.f32 %v2680_v8, %v6622_v35  ;;  %v2230_v11 = vpop.f32.mrb[23].mxu0  ;;  %v2682_v12 = vpop.f32.mrb[23].mxu1  ;;  %3664 = vmatmul.mubr.bf16.gmra.mrb[48].mxu0 %v2785_v51  ;;  %3890 = vmatmul.mubr.bf16.gmra.mrb[48].mxu1 %v2785_v51  ;;  %v2745_v20 = vmax.f32 %v5344_v59, 0.0  ;;  %v2747_v18 = vmax.f32 %v5376_v60, 0.0  ;;  %v6301_v7 = vld [vmem:[#allocation7 + $0x368] ss:$16 sps:$4 sm:$0xff]  }
 0x24b   :  { %v5347_v13 = vadd.f32 %v2230_v11, %v6626_v36  ;;  %v5379_v14 = vadd.f32 %v2682_v12, %v6630_v37  ;;  %3721 = vmatpush1.bf16.msra.mxu0 %v6280_v57  ;;  %3947 = vmatpush1.bf16.msra.mxu1 %v6283_v58  ;;  %v2746_v25 = vmax.f32 %v5345_v4, 0.0  ;;  %v2748_v26 = vmax.f32 %v5377_v6, 0.0  ;;  %v6298_v6 = vld [vmem:[#allocation7 + $0x360] ss:$16 sps:$4 sm:$0xff]   ;;  %v6306_v8 = vld [vmem:[#allocation7 + $0x384] ss:$16 sps:$4 sm:$0xff]  }
 0x24c   :  { %v2749_v22 = vmax.f32 %v5346_v9, 0.0  ;;  %v2751_v23 = vmax.f32 %v5378_v10, 0.0  ;;  %3722 = vmatprep.subr.bf16.mxu0 %v6288_v0  ;;  %3948 = vmatprep.subr.bf16.mxu1 %v6291_v2 }
 0x24d   :  { %v2750_v27 = vmax.f32 %v5347_v13, 0.0  ;;  %v2752_v31 = vmax.f32 %v5379_v14, 0.0  ;;  %v6309_v13 = vld [vmem:[#allocation7 + $0x38c] ss:$16 sps:$4 sm:$0xff]  }
 0x24e   :  { %v2789_v38 = vpack.c.bf16 %v2749_v22, %v2745_v20  ;;  %v6700_v39 = vpack.c.bf16 %v2751_v23, %v2747_v18 }
 0x24f   :  { %v2790_v40 = vpack.c.bf16 %v2750_v27, %v2746_v25  ;;  %v6702_v41 = vpack.c.bf16 %v2752_v31, %v2748_v26  ;;  %v2234_v42 = vpop.f32.mrb[24].mxu0  ;;  %v2686_v43 = vpop.f32.mrb[24].mxu1  ;;  %3723 = vmatpush1.bf16.msra.mxu0 %v6286_v15  ;;  %3949 = vmatpush1.bf16.msra.mxu1 %v6289_v16  ;;  %v6304_v26 = vld [vmem:[#allocation7 + $0x380] ss:$16 sps:$4 sm:$0xff]   ;;  %v6307_v27 = vld [vmem:[#allocation7 + $0x388] ss:$16 sps:$4 sm:$0xff]  }
 0x250   :  { %v5348_v48 = vadd.f32 %v2234_v42, %v6618_v34  ;;  %v5380_v49 = vadd.f32 %v2686_v43, %v6622_v35  ;;  %v2236_v50 = vpop.f32.mrb[25].mxu0  ;;  %v2688_v51 = vpop.f32.mrb[25].mxu1  ;;  %3724 = vmatprep.subr.bf16.mxu0 %v6294_v17  ;;  %3950 = vmatprep.subr.bf16.mxu1 %v6297_v24  ;;  %v6312_v43 = vld [vmem:[#allocation7 + $0x3a4] ss:$16 sps:$4 sm:$0xff]  }
 0x251   :  { %v5349_v56 = vadd.f32 %v2236_v50, %v6626_v36  ;;  %v5381_v57 = vadd.f32 %v2688_v51, %v6630_v37  ;;  %v2238_v58 = vpop.f32.mrb[26].mxu0  ;;  %v2690_v59 = vpop.f32.mrb[26].mxu1  ;;  %3673 = vmatprep.mubr.bf16.mxu0 %v2790_v40  ;;  %3899 = vmatprep.mubr.bf16.mxu1 %v2790_v40 }
 0x252   :  { %v5350_v60 = vadd.f32 %v2238_v58, %v6618_v34  ;;  %v5382_v61 = vadd.f32 %v2690_v59, %v6622_v35  ;;  %v2240_v62 = vpop.f32.mrb[27].mxu0  ;;  %v2692_v0 = vpop.f32.mrb[27].mxu1  ;;  %3674 = vmatmul.mubr.bf16.gmra.mrb[52].mxu0 %v2789_v38  ;;  %3900 = vmatmul.mubr.bf16.gmra.mrb[52].mxu1 %v2789_v38  ;;  %v2753_v9 = vmax.f32 %v5348_v48, 0.0  ;;  %v2755_v10 = vmax.f32 %v5380_v49, 0.0  ;;  %v6310_v59 = vld [vmem:[#allocation7 + $0x3a0] ss:$16 sps:$4 sm:$0xff]  }
 0x253   :  { %v5351_v2 = vadd.f32 %v2240_v62, %v6626_v36  ;;  %v5383_v4 = vadd.f32 %v2692_v0, %v6630_v37  ;;  %3725 = vmatpush1.bf16.msra.mxu0 %v6292_v45  ;;  %3951 = vmatpush1.bf16.msra.mxu1 %v6295_v47  ;;  %v2754_v14 = vmax.f32 %v5349_v56, 0.0  ;;  %v2756_v15 = vmax.f32 %v5381_v57, 0.0  ;;  %v6315_v45 = vld [vmem:[#allocation7 + $0x3ac] ss:$16 sps:$4 sm:$0xff]  }
 0x254   :  { %v2757_v11 = vmax.f32 %v5350_v60, 0.0  ;;  %v2759_v12 = vmax.f32 %v5382_v61, 0.0  ;;  %3726 = vmatprep.subr.bf16.mxu0 %v6300_v53  ;;  %3952 = vmatprep.subr.bf16.mxu1 %v6303_v55  ;;  %v6313_v60 = vld [vmem:[#allocation7 + $0x3a8] ss:$16 sps:$4 sm:$0xff]   ;;  %v6318_v61 = vld [vmem:[#allocation7 + $0x3c4] ss:$16 sps:$4 sm:$0xff]  }
 0x255   :  { %v2758_v16 = vmax.f32 %v5351_v2, 0.0  ;;  %v2760_v17 = vmax.f32 %v5383_v4, 0.0 }
 0x256   :  { %v2793_v20 = vpack.c.bf16 %v2757_v11, %v2753_v9  ;;  %v6712_v18 = vpack.c.bf16 %v2759_v12, %v2755_v10  ;;  %v6316_v11 = vld [vmem:[#allocation7 + $0x3c0] ss:$16 sps:$4 sm:$0xff]   ;;  %v6319_v12 = vld [vmem:[#allocation7 + $0x3c8] ss:$16 sps:$4 sm:$0xff]  }
 0x257   :  { %v2794_v22 = vpack.c.bf16 %v2758_v16, %v2754_v14  ;;  %v6714_v23 = vpack.c.bf16 %v2760_v17, %v2756_v15  ;;  %v2244_v24 = vpop.f32.mrb[28].mxu0  ;;  %v2696_v25 = vpop.f32.mrb[28].mxu1  ;;  %3727 = vmatpush1.bf16.msra.mxu0 %v6298_v6  ;;  %3953 = vmatpush1.bf16.msra.mxu1 %v6301_v7  ;;  %v6327_v14 = vld [vmem:[#allocation7 + $0x3ec] ss:$16 sps:$4 sm:$0xff]   ;;  %v6322_v15 = vld [vmem:[#allocation7 + $0x3e0] ss:$16 sps:$4 sm:$0xff]  }
 0x258   :  { %v5352_v31 = vadd.f32 %v2244_v24, %v6618_v34  ;;  %v5384_v38 = vadd.f32 %v2696_v25, %v6622_v35  ;;  %v2246_v40 = vpop.f32.mrb[29].mxu0  ;;  %v2698_v42 = vpop.f32.mrb[29].mxu1  ;;  %3728 = vmatprep.subr.bf16.mxu0 %v6306_v8  ;;  %3954 = vmatprep.subr.bf16.mxu1 %v6309_v13  ;;  %v6324_v13 = vld [vmem:[#allocation7 + $0x3e4] ss:$16 sps:$4 sm:$0xff]   ;;  %v6325_v16 = vld [vmem:[#allocation7 + $0x3e8] ss:$16 sps:$4 sm:$0xff]  }
 0x259   :  { %v5353_v47 = vadd.f32 %v2246_v40, %v6626_v36  ;;  %v5385_v48 = vadd.f32 %v2698_v42, %v6630_v37  ;;  %v2248_v49 = vpop.f32.mrb[30].mxu0  ;;  %v2700_v50 = vpop.f32.mrb[30].mxu1  ;;  %3683 = vmatprep.mubr.bf16.mxu0 %v2794_v22  ;;  %3909 = vmatprep.mubr.bf16.mxu1 %v2794_v22  ;;  %v6328_v17 = vld [vmem:[#allocation8 + $0x40] sm:$0xff]   ;;  %v6332_v25 = vld [vmem:[#allocation8 + $0x48] sm:$0xff]   ;;  %v6337_v40 = vld [vmem:[#allocation8 + $0x10] sm:$0xff]  }
 0x25a   :  { %v5354_v51 = vadd.f32 %v2248_v49, %v6618_v34  ;;  %v5386_v53 = vadd.f32 %v2700_v50, %v6622_v35  ;;  %v2250_v55 = vpop.f32.mrb[31].mxu0  ;;  %v2702_v56 = vpop.f32.mrb[31].mxu1  ;;  %3684 = vmatmul.mubr.bf16.gmra.mrb[56].mxu0 %v2793_v20  ;;  %3910 = vmatmul.mubr.bf16.gmra.mrb[56].mxu1 %v2793_v20  ;;  %v2761_v62 = vmax.f32 %v5352_v31, 0.0  ;;  %v2763_v0 = vmax.f32 %v5384_v38, 0.0  ;;  %v6321_v34 = vld [vmem:[#allocation7 + $0x3cc] ss:$16 sps:$4 sm:$0xff]  }
 0x25b   :  { %v5355_v57 = vadd.f32 %v2250_v55, %v6626_v36  ;;  %v5387_v58 = vadd.f32 %v2702_v56, %v6630_v37  ;;  %3729 = vmatpush1.bf16.msra.mxu0 %v6304_v26  ;;  %3955 = vmatpush1.bf16.msra.mxu1 %v6307_v27  ;;  %v2762_v35 = vmax.f32 %v5353_v47, 0.0  ;;  %v2764_v6 = vmax.f32 %v5385_v48, 0.0  ;;  %v6330_v20 = vld [vmem:[#allocation8 + $0xc0] sm:$0xff]   ;;  %v6334_v26 = vld [vmem:[#allocation8 + $0xc8] sm:$0xff]   ;;  %v6336_v31 = vld [vmem:[#allocation8 + $0x50] sm:$0xff]  }
 0x25c   :  { %v2765_v2 = vmax.f32 %v5354_v51, 0.0  ;;  %v2767_v4 = vmax.f32 %v5386_v53, 0.0  ;;  %3730 = vmatprep.subr.bf16.mxu0 %v6312_v43  ;;  %3956 = vmatprep.subr.bf16.mxu1 %v6315_v45  ;;  %v6329_v22 = vld [vmem:[#allocation8] sm:$0xff]   ;;  %v6335_v27 = vld [vmem:[#allocation8 + $0x88] sm:$0xff]   ;;  %v6338_v38 = vld [vmem:[#allocation8 + $0xd0] sm:$0xff]  }
 0x25d   :  { %v2766_v7 = vmax.f32 %v5355_v57, 0.0  ;;  %v2768_v8 = vmax.f32 %v5387_v58, 0.0  ;;  %v6331_v24 = vld [vmem:[#allocation8 + $0x80] sm:$0xff]   ;;  %v6339_v42 = vld [vmem:[#allocation8 + $0x90] sm:$0xff]   ;;  %v6340_v43 = vld [vmem:[#allocation8 + $0x58] sm:$0xff]  }
 0x25e   :  { %v2797_v9 = vpack.c.bf16 %v2765_v2, %v2761_v62  ;;  %v6724_v36 = vpack.c.bf16 %v2767_v4, %v2763_v0  ;;  %v6343_v45 = vld [vmem:[#allocation8 + $0x98] sm:$0xff]   ;;  %v6344_v47 = vld [vmem:[#allocation8 + $0x60] sm:$0xff]   ;;  %v6348_v51 = vld [vmem:[#allocation8 + $0x68] sm:$0xff]  }
 0x25f   :  { %v2798_v37 = vpack.c.bf16 %v2766_v7, %v2762_v35  ;;  %v6726_v10 = vpack.c.bf16 %v2768_v8, %v2764_v6  ;;  %3731 = vmatpush1.bf16.msra.mxu0 %v6310_v59  ;;  %3957 = vmatpush1.bf16.msra.mxu1 %v6313_v60  ;;  %v6346_v48 = vld [vmem:[#allocation8 + $0xe0] sm:$0xff]   ;;  %v6351_v53 = vld [vmem:[#allocation8 + $0xa8] sm:$0xff]   ;;  %v6352_v55 = vld [vmem:[#allocation8 + $0x70] sm:$0xff]  }
 0x260   :  { %3732 = vmatprep.subr.bf16.mxu0 %v6318_v61  ;;  %3958 = vmatprep.subr.bf16.mxu1 %v6321_v34  ;;  %v6345_v49 = vld [vmem:[#allocation8 + $0x20] sm:$0xff]   ;;  %v6354_v56 = vld [vmem:[#allocation8 + $0xf0] sm:$0xff]  }
 0x261   :  { %3693 = vmatprep.mubr.bf16.mxu0 %v2798_v37  ;;  %3919 = vmatprep.mubr.bf16.mxu1 %v2798_v37  ;;  %v6347_v50 = vld [vmem:[#allocation8 + $0xa0] sm:$0xff]   ;;  %v6353_v57 = vld [vmem:[#allocation8 + $0x30] sm:$0xff]  }
 0x262   :  { %3694 = vmatmul.mubr.bf16.gmra.mrb[60].mxu0 %v2797_v9  ;;  %3920 = vmatmul.mubr.bf16.gmra.mrb[60].mxu1 %v2797_v9  ;;  %v6355_v58 = vld [vmem:[#allocation8 + $0xb0] sm:$0xff]  }
 0x263   :  { %3733 = vmatpush1.bf16.msra.mxu0 %v6316_v11  ;;  %3736 = vmatprep.mubr.bf16.mxu0 %v6642_v1 }
 0x264   :  { %3959 = vmatpush1.bf16.msra.mxu1 %v6319_v12  ;;  %3962 = vmatprep.mubr.bf16.mxu1 %v6642_v1  ;;  %v6333_v1 = vld [vmem:[#allocation8 + $0x8] sm:$0xff]  }
 0x265   :  { %3734 = vmatprep.subr.bf16.mxu0 %v6324_v13  ;;  %3960 = vmatprep.subr.bf16.mxu1 %v6327_v14 }
 0x267   :  { %3735 = vmatpush1.bf16.msra.mxu0 %v6322_v15 }
 0x268   :  { %3961 = vmatpush1.bf16.msra.mxu1 %v6325_v16  ;;  %5196 = vmatprep.subr.bf16.mxu0 %v6328_v17 }
 0x269   :  { %5260 = vmatprep.subr.bf16.mxu1 %v6330_v20 }
 0x26a   :  { %3737 = vmatmul.mubr.bf16.vlgmr.msra.gmra.mrb[32].mxu0 %v6640_v63 }
 0x26b   :  { %3963 = vmatmul.mubr.bf16.vlgmr.msra.gmra.mrb[32].mxu1 %v6640_v63  ;;  %3746 = vmatprep.mubr.bf16.mxu0 %v6654_v46  ;;  %v6342_v63 = vld [vmem:[#allocation8 + $0xd8] sm:$0xff]  }
 0x26c   :  { %3972 = vmatprep.mubr.bf16.mxu1 %v6654_v46  ;;  %5197 = vmatpush3.bf16.msra.mxu0 %v6329_v22  ;;  %v6341_v46 = vld [vmem:[#allocation8 + $0x18] sm:$0xff]  }
 0x26d   :  { %5261 = vmatpush3.bf16.msra.mxu1 %v6331_v24  ;;  %5198 = vmatprep.subr.bf16.mxu0 %v6332_v25 }
 0x26e   :  { %5262 = vmatprep.subr.bf16.mxu1 %v6334_v26 }
 0x270   :  { %5199 = vmatpush3.bf16.msra.mxu0 %v6333_v1 }
 0x271   :  { %5263 = vmatpush3.bf16.msra.mxu1 %v6335_v27  ;;  %5200 = vmatprep.subr.bf16.mxu0 %v6336_v31 }
 0x272   :  { %3747 = vmatmul.mubr.bf16.gmra.mrb[36].mxu0 %v6652_v44  ;;  %5264 = vmatprep.subr.bf16.mxu1 %v6338_v38 }
 0x273   :  { %3973 = vmatmul.mubr.bf16.gmra.mrb[36].mxu1 %v6652_v44  ;;  %3756 = vmatprep.mubr.bf16.mxu0 %v6666_v21  ;;  %v6350_v44 = vld [vmem:[#allocation8 + $0xe8] sm:$0xff]  }
 0x274   :  { %3982 = vmatprep.mubr.bf16.mxu1 %v6666_v21  ;;  %5201 = vmatpush3.bf16.msra.mxu0 %v6337_v40  ;;  %v6349_v21 = vld [vmem:[#allocation8 + $0x28] sm:$0xff]  }
 0x275   :  { %5265 = vmatpush3.bf16.msra.mxu1 %v6339_v42  ;;  %5202 = vmatprep.subr.bf16.mxu0 %v6340_v43 }
 0x276   :  { %5266 = vmatprep.subr.bf16.mxu1 %v6342_v63 }
 0x278   :  { %5203 = vmatpush3.bf16.msra.mxu0 %v6341_v46 }
 0x279   :  { %5267 = vmatpush3.bf16.msra.mxu1 %v6343_v45  ;;  %5204 = vmatprep.subr.bf16.mxu0 %v6344_v47 }
 0x27a   :  { %3757 = vmatmul.mubr.bf16.gmra.mrb[40].mxu0 %v6664_v19  ;;  %5268 = vmatprep.subr.bf16.mxu1 %v6346_v48 }
 0x27b   :  { %3983 = vmatmul.mubr.bf16.gmra.mrb[40].mxu1 %v6664_v19  ;;  %3766 = vmatprep.mubr.bf16.mxu0 %v6678_v5  ;;  %v6356_v19 = vld [vmem:[#allocation8 + $0x78] sm:$0xff]  }
 0x27c   :  { %3992 = vmatprep.mubr.bf16.mxu1 %v6678_v5  ;;  %5205 = vmatpush3.bf16.msra.mxu0 %v6345_v49  ;;  %v6357_v5 = vld [vmem:[#allocation8 + $0x38] sm:$0xff]  }
 0x27d   :  { %5269 = vmatpush3.bf16.msra.mxu1 %v6347_v50  ;;  %5206 = vmatprep.subr.bf16.mxu0 %v6348_v51 }
 0x27e   :  { %5270 = vmatprep.subr.bf16.mxu1 %v6350_v44 }
 0x280   :  { %5207 = vmatpush3.bf16.msra.mxu0 %v6349_v21 }
 0x281   :  { %5271 = vmatpush3.bf16.msra.mxu1 %v6351_v53  ;;  %5208 = vmatprep.subr.bf16.mxu0 %v6352_v55 }
 0x282   :  { %3767 = vmatmul.mubr.bf16.gmra.mrb[44].mxu0 %v6676_v3  ;;  %5272 = vmatprep.subr.bf16.mxu1 %v6354_v56 }
 0x283   :  { %3993 = vmatmul.mubr.bf16.gmra.mrb[44].mxu1 %v6676_v3  ;;  %3776 = vmatprep.mubr.bf16.mxu0 %v6690_v54  ;;  %v6358_v3 = vld [vmem:[#allocation8 + $0xf8] sm:$0xff]  }
 0x284   :  { %4002 = vmatprep.mubr.bf16.mxu1 %v6690_v54  ;;  %5209 = vmatpush3.bf16.msra.mxu0 %v6353_v57  ;;  %v2929_v54 = vld [vmem:[%s6987_s4] sm:$0xf] }
 0x285   :  { %5273 = vmatpush3.bf16.msra.mxu1 %v6355_v58  ;;  %5210 = vmatprep.subr.bf16.mxu0 %v6356_v19 }
 0x286   :  { %5274 = vmatprep.subr.bf16.mxu1 %v6358_v3 }
 0x288   :  { %5211 = vmatpush3.bf16.msra.mxu0 %v6357_v5 }
 0x28a   :  { %3777 = vmatmul.mubr.bf16.gmra.mrb[48].mxu0 %v6688_v52 }
 0x28b   :  { %4003 = vmatmul.mubr.bf16.gmra.mrb[48].mxu1 %v6688_v52  ;;  %3786 = vmatprep.mubr.bf16.mxu0 %v6702_v41  ;;  %v6359_v52 = vld [vmem:[#allocation8 + $0xb8] sm:$0xff]  }
 0x28c   :  { %4012 = vmatprep.mubr.bf16.mxu1 %v6702_v41  ;;  %5275 = vmatpush3.bf16.msra.mxu1 %v6359_v52  ;;  %v6769_v41 = vrot.slane %v2929_v54, %v383_v30 }
 0x292   :  { %3787 = vmatmul.mubr.bf16.gmra.mrb[52].mxu0 %v6700_v39 }
 0x293   :  { %4013 = vmatmul.mubr.bf16.gmra.mrb[52].mxu1 %v6700_v39  ;;  %3796 = vmatprep.mubr.bf16.mxu0 %v6714_v23  ;;  %v6765_v39 = vrot.slane %v2929_v54, %v375_v29 }
 0x294   :  { %4022 = vmatprep.mubr.bf16.mxu1 %v6714_v23  ;;  %v6777_v23 = vrot.slane %v2929_v54, %v387_v33 }
 0x29a   :  { %3797 = vmatmul.mubr.bf16.gmra.mrb[56].mxu0 %v6712_v18 }
 0x29b   :  { %4023 = vmatmul.mubr.bf16.gmra.mrb[56].mxu1 %v6712_v18  ;;  %3806 = vmatprep.mubr.bf16.mxu0 %v6726_v10  ;;  %v6773_v18 = vrot.slane %v2929_v54, %v379_v32 }
 0x29c   :  { %4032 = vmatprep.mubr.bf16.mxu1 %v6726_v10 }
 0x2a2   :  { %3807 = vmatmul.mubr.bf16.gmra.mrb[60].mxu0 %v6724_v36 }
 0x2a3   :  { %4033 = vmatmul.mubr.bf16.gmra.mrb[60].mxu1 %v6724_v36 }
 0x33d   :  { %v3738_v59 = vpop.f32.mrb[32].mxu0 }
 0x33e   :  { %v5388_v60 = vadd.f32 %v3738_v59, %v6765_v39  ;;  %v3964_v61 = vpop.f32.mrb[32].mxu1  ;;  %v3740_v62 = vpop.f32.mrb[33].mxu0 }
 0x33f   :  { %v5420_v29 = vadd.f32 %v3964_v61, %v6769_v41  ;;  %v5389_v0 = vadd.f32 %v3740_v62, %v6773_v18  ;;  %v3966_v2 = vpop.f32.mrb[33].mxu1  ;;  %v3742_v30 = vpop.f32.mrb[34].mxu0 }
 0x340   :  { %v5421_v4 = vadd.f32 %v3966_v2, %v6777_v23  ;;  %v5390_v32 = vadd.f32 %v3742_v30, %v6765_v39  ;;  %v3968_v34 = vpop.f32.mrb[34].mxu1  ;;  %v3744_v35 = vpop.f32.mrb[35].mxu0  ;;  %v4043_v8 = vmax.f32 %v5388_v60, 0.0 }
 0x341   :  { %v5422_v33 = vadd.f32 %v3968_v34, %v6769_v41  ;;  %v5391_v6 = vadd.f32 %v3744_v35, %v6773_v18  ;;  %v3970_v7 = vpop.f32.mrb[35].mxu1  ;;  %v4045_v37 = vmax.f32 %v5420_v29, 0.0  ;;  %v4044_v10 = vmax.f32 %v5389_v0, 0.0 }
 0x342   :  { %v4047_v9 = vmax.f32 %v5390_v32, 0.0  ;;  %v5423_v36 = vadd.f32 %v3970_v7, %v6777_v23  ;;  %v4046_v13 = vmax.f32 %v5421_v4, 0.0 }
 0x343   :  { %v4049_v11 = vmax.f32 %v5422_v33, 0.0  ;;  %v4048_v12 = vmax.f32 %v5391_v6, 0.0 }
 0x344   :  { %v4107_v14 = vpack.c.bf16 %v4047_v9, %v4043_v8  ;;  %v4050_v15 = vmax.f32 %v5423_v36, 0.0 }
 0x345   :  { %v4109_v16 = vpack.c.bf16 %v4049_v11, %v4045_v37  ;;  %v4108_v17 = vpack.c.bf16 %v4048_v12, %v4044_v10  ;;  %v3748_v20 = vpop.f32.mrb[36].mxu0 }
 0x346   :  { %v4110_v22 = vpack.c.bf16 %v4050_v15, %v4046_v13  ;;  %v5392_v24 = vadd.f32 %v3748_v20, %v6765_v39  ;;  %v3974_v25 = vpop.f32.mrb[36].mxu1  ;;  %v3750_v26 = vpop.f32.mrb[37].mxu0 }
 0x347   :  { %v5424_v1 = vadd.f32 %v3974_v25, %v6769_v41  ;;  %v5393_v27 = vadd.f32 %v3750_v26, %v6773_v18  ;;  %v3976_v31 = vpop.f32.mrb[37].mxu1  ;;  %v3752_v38 = vpop.f32.mrb[38].mxu0  ;;  %4434 = vmatprep.mubr.bf16.mxu0 %v4108_v17 }
 0x348   :  { %v5425_v40 = vadd.f32 %v3976_v31, %v6777_v23  ;;  %v5394_v42 = vadd.f32 %v3752_v38, %v6765_v39  ;;  %v3978_v43 = vpop.f32.mrb[38].mxu1  ;;  %4531 = vmatprep.mubr.bf16.mxu1 %v4110_v22  ;;  %v3754_v63 = vpop.f32.mrb[39].mxu0  ;;  %4435 = vmatmul.mubr.bf16.vlgmr.msra.gmra.mrb[64].mxu0 %v4107_v14  ;;  %v4051_v48 = vmax.f32 %v5392_v24, 0.0 }
 0x349   :  { %v5426_v46 = vadd.f32 %v3978_v43, %v6769_v41  ;;  %v5395_v45 = vadd.f32 %v3754_v63, %v6773_v18  ;;  %v3980_v47 = vpop.f32.mrb[39].mxu1  ;;  %4532 = vmatmul.mubr.bf16.vlgmr.msra.gmra.mrb[64].mxu1 %v4109_v16  ;;  %v4053_v51 = vmax.f32 %v5424_v1, 0.0  ;;  %v4052_v44 = vmax.f32 %v5393_v27, 0.0 }
 0x34a   :  { %v4055_v49 = vmax.f32 %v5394_v42, 0.0  ;;  %v5427_v50 = vadd.f32 %v3980_v47, %v6777_v23  ;;  %v4054_v55 = vmax.f32 %v5425_v40, 0.0 }
 0x34b   :  { %v4057_v21 = vmax.f32 %v5426_v46, 0.0  ;;  %v4056_v53 = vmax.f32 %v5395_v45, 0.0 }
 0x34c   :  { %v4111_v56 = vpack.c.bf16 %v4055_v49, %v4051_v48  ;;  %v4058_v57 = vmax.f32 %v5427_v50, 0.0 }
 0x34d   :  { %v4113_v58 = vpack.c.bf16 %v4057_v21, %v4053_v51  ;;  %v4112_v19 = vpack.c.bf16 %v4056_v53, %v4052_v44  ;;  %v3758_v3 = vpop.f32.mrb[40].mxu0 }
 0x34e   :  { %v4114_v5 = vpack.c.bf16 %v4058_v57, %v4054_v55  ;;  %v5396_v52 = vadd.f32 %v3758_v3, %v6765_v39  ;;  %v3984_v54 = vpop.f32.mrb[40].mxu1  ;;  %v3760_v59 = vpop.f32.mrb[41].mxu0 }
 0x34f   :  { %v5428_v60 = vadd.f32 %v3984_v54, %v6769_v41  ;;  %v5397_v61 = vadd.f32 %v3760_v59, %v6773_v18  ;;  %v3986_v62 = vpop.f32.mrb[41].mxu1  ;;  %v3762_v29 = vpop.f32.mrb[42].mxu0  ;;  %4442 = vmatprep.mubr.bf16.mxu0 %v4112_v19 }
 0x350   :  { %v5429_v0 = vadd.f32 %v3986_v62, %v6777_v23  ;;  %v5398_v2 = vadd.f32 %v3762_v29, %v6765_v39  ;;  %v3988_v30 = vpop.f32.mrb[42].mxu1  ;;  %4539 = vmatprep.mubr.bf16.mxu1 %v4114_v5  ;;  %v3764_v4 = vpop.f32.mrb[43].mxu0  ;;  %4443 = vmatmul.mubr.bf16.gmra.mrb[68].mxu0 %v4111_v56  ;;  %v4059_v33 = vmax.f32 %v5396_v52, 0.0 }
 0x351   :  { %v5430_v32 = vadd.f32 %v3988_v30, %v6769_v41  ;;  %v5399_v34 = vadd.f32 %v3764_v4, %v6773_v18  ;;  %v3990_v35 = vpop.f32.mrb[43].mxu1  ;;  %4540 = vmatmul.mubr.bf16.gmra.mrb[68].mxu1 %v4113_v58  ;;  %v4061_v8 = vmax.f32 %v5428_v60, 0.0  ;;  %v4060_v9 = vmax.f32 %v5397_v61, 0.0 }
 0x352   :  { %v4063_v6 = vmax.f32 %v5398_v2, 0.0  ;;  %v5431_v7 = vadd.f32 %v3990_v35, %v6777_v23  ;;  %v4062_v10 = vmax.f32 %v5429_v0, 0.0 }
 0x353   :  { %v4065_v36 = vmax.f32 %v5430_v32, 0.0  ;;  %v4064_v37 = vmax.f32 %v5399_v34, 0.0 }
 0x354   :  { %v4115_v11 = vpack.c.bf16 %v4063_v6, %v4059_v33  ;;  %v4066_v12 = vmax.f32 %v5431_v7, 0.0 }
 0x355   :  { %v4117_v13 = vpack.c.bf16 %v4065_v36, %v4061_v8  ;;  %v4116_v14 = vpack.c.bf16 %v4064_v37, %v4060_v9  ;;  %v3768_v15 = vpop.f32.mrb[44].mxu0 }
 0x356   :  { %v4118_v16 = vpack.c.bf16 %v4066_v12, %v4062_v10  ;;  %v5400_v17 = vadd.f32 %v3768_v15, %v6765_v39  ;;  %v3994_v20 = vpop.f32.mrb[44].mxu1  ;;  %v3770_v22 = vpop.f32.mrb[45].mxu0 }
 0x357   :  { %v5432_v24 = vadd.f32 %v3994_v20, %v6769_v41  ;;  %v5401_v25 = vadd.f32 %v3770_v22, %v6773_v18  ;;  %v3996_v26 = vpop.f32.mrb[45].mxu1  ;;  %v3772_v1 = vpop.f32.mrb[46].mxu0  ;;  %4450 = vmatprep.mubr.bf16.mxu0 %v4116_v14 }
 0x358   :  { %v5433_v27 = vadd.f32 %v3996_v26, %v6777_v23  ;;  %v5402_v31 = vadd.f32 %v3772_v1, %v6765_v39  ;;  %v3998_v38 = vpop.f32.mrb[46].mxu1  ;;  %4547 = vmatprep.mubr.bf16.mxu1 %v4118_v16  ;;  %v3774_v40 = vpop.f32.mrb[47].mxu0  ;;  %4451 = vmatmul.mubr.bf16.gmra.mrb[72].mxu0 %v4115_v11  ;;  %v4067_v46 = vmax.f32 %v5400_v17, 0.0 }
 0x359   :  { %v5434_v42 = vadd.f32 %v3998_v38, %v6769_v41  ;;  %v5403_v43 = vadd.f32 %v3774_v40, %v6773_v18  ;;  %v4000_v63 = vpop.f32.mrb[47].mxu1  ;;  %4548 = vmatmul.mubr.bf16.gmra.mrb[72].mxu1 %v4117_v13  ;;  %v4069_v48 = vmax.f32 %v5432_v24, 0.0  ;;  %v4068_v49 = vmax.f32 %v5401_v25, 0.0 }
 0x35a   :  { %v4071_v45 = vmax.f32 %v5402_v31, 0.0  ;;  %v5435_v47 = vadd.f32 %v4000_v63, %v6777_v23  ;;  %v4070_v44 = vmax.f32 %v5433_v27, 0.0 }
 0x35b   :  { %v4073_v50 = vmax.f32 %v5434_v42, 0.0  ;;  %v4072_v51 = vmax.f32 %v5403_v43, 0.0 }
 0x35c   :  { %v4119_v21 = vpack.c.bf16 %v4071_v45, %v4067_v46  ;;  %v4074_v53 = vmax.f32 %v5435_v47, 0.0 }
 0x35d   :  { %v4121_v55 = vpack.c.bf16 %v4073_v50, %v4069_v48  ;;  %v4120_v56 = vpack.c.bf16 %v4072_v51, %v4068_v49  ;;  %v3778_v57 = vpop.f32.mrb[48].mxu0 }
 0x35e   :  { %v4122_v58 = vpack.c.bf16 %v4074_v53, %v4070_v44  ;;  %v5404_v19 = vadd.f32 %v3778_v57, %v6765_v39  ;;  %v4004_v3 = vpop.f32.mrb[48].mxu1  ;;  %v3780_v5 = vpop.f32.mrb[49].mxu0 }
 0x35f   :  { %v5436_v52 = vadd.f32 %v4004_v3, %v6769_v41  ;;  %v5405_v54 = vadd.f32 %v3780_v5, %v6773_v18  ;;  %v4006_v59 = vpop.f32.mrb[49].mxu1  ;;  %v3782_v60 = vpop.f32.mrb[50].mxu0  ;;  %4458 = vmatprep.mubr.bf16.mxu0 %v4120_v56 }
 0x360   :  { %v5437_v61 = vadd.f32 %v4006_v59, %v6777_v23  ;;  %v5406_v62 = vadd.f32 %v3782_v60, %v6765_v39  ;;  %v4008_v29 = vpop.f32.mrb[50].mxu1  ;;  %4555 = vmatprep.mubr.bf16.mxu1 %v4122_v58  ;;  %v3784_v0 = vpop.f32.mrb[51].mxu0  ;;  %4459 = vmatmul.mubr.bf16.gmra.mrb[76].mxu0 %v4119_v21  ;;  %v4075_v32 = vmax.f32 %v5404_v19, 0.0 }
 0x361   :  { %v5438_v2 = vadd.f32 %v4008_v29, %v6769_v41  ;;  %v5407_v30 = vadd.f32 %v3784_v0, %v6773_v18  ;;  %v4010_v4 = vpop.f32.mrb[51].mxu1  ;;  %4556 = vmatmul.mubr.bf16.gmra.mrb[76].mxu1 %v4121_v55  ;;  %v4077_v33 = vmax.f32 %v5436_v52, 0.0  ;;  %v4076_v6 = vmax.f32 %v5405_v54, 0.0 }
 0x362   :  { %v4079_v34 = vmax.f32 %v5406_v62, 0.0  ;;  %v5439_v35 = vadd.f32 %v4010_v4, %v6777_v23  ;;  %v4078_v9 = vmax.f32 %v5437_v61, 0.0 }
 0x363   :  { %v4081_v7 = vmax.f32 %v5438_v2, 0.0  ;;  %v4080_v8 = vmax.f32 %v5407_v30, 0.0 }
 0x364   :  { %v4123_v36 = vpack.c.bf16 %v4079_v34, %v4075_v32  ;;  %v4082_v37 = vmax.f32 %v5439_v35, 0.0 }
 0x365   :  { %v4125_v10 = vpack.c.bf16 %v4081_v7, %v4077_v33  ;;  %v4124_v11 = vpack.c.bf16 %v4080_v8, %v4076_v6  ;;  %v3788_v12 = vpop.f32.mrb[52].mxu0 }
 0x366   :  { %v4126_v13 = vpack.c.bf16 %v4082_v37, %v4078_v9  ;;  %v5408_v14 = vadd.f32 %v3788_v12, %v6765_v39  ;;  %v4014_v15 = vpop.f32.mrb[52].mxu1  ;;  %v3790_v16 = vpop.f32.mrb[53].mxu0 }
 0x367   :  { %v5440_v17 = vadd.f32 %v4014_v15, %v6769_v41  ;;  %v5409_v20 = vadd.f32 %v3790_v16, %v6773_v18  ;;  %v4016_v22 = vpop.f32.mrb[53].mxu1  ;;  %v3792_v24 = vpop.f32.mrb[54].mxu0  ;;  %4466 = vmatprep.mubr.bf16.mxu0 %v4124_v11 }
 0x368   :  { %v5441_v25 = vadd.f32 %v4016_v22, %v6777_v23  ;;  %v5410_v26 = vadd.f32 %v3792_v24, %v6765_v39  ;;  %v4018_v1 = vpop.f32.mrb[54].mxu1  ;;  %4563 = vmatprep.mubr.bf16.mxu1 %v4126_v13  ;;  %v3794_v27 = vpop.f32.mrb[55].mxu0  ;;  %4467 = vmatmul.mubr.bf16.gmra.mrb[80].mxu0 %v4123_v36  ;;  %v4083_v42 = vmax.f32 %v5408_v14, 0.0 }
 0x369   :  { %v5442_v31 = vadd.f32 %v4018_v1, %v6769_v41  ;;  %v5411_v38 = vadd.f32 %v3794_v27, %v6773_v18  ;;  %v4020_v40 = vpop.f32.mrb[55].mxu1  ;;  %4564 = vmatmul.mubr.bf16.gmra.mrb[80].mxu1 %v4125_v10  ;;  %v4085_v46 = vmax.f32 %v5440_v17, 0.0  ;;  %v4084_v45 = vmax.f32 %v5409_v20, 0.0 }
 0x36a   :  { %v4087_v43 = vmax.f32 %v5410_v26, 0.0  ;;  %v5443_v63 = vadd.f32 %v4020_v40, %v6777_v23  ;;  %v4086_v49 = vmax.f32 %v5441_v25, 0.0 }
 0x36b   :  { %v4089_v47 = vmax.f32 %v5442_v31, 0.0  ;;  %v4088_v48 = vmax.f32 %v5411_v38, 0.0 }
 0x36c   :  { %v4127_v50 = vpack.c.bf16 %v4087_v43, %v4083_v42  ;;  %v4090_v51 = vmax.f32 %v5443_v63, 0.0 }
 0x36d   :  { %v4129_v44 = vpack.c.bf16 %v4089_v47, %v4085_v46  ;;  %v4128_v21 = vpack.c.bf16 %v4088_v48, %v4084_v45  ;;  %v3798_v53 = vpop.f32.mrb[56].mxu0 }
 0x36e   :  { %v4130_v55 = vpack.c.bf16 %v4090_v51, %v4086_v49  ;;  %v5412_v56 = vadd.f32 %v3798_v53, %v6765_v39  ;;  %v4024_v57 = vpop.f32.mrb[56].mxu1  ;;  %v3800_v58 = vpop.f32.mrb[57].mxu0 }
 0x36f   :  { %v5444_v19 = vadd.f32 %v4024_v57, %v6769_v41  ;;  %v5413_v3 = vadd.f32 %v3800_v58, %v6773_v18  ;;  %v4026_v5 = vpop.f32.mrb[57].mxu1  ;;  %v3802_v52 = vpop.f32.mrb[58].mxu0  ;;  %4474 = vmatprep.mubr.bf16.mxu0 %v4128_v21 }
 0x370   :  { %v5445_v54 = vadd.f32 %v4026_v5, %v6777_v23  ;;  %v5414_v59 = vadd.f32 %v3802_v52, %v6765_v39  ;;  %v4028_v60 = vpop.f32.mrb[58].mxu1  ;;  %4571 = vmatprep.mubr.bf16.mxu1 %v4130_v55  ;;  %v3804_v61 = vpop.f32.mrb[59].mxu0  ;;  %4475 = vmatmul.mubr.bf16.gmra.mrb[84].mxu0 %v4127_v50  ;;  %v4091_v2 = vmax.f32 %v5412_v56, 0.0 }
 0x371   :  { %v5446_v62 = vadd.f32 %v4028_v60, %v6769_v41  ;;  %v5415_v29 = vadd.f32 %v3804_v61, %v6773_v18  ;;  %v4030_v0 = vpop.f32.mrb[59].mxu1  ;;  %4572 = vmatmul.mubr.bf16.gmra.mrb[84].mxu1 %v4129_v44  ;;  %v4093_v32 = vmax.f32 %v5444_v19, 0.0  ;;  %v4092_v34 = vmax.f32 %v5413_v3, 0.0 }
 0x372   :  { %v4095_v30 = vmax.f32 %v5414_v59, 0.0  ;;  %v5447_v4 = vadd.f32 %v4030_v0, %v6777_v23  ;;  %v4094_v6 = vmax.f32 %v5445_v54, 0.0 }
 0x373   :  { %v4097_v35 = vmax.f32 %v5446_v62, 0.0  ;;  %v4096_v33 = vmax.f32 %v5415_v29, 0.0 }
 0x374   :  { %v4131_v7 = vpack.c.bf16 %v4095_v30, %v4091_v2  ;;  %v4098_v8 = vmax.f32 %v5447_v4, 0.0 }
 0x375   :  { %v4133_v9 = vpack.c.bf16 %v4097_v35, %v4093_v32  ;;  %v4132_v36 = vpack.c.bf16 %v4096_v33, %v4092_v34  ;;  %v3808_v37 = vpop.f32.mrb[60].mxu0 }
 0x376   :  { %v4134_v10 = vpack.c.bf16 %v4098_v8, %v4094_v6  ;;  %v5416_v11 = vadd.f32 %v3808_v37, %v6765_v39  ;;  %v4034_v12 = vpop.f32.mrb[60].mxu1  ;;  %v3810_v13 = vpop.f32.mrb[61].mxu0 }
 0x377   :  { %v5448_v14 = vadd.f32 %v4034_v12, %v6769_v41  ;;  %v5417_v15 = vadd.f32 %v3810_v13, %v6773_v18  ;;  %v4036_v16 = vpop.f32.mrb[61].mxu1  ;;  %v3812_v17 = vpop.f32.mrb[62].mxu0  ;;  %4482 = vmatprep.mubr.bf16.mxu0 %v4132_v36 }
 0x378   :  { %v5449_v20 = vadd.f32 %v4036_v16, %v6777_v23  ;;  %v5418_v22 = vadd.f32 %v3812_v17, %v6765_v39  ;;  %v4038_v24 = vpop.f32.mrb[62].mxu1  ;;  %4579 = vmatprep.mubr.bf16.mxu1 %v4134_v10  ;;  %v3814_v25 = vpop.f32.mrb[63].mxu0  ;;  %4483 = vmatmul.mubr.bf16.gmra.mrb[88].mxu0 %v4131_v7  ;;  %v4099_v31 = vmax.f32 %v5416_v11, 0.0 }
 0x379   :  { %v5450_v26 = vadd.f32 %v4038_v24, %v6769_v41  ;;  %v5419_v1 = vadd.f32 %v3814_v25, %v6773_v18  ;;  %v4040_v27 = vpop.f32.mrb[63].mxu1  ;;  %4580 = vmatmul.mubr.bf16.gmra.mrb[88].mxu1 %v4133_v9  ;;  %v4101_v42 = vmax.f32 %v5448_v14, 0.0  ;;  %v4100_v43 = vmax.f32 %v5417_v15, 0.0 }
 0x37a   :  { %v4103_v38 = vmax.f32 %v5418_v22, 0.0  ;;  %v5451_v40 = vadd.f32 %v4040_v27, %v6777_v23  ;;  %v4102_v45 = vmax.f32 %v5449_v20, 0.0  ;;  %v6846_v23 = vld [vmem:[%s6989_s6] ss:$0 sm:$0xff]  ;;  %s6489_s6 = smov [#allocation10]  }
 0x37b   :  { %v4105_v63 = vmax.f32 %v5450_v26, 0.0  ;;  %v4104_v46 = vmax.f32 %v5419_v1, 0.0  ;;  %s4744_s8 = sshll.u32 %s6489_s6, 4  ;;  %s4745_s8 = int_to_ptr.vmem [resolvable:$true] %s4744_s8 }
 0x37c   :  { %v4135_v39 = vpack.c.bf16 %v4103_v38, %v4099_v31  ;;  %v4106_v47 = vmax.f32 %v5451_v40, 0.0  ;;  %s6448_s9 = scalar_lea.vmem %s4745_s8, 16  ;;  %s6452_s10 = scalar_lea.vmem %s4745_s8, 32 }
 0x37d   :  { %v4137_v48 = vpack.c.bf16 %v4105_v63, %v4101_v42  ;;  %v4136_v49 = vpack.c.bf16 %v4104_v46, %v4100_v43  ;;  %p6449_p4 = scmp.ne.s32.totalorder %s4745_s8, %s6448_s9  ;;  %p6453_p5 = scmp.lt.s32.totalorder %s4745_s8, %s4745_s8 }
 0x37e   :  { %v4138_v50 = vpack.c.bf16 %v4106_v47, %v4102_v45  ;;  %p6454_p6 = scmp.lt.s32.totalorder %s6452_s10, %s6448_s9 }
 0x37f   :  { %4490 = vmatprep.mubr.bf16.mxu0 %v4136_v49 }
 0x380   :  { %4587 = vmatprep.mubr.bf16.mxu1 %v4138_v50  ;;  %4491 = vmatmul.mubr.bf16.gmra.mrb[92].mxu0 %v4135_v39  ;;  %p6455_p7 = por %p6454_p6, %p6453_p5 }
 0x381   :  { %4588 = vmatmul.mubr.bf16.gmra.mrb[92].mxu1 %v4137_v48 }
 0x382   :  { %p6456_p8 = pnand %p6455_p7, %p6449_p4 }
 0x41b   :  { %v5212_v41 = vpop.f32.mrb[64].mxu0 }
 0x41c   :  { %v5276_v18 = vpop.f32.mrb[64].mxu1  ;;  %v5213_v51 = vpop.f32.mrb[65].mxu0 }
 0x41d   :  { %v5214_v44 = vadd.f32 %v5213_v51, %v5212_v41  ;;  %v5277_v21 = vpop.f32.mrb[65].mxu1  ;;  %v5215_v53 = vpop.f32.mrb[66].mxu0 }
 0x41e   :  { %v5278_v55 = vadd.f32 %v5277_v21, %v5276_v18  ;;  %v5279_v56 = vpop.f32.mrb[66].mxu1  ;;  %v5216_v57 = vpop.f32.mrb[67].mxu0 }
 0x41f   :  { %v5217_v58 = vadd.f32 %v5216_v57, %v5215_v53  ;;  %v5280_v19 = vpop.f32.mrb[67].mxu1  ;;  %v4437_v3 = vadd.f32 %v5214_v44, %v6846_v23 }
 0x420   :  { %v5281_v5 = vadd.f32 %v5280_v19, %v5279_v56 }
 0x421   :  { %v4440_v52 = vadd.f32 %v5217_v58, %v6846_v23  ;;  %v4534_v54 = vadd.f32 %v5278_v55, %v4437_v3 }
 0x423   :  { %v5218_v59 = vpop.f32.mrb[68].mxu0  ;;  %4596 = vxpose.xlu0.b32.start [1/16] %v4534_v54, 128  ;;  %v4537_v60 = vadd.f32 %v5281_v5, %v4440_v52 }
 0x424   :  { %v5282_v61 = vpop.f32.mrb[68].mxu1  ;;  %v5219_v62 = vpop.f32.mrb[69].mxu0 }
 0x425   :  { %v5220_v29 = vadd.f32 %v5219_v62, %v5218_v59  ;;  %v5283_v0 = vpop.f32.mrb[69].mxu1  ;;  %v5221_v2 = vpop.f32.mrb[70].mxu0 }
 0x426   :  { %v5284_v30 = vadd.f32 %v5283_v0, %v5282_v61  ;;  %v5285_v4 = vpop.f32.mrb[70].mxu1  ;;  %v5222_v32 = vpop.f32.mrb[71].mxu0 }
 0x427   :  { %v4445_v34 = vadd.f32 %v5220_v29, %v6846_v23  ;;  %v5223_v35 = vadd.f32 %v5222_v32, %v5221_v2  ;;  %v5286_v33 = vpop.f32.mrb[71].mxu1  ;;  %4597 = vxpose.xlu0.b32.cont [2/16] %v4537_v60, 128 }
 0x428   :  { %v5287_v6 = vadd.f32 %v5286_v33, %v5285_v4 }
 0x429   :  { %v4448_v7 = vadd.f32 %v5223_v35, %v6846_v23  ;;  %v4542_v8 = vadd.f32 %v5284_v30, %v4445_v34 }
 0x42b   :  { %v5224_v9 = vpop.f32.mrb[72].mxu0  ;;  %4598 = vxpose.xlu0.b32.cont [3/16] %v4542_v8, 128  ;;  %v4545_v36 = vadd.f32 %v5287_v6, %v4448_v7 }
 0x42c   :  { %v5288_v37 = vpop.f32.mrb[72].mxu1  ;;  %v5225_v10 = vpop.f32.mrb[73].mxu0 }
 0x42d   :  { %v5226_v11 = vadd.f32 %v5225_v10, %v5224_v9  ;;  %v5289_v12 = vpop.f32.mrb[73].mxu1  ;;  %v5227_v13 = vpop.f32.mrb[74].mxu0 }
 0x42e   :  { %v5290_v14 = vadd.f32 %v5289_v12, %v5288_v37  ;;  %v5291_v15 = vpop.f32.mrb[74].mxu1  ;;  %v5228_v16 = vpop.f32.mrb[75].mxu0 }
 0x42f   :  { %v4453_v17 = vadd.f32 %v5226_v11, %v6846_v23  ;;  %v5229_v20 = vadd.f32 %v5228_v16, %v5227_v13  ;;  %v5292_v22 = vpop.f32.mrb[75].mxu1  ;;  %4599 = vxpose.xlu0.b32.cont [4/16] %v4545_v36, 128 }
 0x430   :  { %v5293_v24 = vadd.f32 %v5292_v22, %v5291_v15 }
 0x431   :  { %v4456_v25 = vadd.f32 %v5229_v20, %v6846_v23  ;;  %v4550_v26 = vadd.f32 %v5290_v14, %v4453_v17 }
 0x433   :  { %v5230_v1 = vpop.f32.mrb[76].mxu0  ;;  %4600 = vxpose.xlu0.b32.cont [5/16] %v4550_v26, 128  ;;  %v4553_v27 = vadd.f32 %v5293_v24, %v4456_v25 }
 0x434   :  { %v5294_v31 = vpop.f32.mrb[76].mxu1  ;;  %v5231_v38 = vpop.f32.mrb[77].mxu0 }
 0x435   :  { %v5232_v40 = vadd.f32 %v5231_v38, %v5230_v1  ;;  %v5295_v42 = vpop.f32.mrb[77].mxu1  ;;  %v5233_v43 = vpop.f32.mrb[78].mxu0 }
 0x436   :  { %v5296_v63 = vadd.f32 %v5295_v42, %v5294_v31  ;;  %v5297_v46 = vpop.f32.mrb[78].mxu1  ;;  %v5234_v45 = vpop.f32.mrb[79].mxu0 }
 0x437   :  { %v4461_v39 = vadd.f32 %v5232_v40, %v6846_v23  ;;  %v5235_v47 = vadd.f32 %v5234_v45, %v5233_v43  ;;  %v5298_v48 = vpop.f32.mrb[79].mxu1  ;;  %4601 = vxpose.xlu0.b32.cont [6/16] %v4553_v27, 128 }
 0x438   :  { %v5299_v49 = vadd.f32 %v5298_v48, %v5297_v46 }
 0x439   :  { %v4464_v50 = vadd.f32 %v5235_v47, %v6846_v23  ;;  %v4558_v41 = vadd.f32 %v5296_v63, %v4461_v39 }
 0x43b   :  { %v5236_v18 = vpop.f32.mrb[80].mxu0  ;;  %4602 = vxpose.xlu0.b32.cont [7/16] %v4558_v41, 128  ;;  %v4561_v51 = vadd.f32 %v5299_v49, %v4464_v50 }
 0x43c   :  { %v5300_v44 = vpop.f32.mrb[80].mxu1  ;;  %v5237_v21 = vpop.f32.mrb[81].mxu0 }
 0x43d   :  { %v5238_v53 = vadd.f32 %v5237_v21, %v5236_v18  ;;  %v5301_v55 = vpop.f32.mrb[81].mxu1  ;;  %v5239_v56 = vpop.f32.mrb[82].mxu0 }
 0x43e   :  { %v5302_v57 = vadd.f32 %v5301_v55, %v5300_v44  ;;  %v5303_v58 = vpop.f32.mrb[82].mxu1  ;;  %v5240_v19 = vpop.f32.mrb[83].mxu0 }
 0x43f   :  { %v4469_v3 = vadd.f32 %v5238_v53, %v6846_v23  ;;  %v5241_v5 = vadd.f32 %v5240_v19, %v5239_v56  ;;  %v5304_v52 = vpop.f32.mrb[83].mxu1  ;;  %4603 = vxpose.xlu0.b32.cont [8/16] %v4561_v51, 128 }
 0x440   :  { %v5305_v54 = vadd.f32 %v5304_v52, %v5303_v58 }
 0x441   :  { %v4472_v59 = vadd.f32 %v5241_v5, %v6846_v23  ;;  %v4566_v60 = vadd.f32 %v5302_v57, %v4469_v3 }
 0x443   :  { %v5242_v61 = vpop.f32.mrb[84].mxu0  ;;  %4604 = vxpose.xlu0.b32.cont [9/16] %v4566_v60, 128  ;;  %v4569_v62 = vadd.f32 %v5305_v54, %v4472_v59 }
 0x444   :  { %v5306_v29 = vpop.f32.mrb[84].mxu1  ;;  %v5243_v0 = vpop.f32.mrb[85].mxu0 }
 0x445   :  { %v5244_v2 = vadd.f32 %v5243_v0, %v5242_v61  ;;  %v5307_v30 = vpop.f32.mrb[85].mxu1  ;;  %v5245_v4 = vpop.f32.mrb[86].mxu0 }
 0x446   :  { %v5308_v32 = vadd.f32 %v5307_v30, %v5306_v29  ;;  %v5309_v34 = vpop.f32.mrb[86].mxu1  ;;  %v5246_v35 = vpop.f32.mrb[87].mxu0 }
 0x447   :  { %v4477_v33 = vadd.f32 %v5244_v2, %v6846_v23  ;;  %v5247_v6 = vadd.f32 %v5246_v35, %v5245_v4  ;;  %v5310_v7 = vpop.f32.mrb[87].mxu1  ;;  %4605 = vxpose.xlu0.b32.cont [10/16] %v4569_v62, 128 }
 0x448   :  { %v5311_v8 = vadd.f32 %v5310_v7, %v5309_v34 }
 0x449   :  { %v4480_v9 = vadd.f32 %v5247_v6, %v6846_v23  ;;  %v4574_v36 = vadd.f32 %v5308_v32, %v4477_v33 }
 0x44b   :  { %v5248_v37 = vpop.f32.mrb[88].mxu0  ;;  %4606 = vxpose.xlu0.b32.cont [11/16] %v4574_v36, 128  ;;  %v4577_v10 = vadd.f32 %v5311_v8, %v4480_v9 }
 0x44c   :  { %v5312_v11 = vpop.f32.mrb[88].mxu1  ;;  %v5249_v12 = vpop.f32.mrb[89].mxu0 }
 0x44d   :  { %v5250_v13 = vadd.f32 %v5249_v12, %v5248_v37  ;;  %v5313_v14 = vpop.f32.mrb[89].mxu1  ;;  %v5251_v15 = vpop.f32.mrb[90].mxu0 }
 0x44e   :  { %v5314_v16 = vadd.f32 %v5313_v14, %v5312_v11  ;;  %v5315_v17 = vpop.f32.mrb[90].mxu1  ;;  %v5252_v20 = vpop.f32.mrb[91].mxu0  ;;  %v4630_v14 = vadd.s32 8, %v6607_v28 }
 0x44f   :  { %v4485_v22 = vadd.f32 %v5250_v13, %v6846_v23  ;;  %v5253_v24 = vadd.f32 %v5252_v20, %v5251_v15  ;;  %v5316_v25 = vpop.f32.mrb[91].mxu1  ;;  %4607 = vxpose.xlu0.b32.cont [12/16] %v4577_v10, 128  ;;  %v4631_v15 = vadd.s32 16, %v6607_v28 }
 0x450   :  { %v5317_v26 = vadd.f32 %v5316_v25, %v5315_v17  ;;  %v4633_v17 = vadd.s32 32, %v6607_v28  ;;  %v4636_v25 = vadd.s32 56, %v6607_v28 }
 0x451   :  { %v4488_v1 = vadd.f32 %v5253_v24, %v6846_v23  ;;  %v4582_v27 = vadd.f32 %v5314_v16, %v4485_v22  ;;  %v4632_v16 = vadd.s32 24, %v6607_v28  ;;  %v4634_v22 = vadd.s32 40, %v6607_v28 }
 0x452   :  { %v4635_v24 = vadd.s32 48, %v6607_v28 }
 0x453   :  { %v5254_v31 = vpop.f32.mrb[92].mxu0  ;;  %4608 = vxpose.xlu0.b32.cont [13/16] %v4582_v27, 128  ;;  %v4585_v38 = vadd.f32 %v5317_v26, %v4488_v1  ;;  %v4637_v26 = vadd.s32 64, %v6607_v28  ;;  %v4638_v1 = vadd.s32 72, %v6607_v28  ;;  %v4639_v27 = vadd.s32 80, %v6607_v28 }
 0x454   :  { %v5318_v40 = vpop.f32.mrb[92].mxu1  ;;  %v5255_v42 = vpop.f32.mrb[93].mxu0 }
 0x455   :  { %v5256_v43 = vadd.f32 %v5255_v42, %v5254_v31  ;;  %v5319_v63 = vpop.f32.mrb[93].mxu1  ;;  %v5257_v46 = vpop.f32.mrb[94].mxu0  ;;  %v4640_v31 = vadd.s32 88, %v6607_v28  ;;  %v4642_v42 = vadd.s32 104, %v6607_v28 }
 0x456   :  { %v5320_v45 = vadd.f32 %v5319_v63, %v5318_v40  ;;  %v5321_v39 = vpop.f32.mrb[94].mxu1  ;;  %v5258_v47 = vpop.f32.mrb[95].mxu0  ;;  %v4641_v40 = vadd.s32 96, %v6607_v28  ;;  %v4644_v63 = vadd.s32 120, %v6607_v28 }
 0x457   :  { %v4493_v48 = vadd.f32 %v5256_v43, %v6846_v23  ;;  %v5259_v49 = vadd.f32 %v5258_v47, %v5257_v46  ;;  %v5322_v50 = vpop.f32.mrb[95].mxu1  ;;  %4609 = vxpose.xlu0.b32.cont [14/16] %v4585_v38, 128  ;;  %v4643_v43 = vadd.s32 112, %v6607_v28 }
 0x458   :  { %v5323_v41 = vadd.f32 %v5322_v50, %v5321_v39 }
 0x459   :  { %v4496_v18 = vadd.f32 %v5259_v49, %v6846_v23  ;;  %v4590_v51 = vadd.f32 %v5320_v45, %v4493_v48 }
 0x45b   :  { %4610 = vxpose.xlu0.b32.cont [15/16] %v4590_v51, 128  ;;  %v4593_v44 = vadd.f32 %v5323_v41, %v4496_v18 }
 0x45f   :  { %4611 = vxpose.xlu0.b32.end [16/16] %v4593_v44, 128 }
 0x4a3   :  { %v6864_v21 = vpop.trf.xlu0 }
 0x4a7   :  { %v6866_v53 = vpop.trf.xlu0 }
 0x4ab   :  { %v6868_v55 = vpop.trf.xlu0 }
 0x4af   :  { %v6870_v56 = vpop.trf.xlu0 }
 0x4b3   :  { %v6872_v57 = vpop.trf.xlu0 }
 0x4b4   :  { %v4645_v29 = vmax.f32 %v6864_v21, %v6872_v57 }
 0x4b7   :  { %v6874_v58 = vpop.trf.xlu0 }
 0x4b8   :  { %v4646_v61 = vmax.f32 %v6866_v53, %v6874_v58 }
 0x4bb   :  { %v6876_v19 = vpop.trf.xlu0 }
 0x4bc   :  { %v4647_v0 = vmax.f32 %v6868_v55, %v6876_v19 }
 0x4bf   :  { %v6878_v3 = vpop.trf.xlu0 }
 0x4c0   :  { %v4648_v2 = vmax.f32 %v6870_v56, %v6878_v3 }
 0x4c3   :  { %v6880_v23 = vpop.trf.xlu0 }
 0x4c4   :  { %v4649_v4 = vmax.f32 %v4645_v29, %v6880_v23 }
 0x4c7   :  { %v6882_v5 = vpop.trf.xlu0 }
 0x4c8   :  { %v4650_v30 = vmax.f32 %v4646_v61, %v6882_v5 }
 0x4cb   :  { %v6884_v52 = vpop.trf.xlu0 }
 0x4cc   :  { %v4651_v32 = vmax.f32 %v4647_v0, %v6884_v52 }
 0x4cf   :  { %v6886_v54 = vpop.trf.xlu0 }
 0x4d0   :  { %v4652_v34 = vmax.f32 %v4648_v2, %v6886_v54 }
 0x4d3   :  { %v6888_v59 = vpop.trf.xlu0 }
 0x4d4   :  { %v4653_v6 = vmax.f32 %v4649_v4, %v6888_v59 }
 0x4d7   :  { %v6890_v60 = vpop.trf.xlu0 }
 0x4d8   :  { %v4654_v35 = vmax.f32 %v4650_v30, %v6890_v60 }
 0x4da   :  { %v4657_v9 = vmax.f32 %v4653_v6, %v4654_v35 }
 0x4db   :  { %v6894_v62 = vpop.trf.xlu0 }
 0x4dc   :  { %v4655_v7 = vmax.f32 %v4651_v32, %v6894_v62 }
 0x4df   :  { %v4627_v33 = vpop.trf.xlu0 }
 0x4e0   :  { %v4656_v8 = vmax.f32 %v4652_v34, %v4627_v33 }
 0x4e2   :  { %v4658_v36 = vmax.f32 %v4655_v7, %v4656_v8 }
 0x4e4   :  { %v4659_v37 = vmax.f32 %v4657_v9, %v4658_v36 }
 0x4e6   :  { %v4660_v10 = vrot.slane %v4659_v37, 4 }
 0x4e8   :  { %v4661_v11 = vmax.f32 %v4659_v37, %v4660_v10 }
 0x4ea   :  { %v4662_v12 = vrot.slane %v4661_v11, 2 }
 0x4ec   :  { %v4663_v13 = vmax.f32 %v4661_v11, %v4662_v12 }
 0x4ee   :  { %v4664_v20 = vrot.slane %v4663_v13, 1 }
 0x4f0   :  { %v4665_v38 = vmax.f32 %v4663_v13, %v4664_v20 }
 0x4f2   :  { %vm4666_vm0 = vcmp.eq.f32.partialorder %v6864_v21, %v4665_v38  ;;  %vm4667_vm1 = vcmp.eq.f32.partialorder %v6866_v53, %v4665_v38  ;;  %vm4668_vm2 = vcmp.eq.f32.partialorder %v6868_v55, %v4665_v38  ;;  %vm4669_vm3 = vcmp.eq.f32.partialorder %v6870_v56, %v4665_v38 }
 0x4f3   :  { %vm4670_vm4 = vcmp.eq.f32.partialorder %v6872_v57, %v4665_v38  ;;  %vm4671_vm5 = vcmp.eq.f32.partialorder %v6874_v58, %v4665_v38  ;;  %vm4672_vm6 = vcmp.eq.f32.partialorder %v6876_v19, %v4665_v38  ;;  %vm4673_vm7 = vcmp.eq.f32.partialorder %v6878_v3, %v4665_v38 }
 0x4f4   :  { %vm4674_vm8 = vcmp.eq.f32.partialorder %v6880_v23, %v4665_v38  ;;  %vm4675_vm9 = vcmp.eq.f32.partialorder %v6882_v5, %v4665_v38  ;;  %vm4676_vm10 = vcmp.eq.f32.partialorder %v6884_v52, %v4665_v38  ;;  %vm4677_vm11 = vcmp.eq.f32.partialorder %v6886_v54, %v4665_v38 }
 0x4f5   :  { %vm4678_vm12 = vcmp.eq.f32.partialorder %v6888_v59, %v4665_v38  ;;  %vm4679_vm13 = vcmp.eq.f32.partialorder %v6890_v60, %v4665_v38  ;;  %vm4680_vm14 = vcmp.eq.f32.partialorder %v6894_v62, %v4665_v38  ;;  %vm4681_vm15 = vcmp.eq.f32.partialorder %v4627_v33, %v4665_v38 }
 0x4f6   :  { %v4682_v46 = vsel %vm4666_vm0, %v6607_v28, 128  ;;  %v4683_v45 = vsel %vm4667_vm1, %v4630_v14, 128  ;;  %v4684_v39 = vsel %vm4668_vm2, %v4631_v15, 128  ;;  %v4685_v47 = vsel %vm4669_vm3, %v4632_v16, 128 }
 0x4f7   :  { %v4686_v48 = vsel %vm4670_vm4, %v4633_v17, 128  ;;  %v4687_v49 = vsel %vm4671_vm5, %v4634_v22, 128  ;;  %v4688_v50 = vsel %vm4672_vm6, %v4635_v24, 128  ;;  %v4689_v28 = vsel %vm4673_vm7, %v4636_v25, 128 }
 0x4f8   :  { %v4690_v41 = vsel %vm4674_vm8, %v4637_v26, 128  ;;  %v4691_v18 = vsel %vm4675_vm9, %v4638_v1, 128  ;;  %v4692_v51 = vsel %vm4676_vm10, %v4639_v27, 128  ;;  %v4693_v44 = vsel %vm4677_vm11, %v4640_v31, 128 }
 0x4f9   :  { %v4694_v21 = vsel %vm4678_vm12, %v4641_v40, 128  ;;  %v4695_v53 = vsel %vm4679_vm13, %v4642_v42, 128  ;;  %v4696_v55 = vsel %vm4680_vm14, %v4643_v43, 128  ;;  %v4697_v56 = vsel %vm4681_vm15, %v4644_v63, 128 }
 0x4fa   :  { %vm4698_vm0 = vcmp.lt.s32.totalorder %v4682_v46, %v4686_v48  ;;  %vm4700_vm1 = vcmp.lt.s32.totalorder %v4683_v45, %v4687_v49  ;;  %vm4702_vm2 = vcmp.lt.s32.totalorder %v4684_v39, %v4688_v50  ;;  %vm4704_vm3 = vcmp.lt.s32.totalorder %v4685_v47, %v4689_v28 }
 0x4fb   :  { %v4699_v57 = vsel %vm4698_vm0, %v4682_v46, %v4686_v48  ;;  %v4701_v58 = vsel %vm4700_vm1, %v4683_v45, %v4687_v49  ;;  %v4703_v19 = vsel %vm4702_vm2, %v4684_v39, %v4688_v50  ;;  %v4705_v3 = vsel %vm4704_vm3, %v4685_v47, %v4689_v28 }
 0x4fc   :  { %vm4706_vm4 = vcmp.lt.s32.totalorder %v4699_v57, %v4690_v41  ;;  %vm4708_vm5 = vcmp.lt.s32.totalorder %v4701_v58, %v4691_v18  ;;  %vm4710_vm6 = vcmp.lt.s32.totalorder %v4703_v19, %v4692_v51  ;;  %vm4712_vm7 = vcmp.lt.s32.totalorder %v4705_v3, %v4693_v44 }
 0x4fd   :  { %v4707_v23 = vsel %vm4706_vm4, %v4699_v57, %v4690_v41  ;;  %v4709_v5 = vsel %vm4708_vm5, %v4701_v58, %v4691_v18  ;;  %v4711_v52 = vsel %vm4710_vm6, %v4703_v19, %v4692_v51  ;;  %v4713_v54 = vsel %vm4712_vm7, %v4705_v3, %v4693_v44 }
 0x4fe   :  { %vm4714_vm8 = vcmp.lt.s32.totalorder %v4707_v23, %v4694_v21  ;;  %vm4716_vm9 = vcmp.lt.s32.totalorder %v4709_v5, %v4695_v53  ;;  %vm4718_vm10 = vcmp.lt.s32.totalorder %v4711_v52, %v4696_v55  ;;  %vm4720_vm11 = vcmp.lt.s32.totalorder %v4713_v54, %v4697_v56 }
 0x4ff   :  { %v4715_v59 = vsel %vm4714_vm8, %v4707_v23, %v4694_v21  ;;  %v4717_v60 = vsel %vm4716_vm9, %v4709_v5, %v4695_v53  ;;  %v4719_v61 = vsel %vm4718_vm10, %v4711_v52, %v4696_v55  ;;  %v4721_v62 = vsel %vm4720_vm11, %v4713_v54, %v4697_v56 }
 0x500   :  { %vm4722_vm12 = vcmp.lt.s32.totalorder %v4715_v59, %v4717_v60  ;;  %vm4724_vm13 = vcmp.lt.s32.totalorder %v4719_v61, %v4721_v62 }
 0x501   :  { %v4723_v29 = vsel %vm4722_vm12, %v4715_v59, %v4717_v60  ;;  %v4725_v0 = vsel %vm4724_vm13, %v4719_v61, %v4721_v62 }
 0x502   :  { %vm4726_vm14 = vcmp.lt.s32.totalorder %v4723_v29, %v4725_v0 }
 0x503   :  { %v4727_v2 = vsel %vm4726_vm14, %v4723_v29, %v4725_v0 }
 0x504   :  { %v4728_v30 = vrot.slane %v4727_v2, 4 }
 0x506   :  { %vm4729_vm15 = vcmp.lt.s32.totalorder %v4727_v2, %v4728_v30 }
 0x507   :  { %v4730_v4 = vsel %vm4729_vm15, %v4727_v2, %v4728_v30 }
 0x508   :  { %v4731_v32 = vrot.slane %v4730_v4, 2 }
 0x50a   :  { %vm4732_vm0 = vcmp.lt.s32.totalorder %v4730_v4, %v4731_v32 }
 0x50b   :  { %v4733_v34 = vsel %vm4732_vm0, %v4730_v4, %v4731_v32 }
 0x50c   :  { %v4734_v35 = vrot.slane %v4733_v34, 1 }
 0x50e   :  { %vm4735_vm1 = vcmp.lt.s32.totalorder %v4733_v34, %v4734_v35 }
 0x50f   :  { %v4736_v33 = vsel %vm4735_vm1, %v4733_v34, %v4734_v35 }
 0x510   :  { %4737 = vst [vmem:[#allocation10] sm:$0x1] %v4736_v33 }
 0x511   :  { %6459 = shalt.err (!%p6456_p8)
}
 0x512   :  { %s6460_s15 = scalar_lea.hbm %s6990_s7, 16 }
 0x513   :  { %p6461_p9 = scmp.ne.s32.totalorder %s6990_s7, %s6460_s15  ;;  %p6464_p10 = scmp.lt.u32.totalorder %s6460_s15, %s6990_s7 }
 0x515   :  { %p6466_p11 = pnand %p6464_p10, %p6461_p9 }
 0x517   :  { %6469 = shalt.err (!%p6466_p11)
}
 0x518   :  { %4747 = dma.vmem_to_hbm [thread:$0]  %s4745_s8, 16, %s6990_s7, [#allocation4]  }
 0x519   :  { %6476 = dma.done.wait [#allocation4], 16  }
 0x51a   :  { %6477 = vsyncadd [#allocation4], 4294967280 }
 0x51b   :  { %4751 = vsyncpa [#allocation3], 1 }
 0x51c   :  { %4752 = vsyncpa [#allocation6], 1 }
 0x51d   :  { %4753 = vsyncpa [#allocation9], 1 }
 0x51e   :  { %4754 = vsyncpa [#allocation4], 1 }

</bundles_post_ra>
